<compile_context>
chip_gen: v6e
topology: v6e:2x2x1
jax: 0.10.0
libtpu: 0.0.40
codegen_flags: <defaults>
</compile_context>

<pallas_src>
import math

import jax
import jax.numpy as jnp
from jax import lax
from jax.experimental import pallas as pl
from jax.experimental.pallas import tpu as pltpu

LANE = 128
SUB = 8


def _round_up(x, m):
    return (x + m - 1) // m * m


def _make_kernel(*, Tc, Bp, H, Br, C_F, C_B, C_G, T_real, needs_mask, unroll):
    bf16 = jnp.bfloat16

    def kernel(x_ref, b_ref, wx_ref, bx_ref, wb_ref, wh_ref,
               out_ref, hN_ref, cN_ref,
               h_sc, c_sc, fh_sc, pg_sc):
        g = pl.program_id(0)

        # hidden=None in the PyTorch forward -> zero-initialized (h, c)
        @pl.when(g == 0)
        def _():
            h_sc[...] = jnp.zeros_like(h_sc)
            c_sc[...] = jnp.zeros_like(c_sc)

        # ---- per-time-block (h-independent) precompute: one fused bf16 matmul ----
        # xz columns: [hidden-forget : C_F | bridge-forget : C_B | packed gates : C_G]
        # (all biases, including the pre-summed gate biases, live in f32 bx_ref)
        xz = (jnp.dot(x_ref[...], wx_ref[...], preferred_element_type=jnp.float32)
              + bx_ref[...])                                        # (rows, Ntot) f32
        fh_sc[...] = jax.nn.sigmoid(xz[:, :H])                      # hidden forget gate
        bb = jax.nn.sigmoid(xz[:, C_F:C_F + Br]) * b_ref[...].astype(jnp.float32)
        # gate pre-activation that does not depend on h (gates packed at width 4H):
        pg_sc[...] = (xz[:, C_F + C_B:]
                      + jnp.dot(bb.astype(bf16), wb_ref[...],
                                preferred_element_type=jnp.float32))  # (rows, C_G)

        # ---- sequential recurrence over the Tc timesteps of this block ----
        def step(t, carry):
            h, c = carry                                            # (Bp, H) f32
            row = pl.multiple_of(t * Bp, Bp)
            hx = fh_sc[pl.ds(row, Bp), :] * h                       # (Bp, H) f32
            gates = (pg_sc[pl.ds(row, Bp), :]
                     + jnp.dot(hx.astype(bf16), wh_ref[...],
                               preferred_element_type=jnp.float32))  # (Bp, C_G) f32
            fg = jax.nn.sigmoid(gates[:, 0 * H:1 * H])
            ig = jax.nn.sigmoid(gates[:, 1 * H:2 * H])
            cg = jnp.tanh(gates[:, 2 * H:3 * H])
            og = jax.nn.sigmoid(gates[:, 3 * H:4 * H])
            cy = c * fg + ig * cg
            hy = og * jnp.tanh(cy)
            if needs_mask:  # only traced when T is padded up to a multiple of Tc
                valid = (g * Tc + t) < T_real
                hy = jnp.where(valid, hy, h)
                cy = jnp.where(valid, cy, c)
            out_ref[pl.ds(row, Bp), :] = hy.astype(out_ref.dtype)
            return hy, cy

        h_fin, c_fin = lax.fori_loop(0, Tc, step, (h_sc[...], c_sc[...]),
                                     unroll=unroll)
        h_sc[...] = h_fin
        c_sc[...] = c_fin

        # final state written only once, on the last grid step
        @pl.when(g == pl.num_programs(0) - 1)
        def _():
            hN_ref[...] = h_fin.astype(hN_ref.dtype)
            cN_ref[...] = c_fin.astype(cN_ref.dtype)

    return kernel


def propagation_unit_forward(x, b, wx2f, bx2f, wx2h, bx2h, wb2h, bb2h, wh2h, bh2h,
                             *, time_block=32):
    """x: (T, B, I), b: (T, B, Br); time-major (batch_first=False).

    Linear weights are stored transposed, i.e. (in_features, out_features),
    so the kernel computes x @ W on the MXU (a PyTorch nn.Linear weight
    (out, in) must be transposed before being passed here).
    Returns (outputs (T, B, H), (h (1, B, H), c (1, B, H))).
    """
    # TODO(synk): only num_layers=1 with bridge_size > 0 (the layer-0 cell) is
    # implemented; deeper stacks / the bridge_size==0 cell would chain kernels.
    T, B, I = x.shape
    Br = b.shape[-1]
    H = wh2h.shape[0]

    f32, bf16 = jnp.float32, jnp.bfloat16
    out_dtype = x.dtype

    # ---- packed column layout: gates packed as one 4H group, 128-aligned sections ----
    C_F = _round_up(H, LANE)          # hidden-forget section
    C_B = _round_up(Br, LANE)         # bridge-forget section
    C_G = _round_up(4 * H, LANE)      # packed 4-gate section
    Ntot = C_F + C_B + C_G
    Bp = _round_up(B, SUB)            # sublane-aligned batch

    def _lane(n):
        return _round_up(max(int(n), 1), LANE)

    def _vmem_bytes(tc, bp):
        # exact-ish accounting with lane/sublane layout padding
        rows = tc * bp
        slabs = 2 * rows * (_lane(I) + _lane(Br)) * 2                     # bf16 x/b, 2x buffered
        oslab = 2 * rows * _lane(H) * jnp.dtype(out_dtype).itemsize       # outputs, 2x buffered
        small = 4 * bp * _lane(H) * jnp.dtype(out_dtype).itemsize         # final h/c
        weights = (_round_up(I, 16) * _lane(Ntot) * 2 + SUB * _lane(Ntot) * 4
                   + _round_up(Br, 16) * _lane(C_G) * 2
                   + _round_up(H, 16) * _lane(C_G) * 2)                   # single-buffered bf16
        scratch = (2 * bp * _lane(H) + rows * _lane(H) + rows * _lane(C_G)) * 4
        return slabs + oslab + small + weights + scratch

    try:
        dev_vmem = int(pltpu.get_tpu_info().vmem_capacity_bytes)
    except Exception:
        dev_vmem = 64 << 20           # conservative fallback (v7x per-TC VMEM)
    budget = dev_vmem - dev_vmem // 8  # ~12.5% headroom

    Tc = max(1, min(time_block, T))   # timesteps per grid step
    while Tc > 1 and _vmem_bytes(Tc, Bp) > budget:
        Tc //= 2
    if (Tc * Bp) % 16 != 0:           # bf16 slabs: keep second-minor dim a multiple of 16
        Bp = _round_up(B, 16)
    Tp = _round_up(T, Tc)
    needs_mask = (Tp != T)
    rows = Tc * Bp

    # ---- fuse + zero-pad parameters (zero padding keeps the math exact) ----
    Wx = jnp.zeros((I, Ntot), f32)
    Wx = Wx.at[:, :H].set(wx2f[:, :H].astype(f32))
    Wx = Wx.at[:, C_F:C_F + Br].set(wx2f[:, H:].astype(f32))
    Wx = Wx.at[:, C_F + C_B:C_F + C_B + 4 * H].set(wx2h.astype(f32))
    Wx = Wx.astype(bf16)
    bx = jnp.zeros((1, Ntot), f32)
    bx = bx.at[:, :H].set(bx2f[:, :H].astype(f32))
    bx = bx.at[:, C_F:C_F + Br].set(bx2f[:, H:].astype(f32))
    bx = bx.at[:, C_F + C_B:C_F + C_B + 4 * H].set(
        (bx2h + bh2h + bb2h).astype(f32))                 # pre-summed gate biases, kept f32
    Wb = jnp.zeros((Br, C_G), f32).at[:, :4 * H].set(wb2h.astype(f32)).astype(bf16)
    Wh = jnp.zeros((H, C_G), f32).at[:, :4 * H].set(wh2h.astype(f32)).astype(bf16)

    # ---- pad batch/time, flatten (time, batch) -> rows, cast activations to bf16 ----
    # TODO(synk): for B << 8, streaming unpadded rows would cut x/b DMA a further Bp/B.
    xp = jnp.zeros((Tp, Bp, I), f32).at[:T, :B, :].set(x.astype(f32)).astype(bf16)
    bp_ = jnp.zeros((Tp, Bp, Br), f32).at[:T, :B, :].set(b.astype(f32)).astype(bf16)
    x2 = xp.reshape(Tp * Bp, I)
    b2 = bp_.reshape(Tp * Bp, Br)

    kernel = _make_kernel(Tc=Tc, Bp=Bp, H=H, Br=Br, C_F=C_F, C_B=C_B, C_G=C_G,
                          T_real=T, needs_mask=needs_mask, unroll=min(Tc, 8))

    need = _vmem_bytes(Tc, Bp)
    vmem_limit = int(min(max(need + (4 << 20), 32 << 20),
                         max(budget, need + (2 << 20))))

    def _build(single_buffer_weights):
        def const_spec(a):
            # grid-invariant weights/biases: same whole-array block every step;
            # single-buffer them so their residency is not doubled.
            if single_buffer_weights:
                return pl.BlockSpec(a.shape, lambda g: (0, 0),
                                    pipeline_mode=pl.Buffered(1))
            return pl.BlockSpec(a.shape, lambda g: (0, 0))

        grid_spec = pltpu.PrefetchScalarGridSpec(
            num_scalar_prefetch=0,
            grid=(Tp // Tc,),
            in_specs=[
                pl.BlockSpec((rows, I), lambda g: (g, 0)),     # x time-slab (bf16)
                pl.BlockSpec((rows, Br), lambda g: (g, 0)),    # b time-slab (bf16, true width)
                const_spec(Wx), const_spec(bx), const_spec(Wb), const_spec(Wh),
            ],
            out_specs=(
                pl.BlockSpec((rows, H), lambda g: (g, 0)),     # outputs slab
                pl.BlockSpec((Bp, H), lambda g: (0, 0)),       # final h
                pl.BlockSpec((Bp, H), lambda g: (0, 0)),       # final c
            ),
            scratch_shapes=[
                pltpu.VMEM((Bp, H), f32),        # h carry
                pltpu.VMEM((Bp, H), f32),        # c carry
                pltpu.VMEM((rows, H), f32),      # per-block hidden forget gate
                pltpu.VMEM((rows, C_G), f32),    # per-block h-independent gate preact
            ],
        )
        return pl.pallas_call(
            kernel,
            out_shape=(
                jax.ShapeDtypeStruct((Tp * Bp, H), out_dtype),
                jax.ShapeDtypeStruct((Bp, H), out_dtype),
                jax.ShapeDtypeStruct((Bp, H), out_dtype),
            ),
            grid_spec=grid_spec,
            compiler_params=pltpu.CompilerParams(
                dimension_semantics=("arbitrary",),   # time recurrence -> sequential grid
                vmem_limit_bytes=vmem_limit,
            ),
        )

    try:
        outputs, hN, cN = _build(True)(x2, b2, Wx, bx, Wb, Wh)
    except Exception:
        # keep the kernel runnable if single-buffered weight specs are rejected
        outputs, hN, cN = _build(False)(x2, b2, Wx, bx, Wb, Wh)

    outputs = outputs.reshape(Tp, Bp, H)[:T, :B, :]
    # match PyTorch hidden shape (num_layers=1, B, H)
    return outputs, (hN[None, :B, :], cN[None, :B, :])


if __name__ == "__main__":
    # small shapes consistent with the module
    T, B, I, Br, H = 8, 2, 16, 8, 32

    key = jax.random.PRNGKey(0)
    keys = jax.random.split(key, 10)
    std = 1.0 / math.sqrt(H)

    def u(k, shape):
        return jax.random.uniform(k, shape, jnp.float32, -std, std)

    # torch nn.Linear weight is (out, in); here stored transposed (in, out).
    wx2f = u(keys[0], (I, H + Br)); bx2f = u(keys[1], (1, H + Br))
    wx2h = u(keys[2], (I, 4 * H));  bx2h = u(keys[3], (1, 4 * H))
    wb2h = u(keys[4], (Br, 4 * H)); bb2h = u(keys[5], (1, 4 * H))
    wh2h = u(keys[6], (H, 4 * H));  bh2h = u(keys[7], (1, 4 * H))

    x = jax.random.normal(keys[8], (T, B, I), jnp.float32)
    b = jax.random.normal(keys[9], (T, B, Br), jnp.float32)

    outputs, (h_final, c_final) = propagation_unit_forward(
        x, b, wx2f, bx2f, wx2h, bx2h, wb2h, bb2h, wh2h, bh2h)
    jax.block_until_ready((outputs, h_final, c_final))

    # plain-JAX reference (mirrors the PyTorch forward with hidden=None)
    def reference():
        h = jnp.zeros((B, H), jnp.float32)
        c = jnp.zeros((B, H), jnp.float32)
        outs = []
        for t in range(T):
            xt, bt = x[t], b[t]
            bh_forget = xt @ wx2f + bx2f
            hx = jax.nn.sigmoid(bh_forget[:, :H]) * h
            bb_ = jax.nn.sigmoid(bh_forget[:, H:]) * bt
            gates = (xt @ wx2h + bx2h) + (hx @ wh2h + bh2h) + (bb_ @ wb2h + bb2h)
            fg = jax.nn.sigmoid(gates[:, :H])
            ig = jax.nn.sigmoid(gates[:, H:2 * H])
            cg = jnp.tanh(gates[:, 2 * H:3 * H])
            og = jax.nn.sigmoid(gates[:, 3 * H:])
            c = c * fg + ig * cg
            h = og * jnp.tanh(c)
            outs.append(h)
        return jnp.stack(outs), h, c

    ro, rh, rc = reference()
    # bf16 MXU operands (with f32 accumulation / f32 state) vs. the f32
    # reference -> loosened tolerance per the performance review.
    assert jnp.allclose(outputs, ro, atol=3e-2), "output mismatch vs reference"
    assert jnp.allclose(h_final[0], rh, atol=3e-2), "h_final mismatch vs reference"
    assert jnp.allclose(c_final[0], rc, atol=3e-2), "c_final mismatch vs reference"

    print("KERNEL_OK")
</pallas_src>

<mosaic_0001>
module attributes {stable_mosaic.version = 11 : i64} {
  func.func @kernel(%arg0: i32, %arg1: memref<64x16xbf16, #tpu.memory_space<vmem>>, %arg2: memref<64x8xbf16, #tpu.memory_space<vmem>>, %arg3: memref<16x384xbf16, #tpu.memory_space<vmem>>, %arg4: memref<1x384xf32, #tpu.memory_space<vmem>>, %arg5: memref<8x128xbf16, #tpu.memory_space<vmem>>, %arg6: memref<32x128xbf16, #tpu.memory_space<vmem>>, %arg7: memref<64x32xf32, #tpu.memory_space<vmem>>, %arg8: memref<8x32xf32, #tpu.memory_space<vmem>>, %arg9: memref<8x32xf32, #tpu.memory_space<vmem>>, %arg10: memref<8x32xf32, #tpu.memory_space<vmem>>, %arg11: memref<8x32xf32, #tpu.memory_space<vmem>>, %arg12: memref<64x32xf32, #tpu.memory_space<vmem>>, %arg13: memref<64x128xf32, #tpu.memory_space<vmem>>) attributes {dimension_semantics = [#tpu.dimension_semantics<arbitrary>], iteration_bounds = array<i64: 1>, scalar_prefetch = 0 : i64, scratch_operands = 4 : i64, tpu.core_type = #tpu.core_type<tc>, window_params = [{transform_indices = @transform_0, window_bounds = array<i64: 64, 16>}, {transform_indices = @transform_1, window_bounds = array<i64: 64, 8>}, {pipeline_mode = #tpu.pipeline_mode<synchronous>, transform_indices = @transform_2, window_bounds = array<i64: 16, 384>}, {pipeline_mode = #tpu.pipeline_mode<synchronous>, transform_indices = @transform_3, window_bounds = array<i64: 1, 384>}, {pipeline_mode = #tpu.pipeline_mode<synchronous>, transform_indices = @transform_4, window_bounds = array<i64: 8, 128>}, {pipeline_mode = #tpu.pipeline_mode<synchronous>, transform_indices = @transform_5, window_bounds = array<i64: 32, 128>}, {transform_indices = @transform_6, window_bounds = array<i64: 64, 32>}, {pipeline_mode = #tpu.pipeline_mode<synchronous>, transform_indices = @transform_7, window_bounds = array<i64: 8, 32>}, {pipeline_mode = #tpu.pipeline_mode<synchronous>, transform_indices = @transform_8, window_bounds = array<i64: 8, 32>}]} {
    %c0_i32 = arith.constant 0 : i32
    %0 = arith.cmpi eq, %arg0, %c0_i32 : i32
    %1 = arith.extui %0 : i1 to i32
    %c0_i32_0 = arith.constant 0 : i32
    %2 = arith.cmpi ne, %1, %c0_i32_0 : i32
    scf.if %2 {
      %cst_108 = arith.constant 0.000000e+00 : f32
      %342 = vector.broadcast %cst_108 : f32 to vector<8x32xf32>
      %c0_109 = arith.constant 0 : index
      %c0_110 = arith.constant 0 : index
      %343 = vector.load %arg10[%c0_109, %c0_110] : memref<8x32xf32, #tpu.memory_space<vmem>>, vector<8x32xf32>
      tpu.vector_store %arg10[%c0_109, %c0_110], %342 {strides = array<i32>} : memref<8x32xf32, #tpu.memory_space<vmem>>, vector<8x32xf32>,
      %cst_111 = arith.constant 0.000000e+00 : f32
      %344 = vector.broadcast %cst_111 : f32 to vector<8x32xf32>
      %c0_112 = arith.constant 0 : index
      %c0_113 = arith.constant 0 : index
      %345 = vector.load %arg11[%c0_112, %c0_113] : memref<8x32xf32, #tpu.memory_space<vmem>>, vector<8x32xf32>
      tpu.vector_store %arg11[%c0_112, %c0_113], %344 {strides = array<i32>} : memref<8x32xf32, #tpu.memory_space<vmem>>, vector<8x32xf32>,
    } else {
    }
    %c0 = arith.constant 0 : index
    %c0_1 = arith.constant 0 : index
    %3 = vector.load %arg1[%c0, %c0_1] : memref<64x16xbf16, #tpu.memory_space<vmem>>, vector<64x16xbf16>
    %c0_2 = arith.constant 0 : index
    %c0_3 = arith.constant 0 : index
    %4 = vector.load %arg3[%c0_2, %c0_3] : memref<16x384xbf16, #tpu.memory_space<vmem>>, vector<16x384xbf16>
    %cst = arith.constant dense<0.000000e+00> : vector<64x384xf32>
    %5 = tpu.matmul %3, %4, %cst {dimension_numbers = #tpu.dot_dimension_numbers<[1], [0], [0], [1], [0, 0, 1, 1], [], []>} : vector<64x16xbf16>, vector<16x384xbf16>, vector<64x384xf32> -> vector<64x384xf32>
    %c0_4 = arith.constant 0 : index
    %c0_5 = arith.constant 0 : index
    %6 = vector.load %arg4[%c0_4, %c0_5] : memref<1x384xf32, #tpu.memory_space<vmem>>, vector<1x384xf32>
    %7 = vector.broadcast %6 : vector<1x384xf32> to vector<64x384xf32>
    %8 = arith.addf %5, %7 : vector<64x384xf32>
    %9 = vector.extract_strided_slice %8 {offsets = [0, 0], sizes = [64, 32], strides = [1, 1]} : vector<64x384xf32> to vector<64x32xf32>
    %10 = arith.negf %9 : vector<64x32xf32>
    %11 = math.exp %10 : vector<64x32xf32>
    %cst_6 = arith.constant 1.000000e+00 : f32
    %12 = vector.broadcast %cst_6 : f32 to vector<64x32xf32>
    %13 = arith.addf %12, %11 : vector<64x32xf32>
    %14 = arith.divf %12, %13 : vector<64x32xf32>
    %c0_7 = arith.constant 0 : index
    %c0_8 = arith.constant 0 : index
    %15 = vector.load %arg12[%c0_7, %c0_8] : memref<64x32xf32, #tpu.memory_space<vmem>>, vector<64x32xf32>
    tpu.vector_store %arg12[%c0_7, %c0_8], %14 {strides = array<i32>} : memref<64x32xf32, #tpu.memory_space<vmem>>, vector<64x32xf32>,
    %16 = vector.extract_strided_slice %8 {offsets = [0, 128], sizes = [64, 8], strides = [1, 1]} : vector<64x384xf32> to vector<64x8xf32>
    %17 = arith.negf %16 : vector<64x8xf32>
    %18 = math.exp %17 : vector<64x8xf32>
    %cst_9 = arith.constant 1.000000e+00 : f32
    %19 = vector.broadcast %cst_9 : f32 to vector<64x8xf32>
    %20 = arith.addf %19, %18 : vector<64x8xf32>
    %21 = arith.divf %19, %20 : vector<64x8xf32>
    %c0_10 = arith.constant 0 : index
    %c0_11 = arith.constant 0 : index
    %22 = vector.load %arg2[%c0_10, %c0_11] : memref<64x8xbf16, #tpu.memory_space<vmem>>, vector<64x8xbf16>
    %23 = arith.extf %22 : vector<64x8xbf16> to vector<64x8xf32>
    %24 = arith.mulf %21, %23 : vector<64x8xf32>
    %25 = vector.extract_strided_slice %8 {offsets = [0, 256], sizes = [64, 128], strides = [1, 1]} : vector<64x384xf32> to vector<64x128xf32>
    %26 = arith.truncf %24 : vector<64x8xf32> to vector<64x8xbf16>
    %c0_12 = arith.constant 0 : index
    %c0_13 = arith.constant 0 : index
    %27 = vector.load %arg5[%c0_12, %c0_13] : memref<8x128xbf16, #tpu.memory_space<vmem>>, vector<8x128xbf16>
    %cst_14 = arith.constant dense<0.000000e+00> : vector<64x128xf32>
    %28 = tpu.matmul %26, %27, %cst_14 {dimension_numbers = #tpu.dot_dimension_numbers<[1], [0], [0], [1], [0, 0, 1, 1], [], []>} : vector<64x8xbf16>, vector<8x128xbf16>, vector<64x128xf32> -> vector<64x128xf32>
    %29 = arith.addf %25, %28 : vector<64x128xf32>
    %c0_15 = arith.constant 0 : index
    %c0_16 = arith.constant 0 : index
    %30 = vector.load %arg13[%c0_15, %c0_16] : memref<64x128xf32, #tpu.memory_space<vmem>>, vector<64x128xf32>
    tpu.vector_store %arg13[%c0_15, %c0_16], %29 {strides = array<i32>} : memref<64x128xf32, #tpu.memory_space<vmem>>, vector<64x128xf32>,
    %c0_17 = arith.constant 0 : index
    %c0_18 = arith.constant 0 : index
    %31 = vector.load %arg10[%c0_17, %c0_18] : memref<8x32xf32, #tpu.memory_space<vmem>>, vector<8x32xf32>
    %c0_19 = arith.constant 0 : index
    %c0_20 = arith.constant 0 : index
    %32 = vector.load %arg11[%c0_19, %c0_20] : memref<8x32xf32, #tpu.memory_space<vmem>>, vector<8x32xf32>
    %c0_i32_21 = arith.constant 0 : i32
    %c8_i32 = arith.constant 8 : i32
    %33 = arith.muli %c0_i32_21, %c8_i32 : i32
    %34 = tpu.assume_multiple %33, 8 : i32
    %35 = arith.index_cast %34 : i32 to index
    %c0_22 = arith.constant 0 : index
    %36 = vector.load %arg12[%35, %c0_22] : memref<64x32xf32, #tpu.memory_space<vmem>>, vector<8x32xf32>
    %37 = arith.mulf %36, %31 : vector<8x32xf32>
    %38 = arith.index_cast %34 : i32 to index
    %c0_23 = arith.constant 0 : index
    %39 = vector.load %arg13[%38, %c0_23] : memref<64x128xf32, #tpu.memory_space<vmem>>, vector<8x128xf32>
    %40 = arith.truncf %37 : vector<8x32xf32> to vector<8x32xbf16>
    %c0_24 = arith.constant 0 : index
    %c0_25 = arith.constant 0 : index
    %41 = vector.load %arg6[%c0_24, %c0_25] : memref<32x128xbf16, #tpu.memory_space<vmem>>, vector<32x128xbf16>
    %cst_26 = arith.constant dense<0.000000e+00> : vector<8x128xf32>
    %42 = tpu.matmul %40, %41, %cst_26 {dimension_numbers = #tpu.dot_dimension_numbers<[1], [0], [0], [1], [0, 0, 1, 1], [], []>} : vector<8x32xbf16>, vector<32x128xbf16>, vector<8x128xf32> -> vector<8x128xf32>
    %43 = arith.addf %39, %42 : vector<8x128xf32>
    %44 = vector.extract_strided_slice %43 {offsets = [0, 0], sizes = [8, 32], strides = [1, 1]} : vector<8x128xf32> to vector<8x32xf32>
    %45 = arith.negf %44 : vector<8x32xf32>
    %46 = math.exp %45 : vector<8x32xf32>
    %cst_27 = arith.constant 1.000000e+00 : f32
    %47 = vector.broadcast %cst_27 : f32 to vector<8x32xf32>
    %48 = arith.addf %47, %46 : vector<8x32xf32>
    %49 = arith.divf %47, %48 : vector<8x32xf32>
    %50 = vector.extract_strided_slice %43 {offsets = [0, 32], sizes = [8, 32], strides = [1, 1]} : vector<8x128xf32> to vector<8x32xf32>
    %51 = arith.negf %50 : vector<8x32xf32>
    %52 = math.exp %51 : vector<8x32xf32>
    %cst_28 = arith.constant 1.000000e+00 : f32
    %53 = vector.broadcast %cst_28 : f32 to vector<8x32xf32>
    %54 = arith.addf %53, %52 : vector<8x32xf32>
    %55 = arith.divf %53, %54 : vector<8x32xf32>
    %56 = vector.extract_strided_slice %43 {offsets = [0, 64], sizes = [8, 32], strides = [1, 1]} : vector<8x128xf32> to vector<8x32xf32>
    %57 = math.tanh %56 : vector<8x32xf32>
    %58 = vector.extract_strided_slice %43 {offsets = [0, 96], sizes = [8, 32], strides = [1, 1]} : vector<8x128xf32> to vector<8x32xf32>
    %59 = arith.negf %58 : vector<8x32xf32>
    %60 = math.exp %59 : vector<8x32xf32>
    %cst_29 = arith.constant 1.000000e+00 : f32
    %61 = vector.broadcast %cst_29 : f32 to vector<8x32xf32>
    %62 = arith.addf %61, %60 : vector<8x32xf32>
    %63 = arith.divf %61, %62 : vector<8x32xf32>
    %64 = arith.mulf %32, %49 : vector<8x32xf32>
    %65 = arith.mulf %55, %57 : vector<8x32xf32>
    %66 = arith.addf %64, %65 : vector<8x32xf32>
    %67 = math.tanh %66 : vector<8x32xf32>
    %68 = arith.mulf %63, %67 : vector<8x32xf32>
    %69 = arith.index_cast %34 : i32 to index
    %c0_30 = arith.constant 0 : index
    %70 = vector.load %arg7[%69, %c0_30] : memref<64x32xf32, #tpu.memory_space<vmem>>, vector<8x32xf32>
    tpu.vector_store %arg7[%69, %c0_30], %68 {strides = array<i32>} : memref<64x32xf32, #tpu.memory_space<vmem>>, vector<8x32xf32>,
    %c1_i32 = arith.constant 1 : i32
    %c8_i32_31 = arith.constant 8 : i32
    %71 = arith.muli %c1_i32, %c8_i32_31 : i32
    %72 = tpu.assume_multiple %71, 8 : i32
    %73 = arith.index_cast %72 : i32 to index
    %c0_32 = arith.constant 0 : index
    %74 = vector.load %arg12[%73, %c0_32] : memref<64x32xf32, #tpu.memory_space<vmem>>, vector<8x32xf32>
    %75 = arith.mulf %74, %68 : vector<8x32xf32>
    %76 = arith.index_cast %72 : i32 to index
    %c0_33 = arith.constant 0 : index
    %77 = vector.load %arg13[%76, %c0_33] : memref<64x128xf32, #tpu.memory_space<vmem>>, vector<8x128xf32>
    %78 = arith.truncf %75 : vector<8x32xf32> to vector<8x32xbf16>
    %c0_34 = arith.constant 0 : index
    %c0_35 = arith.constant 0 : index
    %79 = vector.load %arg6[%c0_34, %c0_35] : memref<32x128xbf16, #tpu.memory_space<vmem>>, vector<32x128xbf16>
    %cst_36 = arith.constant dense<0.000000e+00> : vector<8x128xf32>
    %80 = tpu.matmul %78, %79, %cst_36 {dimension_numbers = #tpu.dot_dimension_numbers<[1], [0], [0], [1], [0, 0, 1, 1], [], []>} : vector<8x32xbf16>, vector<32x128xbf16>, vector<8x128xf32> -> vector<8x128xf32>
    %81 = arith.addf %77, %80 : vector<8x128xf32>
    %82 = vector.extract_strided_slice %81 {offsets = [0, 0], sizes = [8, 32], strides = [1, 1]} : vector<8x128xf32> to vector<8x32xf32>
    %83 = arith.negf %82 : vector<8x32xf32>
    %84 = math.exp %83 : vector<8x32xf32>
    %cst_37 = arith.constant 1.000000e+00 : f32
    %85 = vector.broadcast %cst_37 : f32 to vector<8x32xf32>
    %86 = arith.addf %85, %84 : vector<8x32xf32>
    %87 = arith.divf %85, %86 : vector<8x32xf32>
    %88 = vector.extract_strided_slice %81 {offsets = [0, 32], sizes = [8, 32], strides = [1, 1]} : vector<8x128xf32> to vector<8x32xf32>
    %89 = arith.negf %88 : vector<8x32xf32>
    %90 = math.exp %89 : vector<8x32xf32>
    %cst_38 = arith.constant 1.000000e+00 : f32
    %91 = vector.broadcast %cst_38 : f32 to vector<8x32xf32>
    %92 = arith.addf %91, %90 : vector<8x32xf32>
    %93 = arith.divf %91, %92 : vector<8x32xf32>
    %94 = vector.extract_strided_slice %81 {offsets = [0, 64], sizes = [8, 32], strides = [1, 1]} : vector<8x128xf32> to vector<8x32xf32>
    %95 = math.tanh %94 : vector<8x32xf32>
    %96 = vector.extract_strided_slice %81 {offsets = [0, 96], sizes = [8, 32], strides = [1, 1]} : vector<8x128xf32> to vector<8x32xf32>
    %97 = arith.negf %96 : vector<8x32xf32>
    %98 = math.exp %97 : vector<8x32xf32>
    %cst_39 = arith.constant 1.000000e+00 : f32
    %99 = vector.broadcast %cst_39 : f32 to vector<8x32xf32>
    %100 = arith.addf %99, %98 : vector<8x32xf32>
    %101 = arith.divf %99, %100 : vector<8x32xf32>
    %102 = arith.mulf %66, %87 : vector<8x32xf32>
    %103 = arith.mulf %93, %95 : vector<8x32xf32>
    %104 = arith.addf %102, %103 : vector<8x32xf32>
    %105 = math.tanh %104 : vector<8x32xf32>
    %106 = arith.mulf %101, %105 : vector<8x32xf32>
    %107 = arith.index_cast %72 : i32 to index
    %c0_40 = arith.constant 0 : index
    %108 = vector.load %arg7[%107, %c0_40] : memref<64x32xf32, #tpu.memory_space<vmem>>, vector<8x32xf32>
    tpu.vector_store %arg7[%107, %c0_40], %106 {strides = array<i32>} : memref<64x32xf32, #tpu.memory_space<vmem>>, vector<8x32xf32>,
    %c2_i32 = arith.constant 2 : i32
    %c8_i32_41 = arith.constant 8 : i32
    %109 = arith.muli %c2_i32, %c8_i32_41 : i32
    %110 = tpu.assume_multiple %109, 8 : i32
    %111 = arith.index_cast %110 : i32 to index
    %c0_42 = arith.constant 0 : index
    %112 = vector.load %arg12[%111, %c0_42] : memref<64x32xf32, #tpu.memory_space<vmem>>, vector<8x32xf32>
    %113 = arith.mulf %112, %106 : vector<8x32xf32>
    %114 = arith.index_cast %110 : i32 to index
    %c0_43 = arith.constant 0 : index
    %115 = vector.load %arg13[%114, %c0_43] : memref<64x128xf32, #tpu.memory_space<vmem>>, vector<8x128xf32>
    %116 = arith.truncf %113 : vector<8x32xf32> to vector<8x32xbf16>
    %c0_44 = arith.constant 0 : index
    %c0_45 = arith.constant 0 : index
    %117 = vector.load %arg6[%c0_44, %c0_45] : memref<32x128xbf16, #tpu.memory_space<vmem>>, vector<32x128xbf16>
    %cst_46 = arith.constant dense<0.000000e+00> : vector<8x128xf32>
    %118 = tpu.matmul %116, %117, %cst_46 {dimension_numbers = #tpu.dot_dimension_numbers<[1], [0], [0], [1], [0, 0, 1, 1], [], []>} : vector<8x32xbf16>, vector<32x128xbf16>, vector<8x128xf32> -> vector<8x128xf32>
    %119 = arith.addf %115, %118 : vector<8x128xf32>
    %120 = vector.extract_strided_slice %119 {offsets = [0, 0], sizes = [8, 32], strides = [1, 1]} : vector<8x128xf32> to vector<8x32xf32>
    %121 = arith.negf %120 : vector<8x32xf32>
    %122 = math.exp %121 : vector<8x32xf32>
    %cst_47 = arith.constant 1.000000e+00 : f32
    %123 = vector.broadcast %cst_47 : f32 to vector<8x32xf32>
    %124 = arith.addf %123, %122 : vector<8x32xf32>
    %125 = arith.divf %123, %124 : vector<8x32xf32>
    %126 = vector.extract_strided_slice %119 {offsets = [0, 32], sizes = [8, 32], strides = [1, 1]} : vector<8x128xf32> to vector<8x32xf32>
    %127 = arith.negf %126 : vector<8x32xf32>
    %128 = math.exp %127 : vector<8x32xf32>
    %cst_48 = arith.constant 1.000000e+00 : f32
    %129 = vector.broadcast %cst_48 : f32 to vector<8x32xf32>
    %130 = arith.addf %129, %128 : vector<8x32xf32>
    %131 = arith.divf %129, %130 : vector<8x32xf32>
    %132 = vector.extract_strided_slice %119 {offsets = [0, 64], sizes = [8, 32], strides = [1, 1]} : vector<8x128xf32> to vector<8x32xf32>
    %133 = math.tanh %132 : vector<8x32xf32>
    %134 = vector.extract_strided_slice %119 {offsets = [0, 96], sizes = [8, 32], strides = [1, 1]} : vector<8x128xf32> to vector<8x32xf32>
    %135 = arith.negf %134 : vector<8x32xf32>
    %136 = math.exp %135 : vector<8x32xf32>
    %cst_49 = arith.constant 1.000000e+00 : f32
    %137 = vector.broadcast %cst_49 : f32 to vector<8x32xf32>
    %138 = arith.addf %137, %136 : vector<8x32xf32>
    %139 = arith.divf %137, %138 : vector<8x32xf32>
    %140 = arith.mulf %104, %125 : vector<8x32xf32>
    %141 = arith.mulf %131, %133 : vector<8x32xf32>
    %142 = arith.addf %140, %141 : vector<8x32xf32>
    %143 = math.tanh %142 : vector<8x32xf32>
    %144 = arith.mulf %139, %143 : vector<8x32xf32>
    %145 = arith.index_cast %110 : i32 to index
    %c0_50 = arith.constant 0 : index
    %146 = vector.load %arg7[%145, %c0_50] : memref<64x32xf32, #tpu.memory_space<vmem>>, vector<8x32xf32>
    tpu.vector_store %arg7[%145, %c0_50], %144 {strides = array<i32>} : memref<64x32xf32, #tpu.memory_space<vmem>>, vector<8x32xf32>,
    %c3_i32 = arith.constant 3 : i32
    %c8_i32_51 = arith.constant 8 : i32
    %147 = arith.muli %c3_i32, %c8_i32_51 : i32
    %148 = tpu.assume_multiple %147, 8 : i32
    %149 = arith.index_cast %148 : i32 to index
    %c0_52 = arith.constant 0 : index
    %150 = vector.load %arg12[%149, %c0_52] : memref<64x32xf32, #tpu.memory_space<vmem>>, vector<8x32xf32>
    %151 = arith.mulf %150, %144 : vector<8x32xf32>
    %152 = arith.index_cast %148 : i32 to index
    %c0_53 = arith.constant 0 : index
    %153 = vector.load %arg13[%152, %c0_53] : memref<64x128xf32, #tpu.memory_space<vmem>>, vector<8x128xf32>
    %154 = arith.truncf %151 : vector<8x32xf32> to vector<8x32xbf16>
    %c0_54 = arith.constant 0 : index
    %c0_55 = arith.constant 0 : index
    %155 = vector.load %arg6[%c0_54, %c0_55] : memref<32x128xbf16, #tpu.memory_space<vmem>>, vector<32x128xbf16>
    %cst_56 = arith.constant dense<0.000000e+00> : vector<8x128xf32>
    %156 = tpu.matmul %154, %155, %cst_56 {dimension_numbers = #tpu.dot_dimension_numbers<[1], [0], [0], [1], [0, 0, 1, 1], [], []>} : vector<8x32xbf16>, vector<32x128xbf16>, vector<8x128xf32> -> vector<8x128xf32>
    %157 = arith.addf %153, %156 : vector<8x128xf32>
    %158 = vector.extract_strided_slice %157 {offsets = [0, 0], sizes = [8, 32], strides = [1, 1]} : vector<8x128xf32> to vector<8x32xf32>
    %159 = arith.negf %158 : vector<8x32xf32>
    %160 = math.exp %159 : vector<8x32xf32>
    %cst_57 = arith.constant 1.000000e+00 : f32
    %161 = vector.broadcast %cst_57 : f32 to vector<8x32xf32>
    %162 = arith.addf %161, %160 : vector<8x32xf32>
    %163 = arith.divf %161, %162 : vector<8x32xf32>
    %164 = vector.extract_strided_slice %157 {offsets = [0, 32], sizes = [8, 32], strides = [1, 1]} : vector<8x128xf32> to vector<8x32xf32>
    %165 = arith.negf %164 : vector<8x32xf32>
    %166 = math.exp %165 : vector<8x32xf32>
    %cst_58 = arith.constant 1.000000e+00 : f32
    %167 = vector.broadcast %cst_58 : f32 to vector<8x32xf32>
    %168 = arith.addf %167, %166 : vector<8x32xf32>
    %169 = arith.divf %167, %168 : vector<8x32xf32>
    %170 = vector.extract_strided_slice %157 {offsets = [0, 64], sizes = [8, 32], strides = [1, 1]} : vector<8x128xf32> to vector<8x32xf32>
    %171 = math.tanh %170 : vector<8x32xf32>
    %172 = vector.extract_strided_slice %157 {offsets = [0, 96], sizes = [8, 32], strides = [1, 1]} : vector<8x128xf32> to vector<8x32xf32>
    %173 = arith.negf %172 : vector<8x32xf32>
    %174 = math.exp %173 : vector<8x32xf32>
    %cst_59 = arith.constant 1.000000e+00 : f32
    %175 = vector.broadcast %cst_59 : f32 to vector<8x32xf32>
    %176 = arith.addf %175, %174 : vector<8x32xf32>
    %177 = arith.divf %175, %176 : vector<8x32xf32>
    %178 = arith.mulf %142, %163 : vector<8x32xf32>
    %179 = arith.mulf %169, %171 : vector<8x32xf32>
    %180 = arith.addf %178, %179 : vector<8x32xf32>
    %181 = math.tanh %180 : vector<8x32xf32>
    %182 = arith.mulf %177, %181 : vector<8x32xf32>
    %183 = arith.index_cast %148 : i32 to index
    %c0_60 = arith.constant 0 : index
    %184 = vector.load %arg7[%183, %c0_60] : memref<64x32xf32, #tpu.memory_space<vmem>>, vector<8x32xf32>
    tpu.vector_store %arg7[%183, %c0_60], %182 {strides = array<i32>} : memref<64x32xf32, #tpu.memory_space<vmem>>, vector<8x32xf32>,
    %c4_i32 = arith.constant 4 : i32
    %c8_i32_61 = arith.constant 8 : i32
    %185 = arith.muli %c4_i32, %c8_i32_61 : i32
    %186 = tpu.assume_multiple %185, 8 : i32
    %187 = arith.index_cast %186 : i32 to index
    %c0_62 = arith.constant 0 : index
    %188 = vector.load %arg12[%187, %c0_62] : memref<64x32xf32, #tpu.memory_space<vmem>>, vector<8x32xf32>
    %189 = arith.mulf %188, %182 : vector<8x32xf32>
    %190 = arith.index_cast %186 : i32 to index
    %c0_63 = arith.constant 0 : index
    %191 = vector.load %arg13[%190, %c0_63] : memref<64x128xf32, #tpu.memory_space<vmem>>, vector<8x128xf32>
    %192 = arith.truncf %189 : vector<8x32xf32> to vector<8x32xbf16>
    %c0_64 = arith.constant 0 : index
    %c0_65 = arith.constant 0 : index
    %193 = vector.load %arg6[%c0_64, %c0_65] : memref<32x128xbf16, #tpu.memory_space<vmem>>, vector<32x128xbf16>
    %cst_66 = arith.constant dense<0.000000e+00> : vector<8x128xf32>
    %194 = tpu.matmul %192, %193, %cst_66 {dimension_numbers = #tpu.dot_dimension_numbers<[1], [0], [0], [1], [0, 0, 1, 1], [], []>} : vector<8x32xbf16>, vector<32x128xbf16>, vector<8x128xf32> -> vector<8x128xf32>
    %195 = arith.addf %191, %194 : vector<8x128xf32>
    %196 = vector.extract_strided_slice %195 {offsets = [0, 0], sizes = [8, 32], strides = [1, 1]} : vector<8x128xf32> to vector<8x32xf32>
    %197 = arith.negf %196 : vector<8x32xf32>
    %198 = math.exp %197 : vector<8x32xf32>
    %cst_67 = arith.constant 1.000000e+00 : f32
    %199 = vector.broadcast %cst_67 : f32 to vector<8x32xf32>
    %200 = arith.addf %199, %198 : vector<8x32xf32>
    %201 = arith.divf %199, %200 : vector<8x32xf32>
    %202 = vector.extract_strided_slice %195 {offsets = [0, 32], sizes = [8, 32], strides = [1, 1]} : vector<8x128xf32> to vector<8x32xf32>
    %203 = arith.negf %202 : vector<8x32xf32>
    %204 = math.exp %203 : vector<8x32xf32>
    %cst_68 = arith.constant 1.000000e+00 : f32
    %205 = vector.broadcast %cst_68 : f32 to vector<8x32xf32>
    %206 = arith.addf %205, %204 : vector<8x32xf32>
    %207 = arith.divf %205, %206 : vector<8x32xf32>
    %208 = vector.extract_strided_slice %195 {offsets = [0, 64], sizes = [8, 32], strides = [1, 1]} : vector<8x128xf32> to vector<8x32xf32>
    %209 = math.tanh %208 : vector<8x32xf32>
    %210 = vector.extract_strided_slice %195 {offsets = [0, 96], sizes = [8, 32], strides = [1, 1]} : vector<8x128xf32> to vector<8x32xf32>
    %211 = arith.negf %210 : vector<8x32xf32>
    %212 = math.exp %211 : vector<8x32xf32>
    %cst_69 = arith.constant 1.000000e+00 : f32
    %213 = vector.broadcast %cst_69 : f32 to vector<8x32xf32>
    %214 = arith.addf %213, %212 : vector<8x32xf32>
    %215 = arith.divf %213, %214 : vector<8x32xf32>
    %216 = arith.mulf %180, %201 : vector<8x32xf32>
    %217 = arith.mulf %207, %209 : vector<8x32xf32>
    %218 = arith.addf %216, %217 : vector<8x32xf32>
    %219 = math.tanh %218 : vector<8x32xf32>
    %220 = arith.mulf %215, %219 : vector<8x32xf32>
    %221 = arith.index_cast %186 : i32 to index
    %c0_70 = arith.constant 0 : index
    %222 = vector.load %arg7[%221, %c0_70] : memref<64x32xf32, #tpu.memory_space<vmem>>, vector<8x32xf32>
    tpu.vector_store %arg7[%221, %c0_70], %220 {strides = array<i32>} : memref<64x32xf32, #tpu.memory_space<vmem>>, vector<8x32xf32>,
    %c5_i32 = arith.constant 5 : i32
    %c8_i32_71 = arith.constant 8 : i32
    %223 = arith.muli %c5_i32, %c8_i32_71 : i32
    %224 = tpu.assume_multiple %223, 8 : i32
    %225 = arith.index_cast %224 : i32 to index
    %c0_72 = arith.constant 0 : index
    %226 = vector.load %arg12[%225, %c0_72] : memref<64x32xf32, #tpu.memory_space<vmem>>, vector<8x32xf32>
    %227 = arith.mulf %226, %220 : vector<8x32xf32>
    %228 = arith.index_cast %224 : i32 to index
    %c0_73 = arith.constant 0 : index
    %229 = vector.load %arg13[%228, %c0_73] : memref<64x128xf32, #tpu.memory_space<vmem>>, vector<8x128xf32>
    %230 = arith.truncf %227 : vector<8x32xf32> to vector<8x32xbf16>
    %c0_74 = arith.constant 0 : index
    %c0_75 = arith.constant 0 : index
    %231 = vector.load %arg6[%c0_74, %c0_75] : memref<32x128xbf16, #tpu.memory_space<vmem>>, vector<32x128xbf16>
    %cst_76 = arith.constant dense<0.000000e+00> : vector<8x128xf32>
    %232 = tpu.matmul %230, %231, %cst_76 {dimension_numbers = #tpu.dot_dimension_numbers<[1], [0], [0], [1], [0, 0, 1, 1], [], []>} : vector<8x32xbf16>, vector<32x128xbf16>, vector<8x128xf32> -> vector<8x128xf32>
    %233 = arith.addf %229, %232 : vector<8x128xf32>
    %234 = vector.extract_strided_slice %233 {offsets = [0, 0], sizes = [8, 32], strides = [1, 1]} : vector<8x128xf32> to vector<8x32xf32>
    %235 = arith.negf %234 : vector<8x32xf32>
    %236 = math.exp %235 : vector<8x32xf32>
    %cst_77 = arith.constant 1.000000e+00 : f32
    %237 = vector.broadcast %cst_77 : f32 to vector<8x32xf32>
    %238 = arith.addf %237, %236 : vector<8x32xf32>
    %239 = arith.divf %237, %238 : vector<8x32xf32>
    %240 = vector.extract_strided_slice %233 {offsets = [0, 32], sizes = [8, 32], strides = [1, 1]} : vector<8x128xf32> to vector<8x32xf32>
    %241 = arith.negf %240 : vector<8x32xf32>
    %242 = math.exp %241 : vector<8x32xf32>
    %cst_78 = arith.constant 1.000000e+00 : f32
    %243 = vector.broadcast %cst_78 : f32 to vector<8x32xf32>
    %244 = arith.addf %243, %242 : vector<8x32xf32>
    %245 = arith.divf %243, %244 : vector<8x32xf32>
    %246 = vector.extract_strided_slice %233 {offsets = [0, 64], sizes = [8, 32], strides = [1, 1]} : vector<8x128xf32> to vector<8x32xf32>
    %247 = math.tanh %246 : vector<8x32xf32>
    %248 = vector.extract_strided_slice %233 {offsets = [0, 96], sizes = [8, 32], strides = [1, 1]} : vector<8x128xf32> to vector<8x32xf32>
    %249 = arith.negf %248 : vector<8x32xf32>
    %250 = math.exp %249 : vector<8x32xf32>
    %cst_79 = arith.constant 1.000000e+00 : f32
    %251 = vector.broadcast %cst_79 : f32 to vector<8x32xf32>
    %252 = arith.addf %251, %250 : vector<8x32xf32>
    %253 = arith.divf %251, %252 : vector<8x32xf32>
    %254 = arith.mulf %218, %239 : vector<8x32xf32>
    %255 = arith.mulf %245, %247 : vector<8x32xf32>
    %256 = arith.addf %254, %255 : vector<8x32xf32>
    %257 = math.tanh %256 : vector<8x32xf32>
    %258 = arith.mulf %253, %257 : vector<8x32xf32>
    %259 = arith.index_cast %224 : i32 to index
    %c0_80 = arith.constant 0 : index
    %260 = vector.load %arg7[%259, %c0_80] : memref<64x32xf32, #tpu.memory_space<vmem>>, vector<8x32xf32>
    tpu.vector_store %arg7[%259, %c0_80], %258 {strides = array<i32>} : memref<64x32xf32, #tpu.memory_space<vmem>>, vector<8x32xf32>,
    %c6_i32 = arith.constant 6 : i32
    %c8_i32_81 = arith.constant 8 : i32
    %261 = arith.muli %c6_i32, %c8_i32_81 : i32
    %262 = tpu.assume_multiple %261, 8 : i32
    %263 = arith.index_cast %262 : i32 to index
    %c0_82 = arith.constant 0 : index
    %264 = vector.load %arg12[%263, %c0_82] : memref<64x32xf32, #tpu.memory_space<vmem>>, vector<8x32xf32>
    %265 = arith.mulf %264, %258 : vector<8x32xf32>
    %266 = arith.index_cast %262 : i32 to index
    %c0_83 = arith.constant 0 : index
    %267 = vector.load %arg13[%266, %c0_83] : memref<64x128xf32, #tpu.memory_space<vmem>>, vector<8x128xf32>
    %268 = arith.truncf %265 : vector<8x32xf32> to vector<8x32xbf16>
    %c0_84 = arith.constant 0 : index
    %c0_85 = arith.constant 0 : index
    %269 = vector.load %arg6[%c0_84, %c0_85] : memref<32x128xbf16, #tpu.memory_space<vmem>>, vector<32x128xbf16>
    %cst_86 = arith.constant dense<0.000000e+00> : vector<8x128xf32>
    %270 = tpu.matmul %268, %269, %cst_86 {dimension_numbers = #tpu.dot_dimension_numbers<[1], [0], [0], [1], [0, 0, 1, 1], [], []>} : vector<8x32xbf16>, vector<32x128xbf16>, vector<8x128xf32> -> vector<8x128xf32>
    %271 = arith.addf %267, %270 : vector<8x128xf32>
    %272 = vector.extract_strided_slice %271 {offsets = [0, 0], sizes = [8, 32], strides = [1, 1]} : vector<8x128xf32> to vector<8x32xf32>
    %273 = arith.negf %272 : vector<8x32xf32>
    %274 = math.exp %273 : vector<8x32xf32>
    %cst_87 = arith.constant 1.000000e+00 : f32
    %275 = vector.broadcast %cst_87 : f32 to vector<8x32xf32>
    %276 = arith.addf %275, %274 : vector<8x32xf32>
    %277 = arith.divf %275, %276 : vector<8x32xf32>
    %278 = vector.extract_strided_slice %271 {offsets = [0, 32], sizes = [8, 32], strides = [1, 1]} : vector<8x128xf32> to vector<8x32xf32>
    %279 = arith.negf %278 : vector<8x32xf32>
    %280 = math.exp %279 : vector<8x32xf32>
    %cst_88 = arith.constant 1.000000e+00 : f32
    %281 = vector.broadcast %cst_88 : f32 to vector<8x32xf32>
    %282 = arith.addf %281, %280 : vector<8x32xf32>
    %283 = arith.divf %281, %282 : vector<8x32xf32>
    %284 = vector.extract_strided_slice %271 {offsets = [0, 64], sizes = [8, 32], strides = [1, 1]} : vector<8x128xf32> to vector<8x32xf32>
    %285 = math.tanh %284 : vector<8x32xf32>
    %286 = vector.extract_strided_slice %271 {offsets = [0, 96], sizes = [8, 32], strides = [1, 1]} : vector<8x128xf32> to vector<8x32xf32>
    %287 = arith.negf %286 : vector<8x32xf32>
    %288 = math.exp %287 : vector<8x32xf32>
    %cst_89 = arith.constant 1.000000e+00 : f32
    %289 = vector.broadcast %cst_89 : f32 to vector<8x32xf32>
    %290 = arith.addf %289, %288 : vector<8x32xf32>
    %291 = arith.divf %289, %290 : vector<8x32xf32>
    %292 = arith.mulf %256, %277 : vector<8x32xf32>
    %293 = arith.mulf %283, %285 : vector<8x32xf32>
    %294 = arith.addf %292, %293 : vector<8x32xf32>
    %295 = math.tanh %294 : vector<8x32xf32>
    %296 = arith.mulf %291, %295 : vector<8x32xf32>
    %297 = arith.index_cast %262 : i32 to index
    %c0_90 = arith.constant 0 : index
    %298 = vector.load %arg7[%297, %c0_90] : memref<64x32xf32, #tpu.memory_space<vmem>>, vector<8x32xf32>
    tpu.vector_store %arg7[%297, %c0_90], %296 {strides = array<i32>} : memref<64x32xf32, #tpu.memory_space<vmem>>, vector<8x32xf32>,
    %c7_i32 = arith.constant 7 : i32
    %c8_i32_91 = arith.constant 8 : i32
    %299 = arith.muli %c7_i32, %c8_i32_91 : i32
    %300 = tpu.assume_multiple %299, 8 : i32
    %301 = arith.index_cast %300 : i32 to index
    %c0_92 = arith.constant 0 : index
    %302 = vector.load %arg12[%301, %c0_92] : memref<64x32xf32, #tpu.memory_space<vmem>>, vector<8x32xf32>
    %303 = arith.mulf %302, %296 : vector<8x32xf32>
    %304 = arith.index_cast %300 : i32 to index
    %c0_93 = arith.constant 0 : index
    %305 = vector.load %arg13[%304, %c0_93] : memref<64x128xf32, #tpu.memory_space<vmem>>, vector<8x128xf32>
    %306 = arith.truncf %303 : vector<8x32xf32> to vector<8x32xbf16>
    %c0_94 = arith.constant 0 : index
    %c0_95 = arith.constant 0 : index
    %307 = vector.load %arg6[%c0_94, %c0_95] : memref<32x128xbf16, #tpu.memory_space<vmem>>, vector<32x128xbf16>
    %cst_96 = arith.constant dense<0.000000e+00> : vector<8x128xf32>
    %308 = tpu.matmul %306, %307, %cst_96 {dimension_numbers = #tpu.dot_dimension_numbers<[1], [0], [0], [1], [0, 0, 1, 1], [], []>} : vector<8x32xbf16>, vector<32x128xbf16>, vector<8x128xf32> -> vector<8x128xf32>
    %309 = arith.addf %305, %308 : vector<8x128xf32>
    %310 = vector.extract_strided_slice %309 {offsets = [0, 0], sizes = [8, 32], strides = [1, 1]} : vector<8x128xf32> to vector<8x32xf32>
    %311 = arith.negf %310 : vector<8x32xf32>
    %312 = math.exp %311 : vector<8x32xf32>
    %cst_97 = arith.constant 1.000000e+00 : f32
    %313 = vector.broadcast %cst_97 : f32 to vector<8x32xf32>
    %314 = arith.addf %313, %312 : vector<8x32xf32>
    %315 = arith.divf %313, %314 : vector<8x32xf32>
    %316 = vector.extract_strided_slice %309 {offsets = [0, 32], sizes = [8, 32], strides = [1, 1]} : vector<8x128xf32> to vector<8x32xf32>
    %317 = arith.negf %316 : vector<8x32xf32>
    %318 = math.exp %317 : vector<8x32xf32>
    %cst_98 = arith.constant 1.000000e+00 : f32
    %319 = vector.broadcast %cst_98 : f32 to vector<8x32xf32>
    %320 = arith.addf %319, %318 : vector<8x32xf32>
    %321 = arith.divf %319, %320 : vector<8x32xf32>
    %322 = vector.extract_strided_slice %309 {offsets = [0, 64], sizes = [8, 32], strides = [1, 1]} : vector<8x128xf32> to vector<8x32xf32>
    %323 = math.tanh %322 : vector<8x32xf32>
    %324 = vector.extract_strided_slice %309 {offsets = [0, 96], sizes = [8, 32], strides = [1, 1]} : vector<8x128xf32> to vector<8x32xf32>
    %325 = arith.negf %324 : vector<8x32xf32>
    %326 = math.exp %325 : vector<8x32xf32>
    %cst_99 = arith.constant 1.000000e+00 : f32
    %327 = vector.broadcast %cst_99 : f32 to vector<8x32xf32>
    %328 = arith.addf %327, %326 : vector<8x32xf32>
    %329 = arith.divf %327, %328 : vector<8x32xf32>
    %330 = arith.mulf %294, %315 : vector<8x32xf32>
    %331 = arith.mulf %321, %323 : vector<8x32xf32>
    %332 = arith.addf %330, %331 : vector<8x32xf32>
    %333 = math.tanh %332 : vector<8x32xf32>
    %334 = arith.mulf %329, %333 : vector<8x32xf32>
    %335 = arith.index_cast %300 : i32 to index
    %c0_100 = arith.constant 0 : index
    %336 = vector.load %arg7[%335, %c0_100] : memref<64x32xf32, #tpu.memory_space<vmem>>, vector<8x32xf32>
    tpu.vector_store %arg7[%335, %c0_100], %334 {strides = array<i32>} : memref<64x32xf32, #tpu.memory_space<vmem>>, vector<8x32xf32>,
    %c8_i32_101 = arith.constant 8 : i32
    %c0_102 = arith.constant 0 : index
    %c0_103 = arith.constant 0 : index
    %337 = vector.load %arg10[%c0_102, %c0_103] : memref<8x32xf32, #tpu.memory_space<vmem>>, vector<8x32xf32>
    tpu.vector_store %arg10[%c0_102, %c0_103], %334 {strides = array<i32>} : memref<8x32xf32, #tpu.memory_space<vmem>>, vector<8x32xf32>,
    %c0_104 = arith.constant 0 : index
    %c0_105 = arith.constant 0 : index
    %338 = vector.load %arg11[%c0_104, %c0_105] : memref<8x32xf32, #tpu.memory_space<vmem>>, vector<8x32xf32>
    tpu.vector_store %arg11[%c0_104, %c0_105], %332 {strides = array<i32>} : memref<8x32xf32, #tpu.memory_space<vmem>>, vector<8x32xf32>,
    %c0_i32_106 = arith.constant 0 : i32
    %339 = arith.cmpi eq, %arg0, %c0_i32_106 : i32
    %340 = arith.extui %339 : i1 to i32
    %c0_i32_107 = arith.constant 0 : i32
    %341 = arith.cmpi ne, %340, %c0_i32_107 : i32
    scf.if %341 {
      %c0_108 = arith.constant 0 : index
      %c0_109 = arith.constant 0 : index
      %342 = vector.load %arg8[%c0_108, %c0_109] : memref<8x32xf32, #tpu.memory_space<vmem>>, vector<8x32xf32>
      tpu.vector_store %arg8[%c0_108, %c0_109], %334 {strides = array<i32>} : memref<8x32xf32, #tpu.memory_space<vmem>>, vector<8x32xf32>,
      %c0_110 = arith.constant 0 : index
      %c0_111 = arith.constant 0 : index
      %343 = vector.load %arg9[%c0_110, %c0_111] : memref<8x32xf32, #tpu.memory_space<vmem>>, vector<8x32xf32>
      tpu.vector_store %arg9[%c0_110, %c0_111], %332 {strides = array<i32>} : memref<8x32xf32, #tpu.memory_space<vmem>>, vector<8x32xf32>,
    } else {
    }
    return
  }
  func.func @transform_0(%arg0: i32) -> (i32, i32) {
    %c0_i32 = arith.constant 0 : i32
    %c0_i32_0 = arith.constant 0 : i32
    return %arg0, %c0_i32 : i32, i32
  }
  func.func @transform_1(%arg0: i32) -> (i32, i32) {
    %c0_i32 = arith.constant 0 : i32
    %c0_i32_0 = arith.constant 0 : i32
    return %arg0, %c0_i32 : i32, i32
  }
  func.func @transform_2(%arg0: i32) -> (i32, i32) {
    %c0_i32 = arith.constant 0 : i32
    %c0_i32_0 = arith.constant 0 : i32
    %c0_i32_1 = arith.constant 0 : i32
    return %c0_i32, %c0_i32_0 : i32, i32
  }
  func.func @transform_3(%arg0: i32) -> (i32, i32) {
    %c0_i32 = arith.constant 0 : i32
    %c0_i32_0 = arith.constant 0 : i32
    %c0_i32_1 = arith.constant 0 : i32
    return %c0_i32, %c0_i32_0 : i32, i32
  }
  func.func @transform_4(%arg0: i32) -> (i32, i32) {
    %c0_i32 = arith.constant 0 : i32
    %c0_i32_0 = arith.constant 0 : i32
    %c0_i32_1 = arith.constant 0 : i32
    return %c0_i32, %c0_i32_0 : i32, i32
  }
  func.func @transform_5(%arg0: i32) -> (i32, i32) {
    %c0_i32 = arith.constant 0 : i32
    %c0_i32_0 = arith.constant 0 : i32
    %c0_i32_1 = arith.constant 0 : i32
    return %c0_i32, %c0_i32_0 : i32, i32
  }
  func.func @transform_6(%arg0: i32) -> (i32, i32) {
    %c0_i32 = arith.constant 0 : i32
    %c0_i32_0 = arith.constant 0 : i32
    return %arg0, %c0_i32 : i32, i32
  }
  func.func @transform_7(%arg0: i32) -> (i32, i32) {
    %c0_i32 = arith.constant 0 : i32
    %c0_i32_0 = arith.constant 0 : i32
    %c0_i32_1 = arith.constant 0 : i32
    return %c0_i32, %c0_i32_0 : i32, i32
  }
  func.func @transform_8(%arg0: i32) -> (i32, i32) {
    %c0_i32 = arith.constant 0 : i32
    %c0_i32_0 = arith.constant 0 : i32
    %c0_i32_1 = arith.constant 0 : i32
    return %c0_i32, %c0_i32_0 : i32, i32
  }
}

module attributes {stable_mosaic.version = 11 : i64} {
  func.func @kernel(%arg0: i32, %arg1: memref<64x16xbf16, #tpu.memory_space<vmem>>, %arg2: memref<64x8xbf16, #tpu.memory_space<vmem>>, %arg3: memref<16x384xbf16, #tpu.memory_space<vmem>>, %arg4: memref<1x384xf32, #tpu.memory_space<vmem>>, %arg5: memref<8x128xbf16, #tpu.memory_space<vmem>>, %arg6: memref<32x128xbf16, #tpu.memory_space<vmem>>, %arg7: memref<64x32xf32, #tpu.memory_space<vmem>>, %arg8: memref<8x32xf32, #tpu.memory_space<vmem>>, %arg9: memref<8x32xf32, #tpu.memory_space<vmem>>, %arg10: memref<8x32xf32, #tpu.memory_space<vmem>>, %arg11: memref<8x32xf32, #tpu.memory_space<vmem>>, %arg12: memref<64x32xf32, #tpu.memory_space<vmem>>, %arg13: memref<64x128xf32, #tpu.memory_space<vmem>>) attributes {dimension_semantics = [#tpu.dimension_semantics<arbitrary>], iteration_bounds = array<i64: 1>, scalar_prefetch = 0 : i64, scratch_operands = 4 : i64, tpu.core_type = #tpu.core_type<tc>, window_params = [{transform_indices = @transform_0, window_bounds = array<i64: 64, 16>}, {transform_indices = @transform_1, window_bounds = array<i64: 64, 8>}, {pipeline_mode = #tpu.pipeline_mode<synchronous>, transform_indices = @transform_2, window_bounds = array<i64: 16, 384>}, {pipeline_mode = #tpu.pipeline_mode<synchronous>, transform_indices = @transform_3, window_bounds = array<i64: 1, 384>}, {pipeline_mode = #tpu.pipeline_mode<synchronous>, transform_indices = @transform_4, window_bounds = array<i64: 8, 128>}, {pipeline_mode = #tpu.pipeline_mode<synchronous>, transform_indices = @transform_5, window_bounds = array<i64: 32, 128>}, {transform_indices = @transform_6, window_bounds = array<i64: 64, 32>}, {pipeline_mode = #tpu.pipeline_mode<synchronous>, transform_indices = @transform_7, window_bounds = array<i64: 8, 32>}, {pipeline_mode = #tpu.pipeline_mode<synchronous>, transform_indices = @transform_8, window_bounds = array<i64: 8, 32>}]} {
    %c0_i32 = arith.constant 0 : i32
    %0 = arith.cmpi eq, %arg0, %c0_i32 : i32
    %1 = arith.extui %0 : i1 to i32
    %c0_i32_0 = arith.constant 0 : i32
    %2 = arith.cmpi ne, %1, %c0_i32_0 : i32
    scf.if %2 {
      %cst_108 = arith.constant 0.000000e+00 : f32
      %342 = vector.broadcast %cst_108 : f32 to vector<8x32xf32>
      %c0_109 = arith.constant 0 : index
      %c0_110 = arith.constant 0 : index
      %343 = vector.load %arg10[%c0_109, %c0_110] : memref<8x32xf32, #tpu.memory_space<vmem>>, vector<8x32xf32>
      tpu.vector_store %arg10[%c0_109, %c0_110], %342 {strides = array<i32>} : memref<8x32xf32, #tpu.memory_space<vmem>>, vector<8x32xf32>,
      %cst_111 = arith.constant 0.000000e+00 : f32
      %344 = vector.broadcast %cst_111 : f32 to vector<8x32xf32>
      %c0_112 = arith.constant 0 : index
      %c0_113 = arith.constant 0 : index
      %345 = vector.load %arg11[%c0_112, %c0_113] : memref<8x32xf32, #tpu.memory_space<vmem>>, vector<8x32xf32>
      tpu.vector_store %arg11[%c0_112, %c0_113], %344 {strides = array<i32>} : memref<8x32xf32, #tpu.memory_space<vmem>>, vector<8x32xf32>,
    } else {
    }
    %c0 = arith.constant 0 : index
    %c0_1 = arith.constant 0 : index
    %3 = vector.load %arg1[%c0, %c0_1] : memref<64x16xbf16, #tpu.memory_space<vmem>>, vector<64x16xbf16>
    %c0_2 = arith.constant 0 : index
    %c0_3 = arith.constant 0 : index
    %4 = vector.load %arg3[%c0_2, %c0_3] : memref<16x384xbf16, #tpu.memory_space<vmem>>, vector<16x384xbf16>
    %cst = arith.constant dense<0.000000e+00> : vector<64x384xf32>
    %5 = tpu.matmul %3, %4, %cst {dimension_numbers = #tpu.dot_dimension_numbers<[1], [0], [0], [1], [0, 0, 1, 1], [], []>} : vector<64x16xbf16>, vector<16x384xbf16>, vector<64x384xf32> -> vector<64x384xf32>
    %c0_4 = arith.constant 0 : index
    %c0_5 = arith.constant 0 : index
    %6 = vector.load %arg4[%c0_4, %c0_5] : memref<1x384xf32, #tpu.memory_space<vmem>>, vector<1x384xf32>
    %7 = vector.broadcast %6 : vector<1x384xf32> to vector<64x384xf32>
    %8 = arith.addf %5, %7 : vector<64x384xf32>
    %9 = vector.extract_strided_slice %8 {offsets = [0, 0], sizes = [64, 32], strides = [1, 1]} : vector<64x384xf32> to vector<64x32xf32>
    %10 = arith.negf %9 : vector<64x32xf32>
    %11 = math.exp %10 : vector<64x32xf32>
    %cst_6 = arith.constant 1.000000e+00 : f32
    %12 = vector.broadcast %cst_6 : f32 to vector<64x32xf32>
    %13 = arith.addf %12, %11 : vector<64x32xf32>
    %14 = arith.divf %12, %13 : vector<64x32xf32>
    %c0_7 = arith.constant 0 : index
    %c0_8 = arith.constant 0 : index
    %15 = vector.load %arg12[%c0_7, %c0_8] : memref<64x32xf32, #tpu.memory_space<vmem>>, vector<64x32xf32>
    tpu.vector_store %arg12[%c0_7, %c0_8], %14 {strides = array<i32>} : memref<64x32xf32, #tpu.memory_space<vmem>>, vector<64x32xf32>,
    %16 = vector.extract_strided_slice %8 {offsets = [0, 128], sizes = [64, 8], strides = [1, 1]} : vector<64x384xf32> to vector<64x8xf32>
    %17 = arith.negf %16 : vector<64x8xf32>
    %18 = math.exp %17 : vector<64x8xf32>
    %cst_9 = arith.constant 1.000000e+00 : f32
    %19 = vector.broadcast %cst_9 : f32 to vector<64x8xf32>
    %20 = arith.addf %19, %18 : vector<64x8xf32>
    %21 = arith.divf %19, %20 : vector<64x8xf32>
    %c0_10 = arith.constant 0 : index
    %c0_11 = arith.constant 0 : index
    %22 = vector.load %arg2[%c0_10, %c0_11] : memref<64x8xbf16, #tpu.memory_space<vmem>>, vector<64x8xbf16>
    %23 = arith.extf %22 : vector<64x8xbf16> to vector<64x8xf32>
    %24 = arith.mulf %21, %23 : vector<64x8xf32>
    %25 = vector.extract_strided_slice %8 {offsets = [0, 256], sizes = [64, 128], strides = [1, 1]} : vector<64x384xf32> to vector<64x128xf32>
    %26 = arith.truncf %24 : vector<64x8xf32> to vector<64x8xbf16>
    %c0_12 = arith.constant 0 : index
    %c0_13 = arith.constant 0 : index
    %27 = vector.load %arg5[%c0_12, %c0_13] : memref<8x128xbf16, #tpu.memory_space<vmem>>, vector<8x128xbf16>
    %cst_14 = arith.constant dense<0.000000e+00> : vector<64x128xf32>
    %28 = tpu.matmul %26, %27, %cst_14 {dimension_numbers = #tpu.dot_dimension_numbers<[1], [0], [0], [1], [0, 0, 1, 1], [], []>} : vector<64x8xbf16>, vector<8x128xbf16>, vector<64x128xf32> -> vector<64x128xf32>
    %29 = arith.addf %25, %28 : vector<64x128xf32>
    %c0_15 = arith.constant 0 : index
    %c0_16 = arith.constant 0 : index
    %30 = vector.load %arg13[%c0_15, %c0_16] : memref<64x128xf32, #tpu.memory_space<vmem>>, vector<64x128xf32>
    tpu.vector_store %arg13[%c0_15, %c0_16], %29 {strides = array<i32>} : memref<64x128xf32, #tpu.memory_space<vmem>>, vector<64x128xf32>,
    %c0_17 = arith.constant 0 : index
    %c0_18 = arith.constant 0 : index
    %31 = vector.load %arg10[%c0_17, %c0_18] : memref<8x32xf32, #tpu.memory_space<vmem>>, vector<8x32xf32>
    %c0_19 = arith.constant 0 : index
    %c0_20 = arith.constant 0 : index
    %32 = vector.load %arg11[%c0_19, %c0_20] : memref<8x32xf32, #tpu.memory_space<vmem>>, vector<8x32xf32>
    %c0_i32_21 = arith.constant 0 : i32
    %c8_i32 = arith.constant 8 : i32
    %33 = arith.muli %c0_i32_21, %c8_i32 : i32
    %34 = tpu.assume_multiple %33, 8 : i32
    %35 = arith.index_cast %34 : i32 to index
    %c0_22 = arith.constant 0 : index
    %36 = vector.load %arg12[%35, %c0_22] : memref<64x32xf32, #tpu.memory_space<vmem>>, vector<8x32xf32>
    %37 = arith.mulf %36, %31 : vector<8x32xf32>
    %38 = arith.index_cast %34 : i32 to index
    %c0_23 = arith.constant 0 : index
    %39 = vector.load %arg13[%38, %c0_23] : memref<64x128xf32, #tpu.memory_space<vmem>>, vector<8x128xf32>
    %40 = arith.truncf %37 : vector<8x32xf32> to vector<8x32xbf16>
    %c0_24 = arith.constant 0 : index
    %c0_25 = arith.constant 0 : index
    %41 = vector.load %arg6[%c0_24, %c0_25] : memref<32x128xbf16, #tpu.memory_space<vmem>>, vector<32x128xbf16>
    %cst_26 = arith.constant dense<0.000000e+00> : vector<8x128xf32>
    %42 = tpu.matmul %40, %41, %cst_26 {dimension_numbers = #tpu.dot_dimension_numbers<[1], [0], [0], [1], [0, 0, 1, 1], [], []>} : vector<8x32xbf16>, vector<32x128xbf16>, vector<8x128xf32> -> vector<8x128xf32>
    %43 = arith.addf %39, %42 : vector<8x128xf32>
    %44 = vector.extract_strided_slice %43 {offsets = [0, 0], sizes = [8, 32], strides = [1, 1]} : vector<8x128xf32> to vector<8x32xf32>
    %45 = arith.negf %44 : vector<8x32xf32>
    %46 = math.exp %45 : vector<8x32xf32>
    %cst_27 = arith.constant 1.000000e+00 : f32
    %47 = vector.broadcast %cst_27 : f32 to vector<8x32xf32>
    %48 = arith.addf %47, %46 : vector<8x32xf32>
    %49 = arith.divf %47, %48 : vector<8x32xf32>
    %50 = vector.extract_strided_slice %43 {offsets = [0, 32], sizes = [8, 32], strides = [1, 1]} : vector<8x128xf32> to vector<8x32xf32>
    %51 = arith.negf %50 : vector<8x32xf32>
    %52 = math.exp %51 : vector<8x32xf32>
    %cst_28 = arith.constant 1.000000e+00 : f32
    %53 = vector.broadcast %cst_28 : f32 to vector<8x32xf32>
    %54 = arith.addf %53, %52 : vector<8x32xf32>
    %55 = arith.divf %53, %54 : vector<8x32xf32>
    %56 = vector.extract_strided_slice %43 {offsets = [0, 64], sizes = [8, 32], strides = [1, 1]} : vector<8x128xf32> to vector<8x32xf32>
    %57 = math.tanh %56 : vector<8x32xf32>
    %58 = vector.extract_strided_slice %43 {offsets = [0, 96], sizes = [8, 32], strides = [1, 1]} : vector<8x128xf32> to vector<8x32xf32>
    %59 = arith.negf %58 : vector<8x32xf32>
    %60 = math.exp %59 : vector<8x32xf32>
    %cst_29 = arith.constant 1.000000e+00 : f32
    %61 = vector.broadcast %cst_29 : f32 to vector<8x32xf32>
    %62 = arith.addf %61, %60 : vector<8x32xf32>
    %63 = arith.divf %61, %62 : vector<8x32xf32>
    %64 = arith.mulf %32, %49 : vector<8x32xf32>
    %65 = arith.mulf %55, %57 : vector<8x32xf32>
    %66 = arith.addf %64, %65 : vector<8x32xf32>
    %67 = math.tanh %66 : vector<8x32xf32>
    %68 = arith.mulf %63, %67 : vector<8x32xf32>
    %69 = arith.index_cast %34 : i32 to index
    %c0_30 = arith.constant 0 : index
    %70 = vector.load %arg7[%69, %c0_30] : memref<64x32xf32, #tpu.memory_space<vmem>>, vector<8x32xf32>
    tpu.vector_store %arg7[%69, %c0_30], %68 {strides = array<i32>} : memref<64x32xf32, #tpu.memory_space<vmem>>, vector<8x32xf32>,
    %c1_i32 = arith.constant 1 : i32
    %c8_i32_31 = arith.constant 8 : i32
    %71 = arith.muli %c1_i32, %c8_i32_31 : i32
    %72 = tpu.assume_multiple %71, 8 : i32
    %73 = arith.index_cast %72 : i32 to index
    %c0_32 = arith.constant 0 : index
    %74 = vector.load %arg12[%73, %c0_32] : memref<64x32xf32, #tpu.memory_space<vmem>>, vector<8x32xf32>
    %75 = arith.mulf %74, %68 : vector<8x32xf32>
    %76 = arith.index_cast %72 : i32 to index
    %c0_33 = arith.constant 0 : index
    %77 = vector.load %arg13[%76, %c0_33] : memref<64x128xf32, #tpu.memory_space<vmem>>, vector<8x128xf32>
    %78 = arith.truncf %75 : vector<8x32xf32> to vector<8x32xbf16>
    %c0_34 = arith.constant 0 : index
    %c0_35 = arith.constant 0 : index
    %79 = vector.load %arg6[%c0_34, %c0_35] : memref<32x128xbf16, #tpu.memory_space<vmem>>, vector<32x128xbf16>
    %cst_36 = arith.constant dense<0.000000e+00> : vector<8x128xf32>
    %80 = tpu.matmul %78, %79, %cst_36 {dimension_numbers = #tpu.dot_dimension_numbers<[1], [0], [0], [1], [0, 0, 1, 1], [], []>} : vector<8x32xbf16>, vector<32x128xbf16>, vector<8x128xf32> -> vector<8x128xf32>
    %81 = arith.addf %77, %80 : vector<8x128xf32>
    %82 = vector.extract_strided_slice %81 {offsets = [0, 0], sizes = [8, 32], strides = [1, 1]} : vector<8x128xf32> to vector<8x32xf32>
    %83 = arith.negf %82 : vector<8x32xf32>
    %84 = math.exp %83 : vector<8x32xf32>
    %cst_37 = arith.constant 1.000000e+00 : f32
    %85 = vector.broadcast %cst_37 : f32 to vector<8x32xf32>
    %86 = arith.addf %85, %84 : vector<8x32xf32>
    %87 = arith.divf %85, %86 : vector<8x32xf32>
    %88 = vector.extract_strided_slice %81 {offsets = [0, 32], sizes = [8, 32], strides = [1, 1]} : vector<8x128xf32> to vector<8x32xf32>
    %89 = arith.negf %88 : vector<8x32xf32>
    %90 = math.exp %89 : vector<8x32xf32>
    %cst_38 = arith.constant 1.000000e+00 : f32
    %91 = vector.broadcast %cst_38 : f32 to vector<8x32xf32>
    %92 = arith.addf %91, %90 : vector<8x32xf32>
    %93 = arith.divf %91, %92 : vector<8x32xf32>
    %94 = vector.extract_strided_slice %81 {offsets = [0, 64], sizes = [8, 32], strides = [1, 1]} : vector<8x128xf32> to vector<8x32xf32>
    %95 = math.tanh %94 : vector<8x32xf32>
    %96 = vector.extract_strided_slice %81 {offsets = [0, 96], sizes = [8, 32], strides = [1, 1]} : vector<8x128xf32> to vector<8x32xf32>
    %97 = arith.negf %96 : vector<8x32xf32>
    %98 = math.exp %97 : vector<8x32xf32>
    %cst_39 = arith.constant 1.000000e+00 : f32
    %99 = vector.broadcast %cst_39 : f32 to vector<8x32xf32>
    %100 = arith.addf %99, %98 : vector<8x32xf32>
    %101 = arith.divf %99, %100 : vector<8x32xf32>
    %102 = arith.mulf %66, %87 : vector<8x32xf32>
    %103 = arith.mulf %93, %95 : vector<8x32xf32>
    %104 = arith.addf %102, %103 : vector<8x32xf32>
    %105 = math.tanh %104 : vector<8x32xf32>
    %106 = arith.mulf %101, %105 : vector<8x32xf32>
    %107 = arith.index_cast %72 : i32 to index
    %c0_40 = arith.constant 0 : index
    %108 = vector.load %arg7[%107, %c0_40] : memref<64x32xf32, #tpu.memory_space<vmem>>, vector<8x32xf32>
    tpu.vector_store %arg7[%107, %c0_40], %106 {strides = array<i32>} : memref<64x32xf32, #tpu.memory_space<vmem>>, vector<8x32xf32>,
    %c2_i32 = arith.constant 2 : i32
    %c8_i32_41 = arith.constant 8 : i32
    %109 = arith.muli %c2_i32, %c8_i32_41 : i32
    %110 = tpu.assume_multiple %109, 8 : i32
    %111 = arith.index_cast %110 : i32 to index
    %c0_42 = arith.constant 0 : index
    %112 = vector.load %arg12[%111, %c0_42] : memref<64x32xf32, #tpu.memory_space<vmem>>, vector<8x32xf32>
    %113 = arith.mulf %112, %106 : vector<8x32xf32>
    %114 = arith.index_cast %110 : i32 to index
    %c0_43 = arith.constant 0 : index
    %115 = vector.load %arg13[%114, %c0_43] : memref<64x128xf32, #tpu.memory_space<vmem>>, vector<8x128xf32>
    %116 = arith.truncf %113 : vector<8x32xf32> to vector<8x32xbf16>
    %c0_44 = arith.constant 0 : index
    %c0_45 = arith.constant 0 : index
    %117 = vector.load %arg6[%c0_44, %c0_45] : memref<32x128xbf16, #tpu.memory_space<vmem>>, vector<32x128xbf16>
    %cst_46 = arith.constant dense<0.000000e+00> : vector<8x128xf32>
    %118 = tpu.matmul %116, %117, %cst_46 {dimension_numbers = #tpu.dot_dimension_numbers<[1], [0], [0], [1], [0, 0, 1, 1], [], []>} : vector<8x32xbf16>, vector<32x128xbf16>, vector<8x128xf32> -> vector<8x128xf32>
    %119 = arith.addf %115, %118 : vector<8x128xf32>
    %120 = vector.extract_strided_slice %119 {offsets = [0, 0], sizes = [8, 32], strides = [1, 1]} : vector<8x128xf32> to vector<8x32xf32>
    %121 = arith.negf %120 : vector<8x32xf32>
    %122 = math.exp %121 : vector<8x32xf32>
    %cst_47 = arith.constant 1.000000e+00 : f32
    %123 = vector.broadcast %cst_47 : f32 to vector<8x32xf32>
    %124 = arith.addf %123, %122 : vector<8x32xf32>
    %125 = arith.divf %123, %124 : vector<8x32xf32>
    %126 = vector.extract_strided_slice %119 {offsets = [0, 32], sizes = [8, 32], strides = [1, 1]} : vector<8x128xf32> to vector<8x32xf32>
    %127 = arith.negf %126 : vector<8x32xf32>
    %128 = math.exp %127 : vector<8x32xf32>
    %cst_48 = arith.constant 1.000000e+00 : f32
    %129 = vector.broadcast %cst_48 : f32 to vector<8x32xf32>
    %130 = arith.addf %129, %128 : vector<8x32xf32>
    %131 = arith.divf %129, %130 : vector<8x32xf32>
    %132 = vector.extract_strided_slice %119 {offsets = [0, 64], sizes = [8, 32], strides = [1, 1]} : vector<8x128xf32> to vector<8x32xf32>
    %133 = math.tanh %132 : vector<8x32xf32>
    %134 = vector.extract_strided_slice %119 {offsets = [0, 96], sizes = [8, 32], strides = [1, 1]} : vector<8x128xf32> to vector<8x32xf32>
    %135 = arith.negf %134 : vector<8x32xf32>
    %136 = math.exp %135 : vector<8x32xf32>
    %cst_49 = arith.constant 1.000000e+00 : f32
    %137 = vector.broadcast %cst_49 : f32 to vector<8x32xf32>
    %138 = arith.addf %137, %136 : vector<8x32xf32>
    %139 = arith.divf %137, %138 : vector<8x32xf32>
    %140 = arith.mulf %104, %125 : vector<8x32xf32>
    %141 = arith.mulf %131, %133 : vector<8x32xf32>
    %142 = arith.addf %140, %141 : vector<8x32xf32>
    %143 = math.tanh %142 : vector<8x32xf32>
    %144 = arith.mulf %139, %143 : vector<8x32xf32>
    %145 = arith.index_cast %110 : i32 to index
    %c0_50 = arith.constant 0 : index
    %146 = vector.load %arg7[%145, %c0_50] : memref<64x32xf32, #tpu.memory_space<vmem>>, vector<8x32xf32>
    tpu.vector_store %arg7[%145, %c0_50], %144 {strides = array<i32>} : memref<64x32xf32, #tpu.memory_space<vmem>>, vector<8x32xf32>,
    %c3_i32 = arith.constant 3 : i32
    %c8_i32_51 = arith.constant 8 : i32
    %147 = arith.muli %c3_i32, %c8_i32_51 : i32
    %148 = tpu.assume_multiple %147, 8 : i32
    %149 = arith.index_cast %148 : i32 to index
    %c0_52 = arith.constant 0 : index
    %150 = vector.load %arg12[%149, %c0_52] : memref<64x32xf32, #tpu.memory_space<vmem>>, vector<8x32xf32>
    %151 = arith.mulf %150, %144 : vector<8x32xf32>
    %152 = arith.index_cast %148 : i32 to index
    %c0_53 = arith.constant 0 : index
    %153 = vector.load %arg13[%152, %c0_53] : memref<64x128xf32, #tpu.memory_space<vmem>>, vector<8x128xf32>
    %154 = arith.truncf %151 : vector<8x32xf32> to vector<8x32xbf16>
    %c0_54 = arith.constant 0 : index
    %c0_55 = arith.constant 0 : index
    %155 = vector.load %arg6[%c0_54, %c0_55] : memref<32x128xbf16, #tpu.memory_space<vmem>>, vector<32x128xbf16>
    %cst_56 = arith.constant dense<0.000000e+00> : vector<8x128xf32>
    %156 = tpu.matmul %154, %155, %cst_56 {dimension_numbers = #tpu.dot_dimension_numbers<[1], [0], [0], [1], [0, 0, 1, 1], [], []>} : vector<8x32xbf16>, vector<32x128xbf16>, vector<8x128xf32> -> vector<8x128xf32>
    %157 = arith.addf %153, %156 : vector<8x128xf32>
    %158 = vector.extract_strided_slice %157 {offsets = [0, 0], sizes = [8, 32], strides = [1, 1]} : vector<8x128xf32> to vector<8x32xf32>
    %159 = arith.negf %158 : vector<8x32xf32>
    %160 = math.exp %159 : vector<8x32xf32>
    %cst_57 = arith.constant 1.000000e+00 : f32
    %161 = vector.broadcast %cst_57 : f32 to vector<8x32xf32>
    %162 = arith.addf %161, %160 : vector<8x32xf32>
    %163 = arith.divf %161, %162 : vector<8x32xf32>
    %164 = vector.extract_strided_slice %157 {offsets = [0, 32], sizes = [8, 32], strides = [1, 1]} : vector<8x128xf32> to vector<8x32xf32>
    %165 = arith.negf %164 : vector<8x32xf32>
    %166 = math.exp %165 : vector<8x32xf32>
    %cst_58 = arith.constant 1.000000e+00 : f32
    %167 = vector.broadcast %cst_58 : f32 to vector<8x32xf32>
    %168 = arith.addf %167, %166 : vector<8x32xf32>
    %169 = arith.divf %167, %168 : vector<8x32xf32>
    %170 = vector.extract_strided_slice %157 {offsets = [0, 64], sizes = [8, 32], strides = [1, 1]} : vector<8x128xf32> to vector<8x32xf32>
    %171 = math.tanh %170 : vector<8x32xf32>
    %172 = vector.extract_strided_slice %157 {offsets = [0, 96], sizes = [8, 32], strides = [1, 1]} : vector<8x128xf32> to vector<8x32xf32>
    %173 = arith.negf %172 : vector<8x32xf32>
    %174 = math.exp %173 : vector<8x32xf32>
    %cst_59 = arith.constant 1.000000e+00 : f32
    %175 = vector.broadcast %cst_59 : f32 to vector<8x32xf32>
    %176 = arith.addf %175, %174 : vector<8x32xf32>
    %177 = arith.divf %175, %176 : vector<8x32xf32>
    %178 = arith.mulf %142, %163 : vector<8x32xf32>
    %179 = arith.mulf %169, %171 : vector<8x32xf32>
    %180 = arith.addf %178, %179 : vector<8x32xf32>
    %181 = math.tanh %180 : vector<8x32xf32>
    %182 = arith.mulf %177, %181 : vector<8x32xf32>
    %183 = arith.index_cast %148 : i32 to index
    %c0_60 = arith.constant 0 : index
    %184 = vector.load %arg7[%183, %c0_60] : memref<64x32xf32, #tpu.memory_space<vmem>>, vector<8x32xf32>
    tpu.vector_store %arg7[%183, %c0_60], %182 {strides = array<i32>} : memref<64x32xf32, #tpu.memory_space<vmem>>, vector<8x32xf32>,
    %c4_i32 = arith.constant 4 : i32
    %c8_i32_61 = arith.constant 8 : i32
    %185 = arith.muli %c4_i32, %c8_i32_61 : i32
    %186 = tpu.assume_multiple %185, 8 : i32
    %187 = arith.index_cast %186 : i32 to index
    %c0_62 = arith.constant 0 : index
    %188 = vector.load %arg12[%187, %c0_62] : memref<64x32xf32, #tpu.memory_space<vmem>>, vector<8x32xf32>
    %189 = arith.mulf %188, %182 : vector<8x32xf32>
    %190 = arith.index_cast %186 : i32 to index
    %c0_63 = arith.constant 0 : index
    %191 = vector.load %arg13[%190, %c0_63] : memref<64x128xf32, #tpu.memory_space<vmem>>, vector<8x128xf32>
    %192 = arith.truncf %189 : vector<8x32xf32> to vector<8x32xbf16>
    %c0_64 = arith.constant 0 : index
    %c0_65 = arith.constant 0 : index
    %193 = vector.load %arg6[%c0_64, %c0_65] : memref<32x128xbf16, #tpu.memory_space<vmem>>, vector<32x128xbf16>
    %cst_66 = arith.constant dense<0.000000e+00> : vector<8x128xf32>
    %194 = tpu.matmul %192, %193, %cst_66 {dimension_numbers = #tpu.dot_dimension_numbers<[1], [0], [0], [1], [0, 0, 1, 1], [], []>} : vector<8x32xbf16>, vector<32x128xbf16>, vector<8x128xf32> -> vector<8x128xf32>
    %195 = arith.addf %191, %194 : vector<8x128xf32>
    %196 = vector.extract_strided_slice %195 {offsets = [0, 0], sizes = [8, 32], strides = [1, 1]} : vector<8x128xf32> to vector<8x32xf32>
    %197 = arith.negf %196 : vector<8x32xf32>
    %198 = math.exp %197 : vector<8x32xf32>
    %cst_67 = arith.constant 1.000000e+00 : f32
    %199 = vector.broadcast %cst_67 : f32 to vector<8x32xf32>
    %200 = arith.addf %199, %198 : vector<8x32xf32>
    %201 = arith.divf %199, %200 : vector<8x32xf32>
    %202 = vector.extract_strided_slice %195 {offsets = [0, 32], sizes = [8, 32], strides = [1, 1]} : vector<8x128xf32> to vector<8x32xf32>
    %203 = arith.negf %202 : vector<8x32xf32>
    %204 = math.exp %203 : vector<8x32xf32>
    %cst_68 = arith.constant 1.000000e+00 : f32
    %205 = vector.broadcast %cst_68 : f32 to vector<8x32xf32>
    %206 = arith.addf %205, %204 : vector<8x32xf32>
    %207 = arith.divf %205, %206 : vector<8x32xf32>
    %208 = vector.extract_strided_slice %195 {offsets = [0, 64], sizes = [8, 32], strides = [1, 1]} : vector<8x128xf32> to vector<8x32xf32>
    %209 = math.tanh %208 : vector<8x32xf32>
    %210 = vector.extract_strided_slice %195 {offsets = [0, 96], sizes = [8, 32], strides = [1, 1]} : vector<8x128xf32> to vector<8x32xf32>
    %211 = arith.negf %210 : vector<8x32xf32>
    %212 = math.exp %211 : vector<8x32xf32>
    %cst_69 = arith.constant 1.000000e+00 : f32
    %213 = vector.broadcast %cst_69 : f32 to vector<8x32xf32>
    %214 = arith.addf %213, %212 : vector<8x32xf32>
    %215 = arith.divf %213, %214 : vector<8x32xf32>
    %216 = arith.mulf %180, %201 : vector<8x32xf32>
    %217 = arith.mulf %207, %209 : vector<8x32xf32>
    %218 = arith.addf %216, %217 : vector<8x32xf32>
    %219 = math.tanh %218 : vector<8x32xf32>
    %220 = arith.mulf %215, %219 : vector<8x32xf32>
    %221 = arith.index_cast %186 : i32 to index
    %c0_70 = arith.constant 0 : index
    %222 = vector.load %arg7[%221, %c0_70] : memref<64x32xf32, #tpu.memory_space<vmem>>, vector<8x32xf32>
    tpu.vector_store %arg7[%221, %c0_70], %220 {strides = array<i32>} : memref<64x32xf32, #tpu.memory_space<vmem>>, vector<8x32xf32>,
    %c5_i32 = arith.constant 5 : i32
    %c8_i32_71 = arith.constant 8 : i32
    %223 = arith.muli %c5_i32, %c8_i32_71 : i32
    %224 = tpu.assume_multiple %223, 8 : i32
    %225 = arith.index_cast %224 : i32 to index
    %c0_72 = arith.constant 0 : index
    %226 = vector.load %arg12[%225, %c0_72] : memref<64x32xf32, #tpu.memory_space<vmem>>, vector<8x32xf32>
    %227 = arith.mulf %226, %220 : vector<8x32xf32>
    %228 = arith.index_cast %224 : i32 to index
    %c0_73 = arith.constant 0 : index
    %229 = vector.load %arg13[%228, %c0_73] : memref<64x128xf32, #tpu.memory_space<vmem>>, vector<8x128xf32>
    %230 = arith.truncf %227 : vector<8x32xf32> to vector<8x32xbf16>
    %c0_74 = arith.constant 0 : index
    %c0_75 = arith.constant 0 : index
    %231 = vector.load %arg6[%c0_74, %c0_75] : memref<32x128xbf16, #tpu.memory_space<vmem>>, vector<32x128xbf16>
    %cst_76 = arith.constant dense<0.000000e+00> : vector<8x128xf32>
    %232 = tpu.matmul %230, %231, %cst_76 {dimension_numbers = #tpu.dot_dimension_numbers<[1], [0], [0], [1], [0, 0, 1, 1], [], []>} : vector<8x32xbf16>, vector<32x128xbf16>, vector<8x128xf32> -> vector<8x128xf32>
    %233 = arith.addf %229, %232 : vector<8x128xf32>
    %234 = vector.extract_strided_slice %233 {offsets = [0, 0], sizes = [8, 32], strides = [1, 1]} : vector<8x128xf32> to vector<8x32xf32>
    %235 = arith.negf %234 : vector<8x32xf32>
    %236 = math.exp %235 : vector<8x32xf32>
    %cst_77 = arith.constant 1.000000e+00 : f32
    %237 = vector.broadcast %cst_77 : f32 to vector<8x32xf32>
    %238 = arith.addf %237, %236 : vector<8x32xf32>
    %239 = arith.divf %237, %238 : vector<8x32xf32>
    %240 = vector.extract_strided_slice %233 {offsets = [0, 32], sizes = [8, 32], strides = [1, 1]} : vector<8x128xf32> to vector<8x32xf32>
    %241 = arith.negf %240 : vector<8x32xf32>
    %242 = math.exp %241 : vector<8x32xf32>
    %cst_78 = arith.constant 1.000000e+00 : f32
    %243 = vector.broadcast %cst_78 : f32 to vector<8x32xf32>
    %244 = arith.addf %243, %242 : vector<8x32xf32>
    %245 = arith.divf %243, %244 : vector<8x32xf32>
    %246 = vector.extract_strided_slice %233 {offsets = [0, 64], sizes = [8, 32], strides = [1, 1]} : vector<8x128xf32> to vector<8x32xf32>
    %247 = math.tanh %246 : vector<8x32xf32>
    %248 = vector.extract_strided_slice %233 {offsets = [0, 96], sizes = [8, 32], strides = [1, 1]} : vector<8x128xf32> to vector<8x32xf32>
    %249 = arith.negf %248 : vector<8x32xf32>
    %250 = math.exp %249 : vector<8x32xf32>
    %cst_79 = arith.constant 1.000000e+00 : f32
    %251 = vector.broadcast %cst_79 : f32 to vector<8x32xf32>
    %252 = arith.addf %251, %250 : vector<8x32xf32>
    %253 = arith.divf %251, %252 : vector<8x32xf32>
    %254 = arith.mulf %218, %239 : vector<8x32xf32>
    %255 = arith.mulf %245, %247 : vector<8x32xf32>
    %256 = arith.addf %254, %255 : vector<8x32xf32>
    %257 = math.tanh %256 : vector<8x32xf32>
    %258 = arith.mulf %253, %257 : vector<8x32xf32>
    %259 = arith.index_cast %224 : i32 to index
    %c0_80 = arith.constant 0 : index
    %260 = vector.load %arg7[%259, %c0_80] : memref<64x32xf32, #tpu.memory_space<vmem>>, vector<8x32xf32>
    tpu.vector_store %arg7[%259, %c0_80], %258 {strides = array<i32>} : memref<64x32xf32, #tpu.memory_space<vmem>>, vector<8x32xf32>,
    %c6_i32 = arith.constant 6 : i32
    %c8_i32_81 = arith.constant 8 : i32
    %261 = arith.muli %c6_i32, %c8_i32_81 : i32
    %262 = tpu.assume_multiple %261, 8 : i32
    %263 = arith.index_cast %262 : i32 to index
    %c0_82 = arith.constant 0 : index
    %264 = vector.load %arg12[%263, %c0_82] : memref<64x32xf32, #tpu.memory_space<vmem>>, vector<8x32xf32>
    %265 = arith.mulf %264, %258 : vector<8x32xf32>
    %266 = arith.index_cast %262 : i32 to index
    %c0_83 = arith.constant 0 : index
    %267 = vector.load %arg13[%266, %c0_83] : memref<64x128xf32, #tpu.memory_space<vmem>>, vector<8x128xf32>
    %268 = arith.truncf %265 : vector<8x32xf32> to vector<8x32xbf16>
    %c0_84 = arith.constant 0 : index
    %c0_85 = arith.constant 0 : index
    %269 = vector.load %arg6[%c0_84, %c0_85] : memref<32x128xbf16, #tpu.memory_space<vmem>>, vector<32x128xbf16>
    %cst_86 = arith.constant dense<0.000000e+00> : vector<8x128xf32>
    %270 = tpu.matmul %268, %269, %cst_86 {dimension_numbers = #tpu.dot_dimension_numbers<[1], [0], [0], [1], [0, 0, 1, 1], [], []>} : vector<8x32xbf16>, vector<32x128xbf16>, vector<8x128xf32> -> vector<8x128xf32>
    %271 = arith.addf %267, %270 : vector<8x128xf32>
    %272 = vector.extract_strided_slice %271 {offsets = [0, 0], sizes = [8, 32], strides = [1, 1]} : vector<8x128xf32> to vector<8x32xf32>
    %273 = arith.negf %272 : vector<8x32xf32>
    %274 = math.exp %273 : vector<8x32xf32>
    %cst_87 = arith.constant 1.000000e+00 : f32
    %275 = vector.broadcast %cst_87 : f32 to vector<8x32xf32>
    %276 = arith.addf %275, %274 : vector<8x32xf32>
    %277 = arith.divf %275, %276 : vector<8x32xf32>
    %278 = vector.extract_strided_slice %271 {offsets = [0, 32], sizes = [8, 32], strides = [1, 1]} : vector<8x128xf32> to vector<8x32xf32>
    %279 = arith.negf %278 : vector<8x32xf32>
    %280 = math.exp %279 : vector<8x32xf32>
    %cst_88 = arith.constant 1.000000e+00 : f32
    %281 = vector.broadcast %cst_88 : f32 to vector<8x32xf32>
    %282 = arith.addf %281, %280 : vector<8x32xf32>
    %283 = arith.divf %281, %282 : vector<8x32xf32>
    %284 = vector.extract_strided_slice %271 {offsets = [0, 64], sizes = [8, 32], strides = [1, 1]} : vector<8x128xf32> to vector<8x32xf32>
    %285 = math.tanh %284 : vector<8x32xf32>
    %286 = vector.extract_strided_slice %271 {offsets = [0, 96], sizes = [8, 32], strides = [1, 1]} : vector<8x128xf32> to vector<8x32xf32>
    %287 = arith.negf %286 : vector<8x32xf32>
    %288 = math.exp %287 : vector<8x32xf32>
    %cst_89 = arith.constant 1.000000e+00 : f32
    %289 = vector.broadcast %cst_89 : f32 to vector<8x32xf32>
    %290 = arith.addf %289, %288 : vector<8x32xf32>
    %291 = arith.divf %289, %290 : vector<8x32xf32>
    %292 = arith.mulf %256, %277 : vector<8x32xf32>
    %293 = arith.mulf %283, %285 : vector<8x32xf32>
    %294 = arith.addf %292, %293 : vector<8x32xf32>
    %295 = math.tanh %294 : vector<8x32xf32>
    %296 = arith.mulf %291, %295 : vector<8x32xf32>
    %297 = arith.index_cast %262 : i32 to index
    %c0_90 = arith.constant 0 : index
    %298 = vector.load %arg7[%297, %c0_90] : memref<64x32xf32, #tpu.memory_space<vmem>>, vector<8x32xf32>
    tpu.vector_store %arg7[%297, %c0_90], %296 {strides = array<i32>} : memref<64x32xf32, #tpu.memory_space<vmem>>, vector<8x32xf32>,
    %c7_i32 = arith.constant 7 : i32
    %c8_i32_91 = arith.constant 8 : i32
    %299 = arith.muli %c7_i32, %c8_i32_91 : i32
    %300 = tpu.assume_multiple %299, 8 : i32
    %301 = arith.index_cast %300 : i32 to index
    %c0_92 = arith.constant 0 : index
    %302 = vector.load %arg12[%301, %c0_92] : memref<64x32xf32, #tpu.memory_space<vmem>>, vector<8x32xf32>
    %303 = arith.mulf %302, %296 : vector<8x32xf32>
    %304 = arith.index_cast %300 : i32 to index
    %c0_93 = arith.constant 0 : index
    %305 = vector.load %arg13[%304, %c0_93] : memref<64x128xf32, #tpu.memory_space<vmem>>, vector<8x128xf32>
    %306 = arith.truncf %303 : vector<8x32xf32> to vector<8x32xbf16>
    %c0_94 = arith.constant 0 : index
    %c0_95 = arith.constant 0 : index
    %307 = vector.load %arg6[%c0_94, %c0_95] : memref<32x128xbf16, #tpu.memory_space<vmem>>, vector<32x128xbf16>
    %cst_96 = arith.constant dense<0.000000e+00> : vector<8x128xf32>
    %308 = tpu.matmul %306, %307, %cst_96 {dimension_numbers = #tpu.dot_dimension_numbers<[1], [0], [0], [1], [0, 0, 1, 1], [], []>} : vector<8x32xbf16>, vector<32x128xbf16>, vector<8x128xf32> -> vector<8x128xf32>
    %309 = arith.addf %305, %308 : vector<8x128xf32>
    %310 = vector.extract_strided_slice %309 {offsets = [0, 0], sizes = [8, 32], strides = [1, 1]} : vector<8x128xf32> to vector<8x32xf32>
    %311 = arith.negf %310 : vector<8x32xf32>
    %312 = math.exp %311 : vector<8x32xf32>
    %cst_97 = arith.constant 1.000000e+00 : f32
    %313 = vector.broadcast %cst_97 : f32 to vector<8x32xf32>
    %314 = arith.addf %313, %312 : vector<8x32xf32>
    %315 = arith.divf %313, %314 : vector<8x32xf32>
    %316 = vector.extract_strided_slice %309 {offsets = [0, 32], sizes = [8, 32], strides = [1, 1]} : vector<8x128xf32> to vector<8x32xf32>
    %317 = arith.negf %316 : vector<8x32xf32>
    %318 = math.exp %317 : vector<8x32xf32>
    %cst_98 = arith.constant 1.000000e+00 : f32
    %319 = vector.broadcast %cst_98 : f32 to vector<8x32xf32>
    %320 = arith.addf %319, %318 : vector<8x32xf32>
    %321 = arith.divf %319, %320 : vector<8x32xf32>
    %322 = vector.extract_strided_slice %309 {offsets = [0, 64], sizes = [8, 32], strides = [1, 1]} : vector<8x128xf32> to vector<8x32xf32>
    %323 = math.tanh %322 : vector<8x32xf32>
    %324 = vector.extract_strided_slice %309 {offsets = [0, 96], sizes = [8, 32], strides = [1, 1]} : vector<8x128xf32> to vector<8x32xf32>
    %325 = arith.negf %324 : vector<8x32xf32>
    %326 = math.exp %325 : vector<8x32xf32>
    %cst_99 = arith.constant 1.000000e+00 : f32
    %327 = vector.broadcast %cst_99 : f32 to vector<8x32xf32>
    %328 = arith.addf %327, %326 : vector<8x32xf32>
    %329 = arith.divf %327, %328 : vector<8x32xf32>
    %330 = arith.mulf %294, %315 : vector<8x32xf32>
    %331 = arith.mulf %321, %323 : vector<8x32xf32>
    %332 = arith.addf %330, %331 : vector<8x32xf32>
    %333 = math.tanh %332 : vector<8x32xf32>
    %334 = arith.mulf %329, %333 : vector<8x32xf32>
    %335 = arith.index_cast %300 : i32 to index
    %c0_100 = arith.constant 0 : index
    %336 = vector.load %arg7[%335, %c0_100] : memref<64x32xf32, #tpu.memory_space<vmem>>, vector<8x32xf32>
    tpu.vector_store %arg7[%335, %c0_100], %334 {strides = array<i32>} : memref<64x32xf32, #tpu.memory_space<vmem>>, vector<8x32xf32>,
    %c8_i32_101 = arith.constant 8 : i32
    %c0_102 = arith.constant 0 : index
    %c0_103 = arith.constant 0 : index
    %337 = vector.load %arg10[%c0_102, %c0_103] : memref<8x32xf32, #tpu.memory_space<vmem>>, vector<8x32xf32>
    tpu.vector_store %arg10[%c0_102, %c0_103], %334 {strides = array<i32>} : memref<8x32xf32, #tpu.memory_space<vmem>>, vector<8x32xf32>,
    %c0_104 = arith.constant 0 : index
    %c0_105 = arith.constant 0 : index
    %338 = vector.load %arg11[%c0_104, %c0_105] : memref<8x32xf32, #tpu.memory_space<vmem>>, vector<8x32xf32>
    tpu.vector_store %arg11[%c0_104, %c0_105], %332 {strides = array<i32>} : memref<8x32xf32, #tpu.memory_space<vmem>>, vector<8x32xf32>,
    %c0_i32_106 = arith.constant 0 : i32
    %339 = arith.cmpi eq, %arg0, %c0_i32_106 : i32
    %340 = arith.extui %339 : i1 to i32
    %c0_i32_107 = arith.constant 0 : i32
    %341 = arith.cmpi ne, %340, %c0_i32_107 : i32
    scf.if %341 {
      %c0_108 = arith.constant 0 : index
      %c0_109 = arith.constant 0 : index
      %342 = vector.load %arg8[%c0_108, %c0_109] : memref<8x32xf32, #tpu.memory_space<vmem>>, vector<8x32xf32>
      tpu.vector_store %arg8[%c0_108, %c0_109], %334 {strides = array<i32>} : memref<8x32xf32, #tpu.memory_space<vmem>>, vector<8x32xf32>,
      %c0_110 = arith.constant 0 : index
      %c0_111 = arith.constant 0 : index
      %343 = vector.load %arg9[%c0_110, %c0_111] : memref<8x32xf32, #tpu.memory_space<vmem>>, vector<8x32xf32>
      tpu.vector_store %arg9[%c0_110, %c0_111], %332 {strides = array<i32>} : memref<8x32xf32, #tpu.memory_space<vmem>>, vector<8x32xf32>,
    } else {
    }
    return
  }
  func.func @transform_0(%arg0: i32) -> (i32, i32) {
    %c0_i32 = arith.constant 0 : i32
    %c0_i32_0 = arith.constant 0 : i32
    return %arg0, %c0_i32 : i32, i32
  }
  func.func @transform_1(%arg0: i32) -> (i32, i32) {
    %c0_i32 = arith.constant 0 : i32
    %c0_i32_0 = arith.constant 0 : i32
    return %arg0, %c0_i32 : i32, i32
  }
  func.func @transform_2(%arg0: i32) -> (i32, i32) {
    %c0_i32 = arith.constant 0 : i32
    %c0_i32_0 = arith.constant 0 : i32
    %c0_i32_1 = arith.constant 0 : i32
    return %c0_i32, %c0_i32_0 : i32, i32
  }
  func.func @transform_3(%arg0: i32) -> (i32, i32) {
    %c0_i32 = arith.constant 0 : i32
    %c0_i32_0 = arith.constant 0 : i32
    %c0_i32_1 = arith.constant 0 : i32
    return %c0_i32, %c0_i32_0 : i32, i32
  }
  func.func @transform_4(%arg0: i32) -> (i32, i32) {
    %c0_i32 = arith.constant 0 : i32
    %c0_i32_0 = arith.constant 0 : i32
    %c0_i32_1 = arith.constant 0 : i32
    return %c0_i32, %c0_i32_0 : i32, i32
  }
  func.func @transform_5(%arg0: i32) -> (i32, i32) {
    %c0_i32 = arith.constant 0 : i32
    %c0_i32_0 = arith.constant 0 : i32
    %c0_i32_1 = arith.constant 0 : i32
    return %c0_i32, %c0_i32_0 : i32, i32
  }
  func.func @transform_6(%arg0: i32) -> (i32, i32) {
    %c0_i32 = arith.constant 0 : i32
    %c0_i32_0 = arith.constant 0 : i32
    return %arg0, %c0_i32 : i32, i32
  }
  func.func @transform_7(%arg0: i32) -> (i32, i32) {
    %c0_i32 = arith.constant 0 : i32
    %c0_i32_0 = arith.constant 0 : i32
    %c0_i32_1 = arith.constant 0 : i32
    return %c0_i32, %c0_i32_0 : i32, i32
  }
  func.func @transform_8(%arg0: i32) -> (i32, i32) {
    %c0_i32 = arith.constant 0 : i32
    %c0_i32_0 = arith.constant 0 : i32
    %c0_i32_1 = arith.constant 0 : i32
    return %c0_i32, %c0_i32_0 : i32, i32
  }
}

</mosaic_0001>

<bundles_post_ra>
// kernel: tpu_custom_call.1
= control target key start
LH: loop header
LB: loop body
LE: loop exit
PB: predicated region body
PF: predicated region fallthrough
CT: control target
= control target key end

     0   :  { %14 = vsyncpa [#allocation7], 0  ;;  %v1705_v2 = vmov 0   ;;  %vm101_vm0 = vcmask 130048   ;;  %s2046_s0 = inlined_call_operand.vmem [shape: bf16[64,16], index: 0, kind: input, shape index: {}]   ;;  %s2047_s1 = inlined_call_operand.vmem [shape: bf16[64,8], index: 1, kind: input, shape index: {}]   ;;  %s2048_s2 = inlined_call_operand.vmem [shape: bf16[16,384], index: 2, kind: input, shape index: {}]   ;;  %s2049_s3 = inlined_call_operand.vmem [shape: f32[1,384], index: 3, kind: input, shape index: {}]   ;;  %s2050_s4 = inlined_call_operand.vmem [shape: bf16[8,128], index: 4, kind: input, shape index: {}]   ;;  %s2051_s5 = inlined_call_operand.vmem [shape: bf16[32,128], index: 5, kind: input, shape index: {}]   ;;  %s2052_s6 = inlined_call_operand.vmem [shape: f32[64,32], index: 6, kind: output, shape index: {0}]   ;;  %s2053_s7 = inlined_call_operand.hbm [shape: f32[8,32], index: 7, kind: output, shape index: {1}]   ;;  %s2054_s8 = inlined_call_operand.hbm [shape: f32[8,32], index: 8, kind: output, shape index: {2}]  }
   0x1   :  { %v1509_v0 = vld [vmem:[%s2048_s2 + $0x4] ss:$12 sps:$4 sm:$0xff]   ;;  %v1511_v1 = vld [vmem:[%s2048_s2] ss:$12 sps:$4 sm:$0xff]   ;;  %146 = vmatprep.mubr.bf16.mxu0 %v1705_v2 }
   0x2   :  { %128 = vmatprep.subr.bf16.mxu0 %v1509_v0  ;;  %v1512_v3 = vld [vmem:[%s2046_s0] sm:$0xff]   ;;  %v1513_v4 = vld [vmem:[%s2046_s0 + $0x8] sm:$0xff]  }
   0x3   :  { %129 = vmatpush1.bf16.msra.mxu0 %v1511_v1  ;;  %1419 = vmatprep.mubr.msk.bf16.mxu1 %vm101_vm0, %v1512_v3 }
   0x6   :  { %1297 = vmatmul.mubr.msk.bf16.vlgmr.msra.gmra.mxu0 %vm101_vm0, %v1512_v3 }
   0x7   :  { %156 = vmatprep.mubr.bf16.mxu0 %v1705_v2 }
   0xe   :  { %1298 = vmatmul.mubr.msk.bf16.gmra.mxu0 %vm101_vm0, %v1513_v4 }
   0xf   :  { %166 = vmatprep.mubr.bf16.mxu0 %v1705_v2 }
  0x10   :  { %15 = vsyncpa [#allocation9], 0  ;;  %v1514_v5 = vld [vmem:[%s2046_s0 + $0x10] sm:$0xff]   ;;  %v1515_v6 = vld [vmem:[%s2046_s0 + $0x18] sm:$0xff]   ;;  %vm33_vm1 = vcmask 261120   ;;  %v1706_v8 = vmov 0.0   ;;  %v50_v13 = vlaneseq }
  0x11   :  { %v1517_v7 = vld [vmem:[%s2048_s2 + $0x8] ss:$12 sps:$4 sm:$0xff]   ;;  %1437 = vmatprep.subr.bf16.mxu0 %v1706_v8  ;;  %34 = vst.msk [vmem:[#allocation2] sm:$0xff] %vm33_vm1, %v1706_v8  ;;  %35 = vst.msk [vmem:[#allocation3] sm:$0xff] %vm33_vm1, %v1706_v8  ;;  %v1518_v10 = vld [vmem:[%s2051_s5] sm:$0xff]   ;;  %vm1707_vm2 = vmmov 0  }
  0x12   :  { %1417 = vmatprep.subr.bf16.mxu1 %v1517_v7  ;;  %v1516_v9 = vld [vmem:[%s2051_s5 + $0x8] sm:$0xff]   ;;  %v385_v11 = vld [vmem:[%s2050_s4] sm:$0xf]  ;;  %vm399_vm3 = vcmask 1043456   ;;  %v1805_v14 = vshrl.u32 %v50_v13, 7  ;;  %vm386_vm4 = vcmask 64512  }
  0x13   :  { %1418 = vmatpush3.bf16.msra.mxu1 %v1517_v7  ;;  %1438 = vmatpush3.bf16.msra.mxu0 %v1516_v9  ;;  %v401_v12 = vsel %vm399_vm3, %v385_v11, 0  ;;  %v1811_v16 = vld [vmem:[%s2049_s3] sm:$0x7]  ;;  %s1709_s13 = smov 32  }
  0x14   :  { %1439 = vmatprep.subr.bf16.mxu0 %v1706_v8  ;;  %1501 = vmatprep.subr.msk.bf16.mxu1 %vm399_vm3, %v385_v11  ;;  %v52_v15 = vsub.s32 0, %v1805_v14  ;;  %v56_v17 = vsub.s32 1, %v1805_v14 }
  0x16   :  { %1299 = vmatmul.mubr.msk.bf16.gmra.mxu0 %vm101_vm0, %v1514_v5  ;;  %1420 = vmatmul.mubr.msk.bf16.vlgmr.msra.gmra.mxu1 %vm101_vm0, %v1513_v4  ;;  %v1815_v18 = vrot.slane %v1811_v16, %v52_v15  ;;  %v1818_v19 = vrot.slane %v1811_v16, %v56_v17 }
  0x17   :  { %176 = vmatprep.mubr.bf16.mxu0 %v1705_v2  ;;  %1423 = vmatprep.mubr.msk.bf16.mxu1 %vm101_vm0, %v1514_v5 }
  0x18   :  { %1440 = vmatpush3.bf16.msra.mxu0 %v1518_v10  ;;  %1428 = vmatpush3.bf16.msra.mxu1 %v401_v12 }
  0x19   :  { %1453 = vmatprep.subr.bf16.mxu0 %v1706_v8  ;;  %1445 = vmatprep.subr.bf16.mxu1 %v1706_v8 }
  0x1e   :  { %1300 = vmatmul.mubr.msk.bf16.gmra.mxu0 %vm101_vm0, %v1515_v6  ;;  %1424 = vmatmul.mubr.msk.bf16.gmra.mxu1 %vm101_vm0, %v1515_v6 }
  0x1f   :  { %1441 = vmatprep.mubr.msk.bf16.mxu0 %vm1707_vm2, %v1706_v8 }
  0xc6   :  { %v148_v20 = vpop.f32.mrf.mxu0 }
  0xc7   :  { %v149_v21 = vadd.f32 %v148_v20, %v1815_v18 }
  0xc8   :  { %v150_v22 = vpop.f32.mrf.mxu0 }
  0xc9   :  { %v1305_v23 = vmul.f32 -1.442695, %v149_v21  ;;  %v151_v24 = vadd.f32 %v150_v22, %v1818_v19 }
  0xca   :  { %v152_v25 = vpop.f32.mrf.mxu0 }
  0xcb   :  { %1533 = vpow2.f32 %v1305_v23  ;;  %v1313_v26 = vmul.f32 -1.442695, %v151_v24  ;;  %v153_v27 = vadd.f32 %v152_v25, %v1815_v18 }
  0xcc   :  { %v154_v28 = vpop.f32.mrf.mxu0 }
  0xcd   :  { %1535 = vpow2.f32 %v1313_v26  ;;  %v1306_v29 = vmul.f32 -1.442695, %v153_v27  ;;  %v155_v30 = vadd.f32 %v154_v28, %v1818_v19  ;;  %v1365_v26 = vld [vmem:[%s2047_s1] sm:$0xff]  }
  0xce   :  { %v158_v31 = vpop.f32.mrf.mxu0 }
  0xcf   :  { %1537 = vpow2.f32 %v1306_v29  ;;  %v1314_v32 = vmul.f32 -1.442695, %v155_v30  ;;  %v159_v33 = vadd.f32 %v158_v31, %v1815_v18  ;;  %v1367_v30 = vunpack.c.h.bf16 %v1365_v26 }
  0xd0   :  { %v160_v34 = vpop.f32.mrf.mxu0 }
  0xd1   :  { %1539 = vpow2.f32 %v1314_v32  ;;  %v1307_v35 = vmul.f32 -1.442695, %v159_v33  ;;  %v161_v36 = vadd.f32 %v160_v34, %v1818_v19 }
  0xd2   :  { %v162_v37 = vpop.f32.mrf.mxu0 }
  0xd3   :  { %1541 = vpow2.f32 %v1307_v35  ;;  %v1315_v38 = vmul.f32 -1.442695, %v161_v36  ;;  %v163_v39 = vadd.f32 %v162_v37, %v1815_v18  ;;  %v484_v36 = vld [vmem:[#allocation2] sm:$0xff] }
  0xd4   :  { %v164_v40 = vpop.f32.mrf.mxu0 }
  0xd5   :  { %1543 = vpow2.f32 %v1315_v38  ;;  %v1308_v41 = vmul.f32 -1.442695, %v163_v39  ;;  %v165_v42 = vadd.f32 %v164_v40, %v1818_v19 }
  0xd6   :  { %v168_v43 = vpop.f32.mrf.mxu0 }
  0xd7   :  { %1545 = vpow2.f32 %v1308_v41  ;;  %v1316_v44 = vmul.f32 -1.442695, %v165_v42  ;;  %v169_v45 = vadd.f32 %v168_v43, %v1815_v18  ;;  %v1380_v43 = vld [vmem:[%s2047_s1 + $0x8] sm:$0xff]  }
  0xd8   :  { %v1534_v46 = vpop.eup %1533  ;;  %v170_v47 = vpop.f32.mrf.mxu0 }
  0xd9   :  { %v276_v48 = vadd.f32 1.0, %v1534_v46  ;;  %1547 = vpow2.f32 %v1316_v44  ;;  %v1309_v49 = vmul.f32 -1.442695, %v169_v45  ;;  %v171_v50 = vadd.f32 %v170_v47, %v1818_v19 }
  0xda   :  { %v1536_v51 = vpop.eup %1535  ;;  %v172_v52 = vpop.f32.mrf.mxu0 }
  0xdb   :  { %1549 = vrcp.f32 %v276_v48  ;;  %v333_v53 = vadd.f32 1.0, %v1536_v51  ;;  %v1317_v54 = vmul.f32 -1.442695, %v171_v50  ;;  %v173_v55 = vadd.f32 %v172_v52, %v1815_v18 }
  0xdc   :  { %v1538_v56 = vpop.eup %1537  ;;  %1551 = vpow2.f32 %v1309_v49  ;;  %v174_v57 = vpop.f32.mrf.mxu0  ;;  %v1370_v51 = vunpack.c.l.bf16 %v1380_v43  ;;  %v1371_v52 = vunpack.c.h.bf16 %v1380_v43 }
  0xdd   :  { %1553 = vrcp.f32 %v333_v53  ;;  %v277_v58 = vadd.f32 1.0, %v1538_v56  ;;  %v1310_v59 = vmul.f32 -1.442695, %v173_v55  ;;  %v175_v60 = vadd.f32 %v174_v57, %v1818_v19 }
  0xde   :  { %v1540_v61 = vpop.eup %1539  ;;  %1555 = vpow2.f32 %v1317_v54  ;;  %v178_v62 = vpop.f32.mrf.mxu0 }
  0xdf   :  { %1557 = vrcp.f32 %v277_v58  ;;  %v334_v63 = vadd.f32 1.0, %v1540_v61  ;;  %v1318_v0 = vmul.f32 -1.442695, %v175_v60  ;;  %v179_v1 = vadd.f32 %v178_v62, %v1815_v18  ;;  %v1381_v61 = vld [vmem:[%s2047_s1 + $0x10] sm:$0xff]  }
  0xe0   :  { %v1542_v2 = vpop.eup %1541  ;;  %1559 = vpow2.f32 %v1310_v59  ;;  %v180_v3 = vpop.f32.mrf.mxu0 }
  0xe1   :  { %1561 = vrcp.f32 %v334_v63  ;;  %v278_v4 = vadd.f32 1.0, %v1542_v2  ;;  %v1311_v5 = vmul.f32 -1.442695, %v179_v1  ;;  %v181_v6 = vadd.f32 %v180_v3, %v1818_v19 }
  0xe2   :  { %v1544_v7 = vpop.eup %1543  ;;  %1563 = vpow2.f32 %v1318_v0  ;;  %v182_v9 = vpop.f32.mrf.mxu0  ;;  %v1374_v1 = vunpack.c.l.bf16 %v1381_v61  ;;  %v1375_v3 = vunpack.c.h.bf16 %v1381_v61 }
  0xe3   :  { %1565 = vrcp.f32 %v278_v4  ;;  %v335_v10 = vadd.f32 1.0, %v1544_v7  ;;  %v1319_v11 = vmul.f32 -1.442695, %v181_v6  ;;  %v183_v12 = vadd.f32 %v182_v9, %v1815_v18  ;;  %v1382_v7 = vld [vmem:[%s2047_s1 + $0x18] sm:$0xff]   ;;  %s1708_s1 = smov 96  }
  0xe4   :  { %v1546_v13 = vpop.eup %1545  ;;  %1567 = vpow2.f32 %v1311_v5  ;;  %v184_v15 = vpop.f32.mrf.mxu0 }
  0xe5   :  { %1569 = vrcp.f32 %v335_v10  ;;  %v279_v17 = vadd.f32 1.0, %v1546_v13  ;;  %v1312_v20 = vmul.f32 -1.442695, %v183_v12  ;;  %v185_v21 = vadd.f32 %v184_v15, %v1818_v19 }
  0xe6   :  { %v1548_v22 = vpop.eup %1547  ;;  %1571 = vpow2.f32 %v1319_v11  ;;  %v1366_v19 = vunpack.c.l.bf16 %v1365_v26  ;;  %v1378_v12 = vunpack.c.l.bf16 %v1382_v7  ;;  %v1379_v15 = vunpack.c.h.bf16 %v1382_v7  ;;  %v1421_v26 = vpop.f32.mrf.mxu1 }
  0xe7   :  { %1573 = vrcp.f32 %v279_v17  ;;  %v336_v23 = vadd.f32 1.0, %v1548_v22  ;;  %v1320_v24 = vmul.f32 -1.442695, %v185_v21 }
  0xe8   :  { %v1550_v25 = vpop.eup %1549  ;;  %1575 = vpow2.f32 %v1312_v20 }
  0xe9   :  { %v1552_v18 = vpop.eup %1551  ;;  %301 = vst.msk [vmem:[#allocation4] sm:$0xff] %vm33_vm1, %v1550_v25  ;;  %1577 = vrcp.f32 %v336_v23 }
  0xea   :  { %v1554_v27 = vpop.eup %1553  ;;  %v280_v28 = vadd.f32 1.0, %v1552_v18  ;;  %1579 = vpow2.f32 %v1320_v24  ;;  %v60_v24 = vsub.s32 2, %v1805_v14 }
  0xeb   :  { %v1556_v29 = vpop.eup %1555  ;;  %v373_v38 = vmul.f32 %v1554_v27, %v1366_v19  ;;  %v221_v27 = vpop.f32.mrf.mxu1 }
  0xec   :  { %v1558_v31 = vpop.eup %1557  ;;  %1581 = vrcp.f32 %v280_v28  ;;  %v337_v32 = vadd.f32 1.0, %v1556_v29  ;;  %v1867_v25 = vrot.slane %v1811_v16, %v60_v24 }
  0xed   :  { %v1560_v33 = vpop.eup %1559  ;;  %302 = vst.msk [vmem:[#allocation4 + $0x8] sm:$0xff] %vm33_vm1, %v1558_v31  ;;  %v1422_v28 = vpop.f32.mrf.mxu1 }
  0xee   :  { %v1562_v34 = vpop.eup %1561  ;;  %1583 = vrcp.f32 %v337_v32  ;;  %v281_v35 = vadd.f32 1.0, %v1560_v33  ;;  %v230_v18 = vadd.f32 %v1421_v26, %v1867_v25  ;;  %v233_v29 = vadd.f32 %v1422_v28, %v1867_v25 }
  0xef   :  { %v1564_v37 = vpop.eup %1563  ;;  %v374_v39 = vmul.f32 %v1562_v34, %v1367_v30  ;;  %v224_v19 = vpop.f32.mrf.mxu1 }
  0xf0   :  { %v1566_v40 = vpop.eup %1565  ;;  %1585 = vrcp.f32 %v281_v35  ;;  %v338_v41 = vadd.f32 1.0, %v1564_v37  ;;  %v486_v42 = vld [vmem:[#allocation4] sm:$0xff]  ;;  %v1872_v30 = vadd.f32 %v224_v19, %v1867_v25 }
  0xf1   :  { %v1568_v44 = vpop.eup %1567  ;;  %303 = vst.msk [vmem:[#allocation4 + $0x10] sm:$0xff] %vm33_vm1, %v1566_v40  ;;  %v381_v45 = vpack.c.bf16 %v374_v39, %v373_v38  ;;  %v487_v46 = vmul.f32 %v486_v42, %v484_v36  ;;  %v1425_v31 = vpop.f32.mrf.mxu1 }
  0xf2   :  { %v1570_v47 = vpop.eup %1569  ;;  %1587 = vrcp.f32 %v338_v41  ;;  %v282_v48 = vadd.f32 1.0, %v1568_v44  ;;  %v246_v32 = vadd.f32 %v1425_v31, %v1867_v25  ;;  %v222_v41 = vadd.f32 %v221_v27, %v1867_v25 }
  0xf3   :  { %v1572_v49 = vpop.eup %1571  ;;  %1429 = vmatprep.mubr.msk.bf16.mxu1 %vm386_vm4, %v381_v45  ;;  %v489_v50 = vpack.c.bf16 %v487_v46, %v487_v46  ;;  %v375_v59 = vmul.f32 %v1570_v47, %v1370_v51  ;;  %v237_v33 = vpop.f32.mrf.mxu1 }
  0xf4   :  { %v1574_v53 = vpop.eup %1573  ;;  %1589 = vrcp.f32 %v282_v48  ;;  %v339_v54 = vadd.f32 1.0, %v1572_v49  ;;  %v238_v14 = vadd.f32 %v237_v33, %v1867_v25  ;;  %v580_v7 = vld [vmem:[#allocation4 + $0x8] sm:$0xff] }
  0xf5   :  { %v1576_v55 = vpop.eup %1575  ;;  %304 = vst.msk [vmem:[#allocation4 + $0x18] sm:$0xff] %vm33_vm1, %v1574_v53  ;;  %1442 = vmatmul.mubr.msk.bf16.vlgmr.msra.gmra.mxu0 %vm33_vm1, %v489_v50  ;;  %v1426_v34 = vpop.f32.mrf.mxu1 }
  0xf6   :  { %v1578_v56 = vpop.eup %1577  ;;  %1591 = vrcp.f32 %v339_v54  ;;  %v283_v57 = vadd.f32 1.0, %v1576_v55  ;;  %1457 = vmatprep.mubr.msk.bf16.mxu0 %vm1707_vm2, %v1706_v8  ;;  %v249_v16 = vadd.f32 %v1426_v34, %v1867_v25 }
  0xf7   :  { %v1580_v58 = vpop.eup %1579  ;;  %v376_v60 = vmul.f32 %v1578_v56, %v1371_v52  ;;  %v1877_v37 = vpop.f32.mrf.mxu1 }
  0xf8   :  { %1593 = vrcp.f32 %v283_v57  ;;  %v340_v62 = vadd.f32 1.0, %v1580_v58 }
  0xf9   :  { %v1582_v63 = vpop.eup %1581  ;;  %v382_v0 = vpack.c.bf16 %v376_v60, %v375_v59 }
  0xfa   :  { %305 = vst.msk [vmem:[#allocation4 + $0x20] sm:$0xff] %vm33_vm1, %v1582_v63  ;;  %1595 = vrcp.f32 %v340_v62  ;;  %v485_v62 = vld [vmem:[#allocation3] sm:$0xff] }
  0xfb   :  { %v1584_v2 = vpop.eup %1583  ;;  %1430 = vmatmul.mubr.msk.bf16.vlgmr.msra.gmra.mxu1 %vm386_vm4, %v382_v0 }
  0xfc   :  { %v377_v5 = vmul.f32 %v1584_v2, %v1374_v1  ;;  %v1519_v2 = vld [vmem:[%s2051_s5 + $0x8] sm:$0xff]  }
  0xfd   :  { %v1586_v4 = vpop.eup %1585  ;;  %1446 = vmatpush3.bf16.msra.mxu1 %v1519_v2 }
  0xfe   :  { %306 = vst.msk [vmem:[#allocation4 + $0x28] sm:$0xff] %vm33_vm1, %v1586_v4  ;;  %1447 = vmatprep.subr.bf16.mxu1 %v1706_v8 }
  0xff   :  { %v1588_v6 = vpop.eup %1587 }
 0x100   :  { %v378_v9 = vmul.f32 %v1588_v6, %v1375_v3  ;;  %v1520_v3 = vld [vmem:[%s2051_s5] sm:$0xff]  }
 0x101   :  { %v1590_v10 = vpop.eup %1589  ;;  %1448 = vmatpush3.bf16.msra.mxu1 %v1520_v3 }
 0x102   :  { %307 = vst.msk [vmem:[#allocation4 + $0x30] sm:$0xff] %vm33_vm1, %v1590_v10  ;;  %v383_v11 = vpack.c.bf16 %v378_v9, %v377_v5  ;;  %1461 = vmatprep.subr.bf16.mxu1 %v1706_v8 }
 0x103   :  { %v1592_v13 = vpop.eup %1591 }
 0x104   :  { %1433 = vmatprep.mubr.msk.bf16.mxu1 %vm386_vm4, %v383_v11  ;;  %v379_v20 = vmul.f32 %v1592_v13, %v1378_v12 }
 0x105   :  { %v1594_v17 = vpop.eup %1593 }
 0x106   :  { %308 = vst.msk [vmem:[#allocation4 + $0x38] sm:$0xff] %vm33_vm1, %v1594_v17 }
 0x107   :  { %v1596_v21 = vpop.eup %1595 }
 0x108   :  { %v380_v22 = vmul.f32 %v1596_v21, %v1379_v15 }
 0x10a   :  { %v384_v23 = vpack.c.bf16 %v380_v22, %v379_v20 }
 0x10c   :  { %1434 = vmatmul.mubr.msk.bf16.gmra.mxu1 %vm386_vm4, %v384_v23 }
 0x10d   :  { %1449 = vmatprep.mubr.msk.bf16.mxu1 %vm1707_vm2, %v1706_v8 }
 0x1b5   :  { %v543_v35 = vpop.f32.mrf.mxu0 }
 0x1b7   :  { %v1443_v36 = vpop.f32.mrf.mxu0 }
 0x1b9   :  { %v546_v38 = vpop.f32.mrf.mxu0 }
 0x1bb   :  { %v1431_v39 = vpop.f32.mrf.mxu1  ;;  %v1444_v40 = vpop.f32.mrf.mxu0 }
 0x1bc   :  { %v1880_v42 = vadd.f32 %v1431_v39, %v230_v18 }
 0x1bd   :  { %v437_v43 = vpop.f32.mrf.mxu1 }
 0x1be   :  { %v468_v44 = vadd.f32 %v437_v43, %v222_v41 }
 0x1bf   :  { %v1432_v45 = vpop.f32.mrf.mxu1 }
 0x1c0   :  { %v549_v46 = vadd.f32 %v543_v35, %v468_v44  ;;  %v1882_v47 = vadd.f32 %v1432_v45, %v233_v29  ;;  %v676_v35 = vld [vmem:[#allocation4 + $0x10] sm:$0xff] }
 0x1c1   :  { %v440_v48 = vpop.f32.mrf.mxu1 }
 0x1c2   :  { %1597 = vtanh.f32 %v549_v46  ;;  %v1328_v56 = vmul.f32 -1.442695, %v549_v46  ;;  %v469_v13 = vadd.f32 %v440_v48, %v1872_v30 }
 0x1c4   :  { %1599 = vpow2.f32 %v1328_v56 }
 0x1cc   :  { %v1435_v49 = vpop.f32.mrf.mxu1 }
 0x1cd   :  { %v1884_v50 = vadd.f32 %v1435_v49, %v246_v32  ;;  %v1521_v32 = vld [vmem:[%s2051_s5 + $0x8] sm:$0xff]  }
 0x1ce   :  { %v453_v51 = vpop.f32.mrf.mxu1  ;;  %1454 = vmatpush3.bf16.msra.mxu0 %v1521_v32 }
 0x1cf   :  { %v1598_v52 = vpop.eup %1597  ;;  %v1886_v53 = vadd.f32 %v453_v51, %v238_v14  ;;  %1455 = vmatprep.subr.bf16.mxu0 %v1706_v8  ;;  %v1522_v14 = vld [vmem:[%s2051_s5] sm:$0xff]  }
 0x1d0   :  { %v1436_v54 = vpop.f32.mrf.mxu1  ;;  %559 = vrot.lane.b32.xlu0 %v1598_v52, %s1708_s1 }
 0x1d1   :  { %v1889_v55 = vadd.f32 %v1436_v54, %v249_v16  ;;  %v1600_v57 = vpop.eup %1599 }
 0x1d2   :  { %v553_v58 = vadd.f32 1.0, %v1600_v57  ;;  %v1909_v12 = vpop.f32.mrf.mxu1  ;;  %1456 = vmatpush3.bf16.msra.mxu0 %v1522_v14 }
 0x1d3   :  { %1469 = vmatprep.subr.bf16.mxu0 %v1706_v8 }
 0x1d4   :  { %1601 = vrcp.f32 %v553_v58 }
 0x1e1   :  { %v1602_v59 = vpop.eup %1601 }
 0x1e2   :  { %v557_v63 = vmul.f32 %v1602_v59, %v485_v62 }
 0x242   :  { %v560_v60 = vpop.permute.xlu0 %559 }
 0x243   :  { %v562_v61 = vmul.f32 %v1602_v59, %v560_v60 }
 0x245   :  { %564 = vrot.lane.b32.xlu0 %v562_v61, %s1708_s1  ;;  %v1524_v61 = vld [vmem:[%s2051_s5] sm:$0xff]  }
 0x2b7   :  { %v565_v0 = vpop.permute.xlu0 %564 }
 0x2b8   :  { %v567_v1 = vadd.f32 %v565_v0, %v557_v63  ;;  %v772_v0 = vld [vmem:[#allocation4 + $0x18] sm:$0xff] }
 0x2ba   :  { %1603 = vtanh.f32 %v567_v1 }
 0x2c7   :  { %v1604_v4 = vpop.eup %1603 }
 0x2c8   :  { %570 = vrot.lane.b32.xlu1 %v1604_v4, %s1708_s1 }
 0x33a   :  { %v571_v5 = vpop.permute.xlu1 %570 }
 0x33b   :  { %v573_v6 = vmul.f32 %v1602_v59, %v571_v5  ;;  %v1523_v59 = vld [vmem:[%s2051_s5 + $0x8] sm:$0xff]  }
 0x33d   :  { %575 = vrot.lane.b32.xlu1 %v573_v6, %s1709_s13 }
 0x3af   :  { %v576_v9 = vpop.permute.xlu1 %575 }
 0x3b0   :  { %578 = vst.msk [vmem:[%s2052_s6] sm:$0xff] %vm33_vm1, %v576_v9  ;;  %v581_v10 = vmul.f32 %v580_v7, %v576_v9 }
 0x3b2   :  { %v584_v11 = vpack.c.bf16 %v581_v10, %v581_v10 }
 0x3b4   :  { %1450 = vmatmul.mubr.msk.bf16.vlgmr.msra.gmra.mxu1 %vm33_vm1, %v584_v11 }
 0x3b5   :  { %1465 = vmatprep.mubr.msk.bf16.mxu1 %vm1707_vm2, %v1706_v8  ;;  %1462 = vmatpush3.bf16.msra.mxu1 %v1523_v59 }
 0x3b6   :  { %1463 = vmatprep.subr.bf16.mxu1 %v1706_v8 }
 0x3b9   :  { %1464 = vmatpush3.bf16.msra.mxu1 %v1524_v61 }
 0x3ba   :  { %1477 = vmatprep.subr.bf16.mxu1 %v1706_v8 }
 0x474   :  { %v638_v15 = vpop.f32.mrf.mxu1 }
 0x475   :  { %v644_v17 = vadd.f32 %v638_v15, %v469_v13 }
 0x476   :  { %v1451_v20 = vpop.f32.mrf.mxu1 }
 0x477   :  { %1605 = vtanh.f32 %v644_v17  ;;  %v1332_v24 = vmul.f32 -1.442695, %v644_v17 }
 0x478   :  { %v641_v21 = vpop.f32.mrf.mxu1 }
 0x479   :  { %1607 = vpow2.f32 %v1332_v24  ;;  %v1525_v24 = vld [vmem:[%s2051_s5 + $0x8] sm:$0xff]  }
 0x47a   :  { %v1452_v22 = vpop.f32.mrf.mxu1 }
 0x484   :  { %v1606_v23 = vpop.eup %1605 }
 0x485   :  { %654 = vrot.lane.b32.xlu0 %v1606_v23, %s1708_s1 }
 0x486   :  { %v1608_v26 = vpop.eup %1607 }
 0x487   :  { %v648_v18 = vadd.f32 1.0, %v1608_v26 }
 0x489   :  { %1609 = vrcp.f32 %v648_v18  ;;  %v1526_v18 = vld [vmem:[%s2051_s5] sm:$0xff]  }
 0x496   :  { %v1610_v27 = vpop.eup %1609 }
 0x497   :  { %v652_v19 = vmul.f32 %v1610_v27, %v567_v1 }
 0x4f7   :  { %v655_v28 = vpop.permute.xlu0 %654 }
 0x4f8   :  { %v657_v29 = vmul.f32 %v1610_v27, %v655_v28 }
 0x4fa   :  { %659 = vrot.lane.b32.xlu1 %v657_v29, %s1708_s1  ;;  %v868_v29 = vld [vmem:[#allocation4 + $0x20] sm:$0xff] }
 0x56c   :  { %v660_v30 = vpop.permute.xlu1 %659 }
 0x56d   :  { %v662_v31 = vadd.f32 %v660_v30, %v652_v19 }
 0x56f   :  { %1611 = vtanh.f32 %v662_v31 }
 0x57c   :  { %v1612_v33 = vpop.eup %1611 }
 0x57d   :  { %665 = vrot.lane.b32.xlu0 %v1612_v33, %s1708_s1 }
 0x5ef   :  { %v666_v34 = vpop.permute.xlu0 %665 }
 0x5f0   :  { %v668_v16 = vmul.f32 %v1610_v27, %v666_v34 }
 0x5f2   :  { %670 = vrot.lane.b32.xlu1 %v668_v16, %s1709_s13 }
 0x664   :  { %v671_v36 = vpop.permute.xlu1 %670 }
 0x665   :  { %1333 = vst.msk [vmem:[%s2052_s6 + $0x8] sm:$0xff] %vm33_vm1, %v671_v36  ;;  %v677_v38 = vmul.f32 %v676_v35, %v671_v36 }
 0x667   :  { %v680_v39 = vpack.c.bf16 %v677_v38, %v677_v38 }
 0x669   :  { %1458 = vmatmul.mubr.msk.bf16.vlgmr.msra.gmra.mxu0 %vm33_vm1, %v680_v39 }
 0x66a   :  { %1473 = vmatprep.mubr.msk.bf16.mxu0 %vm1707_vm2, %v1706_v8  ;;  %1470 = vmatpush3.bf16.msra.mxu0 %v1525_v24 }
 0x66b   :  { %1471 = vmatprep.subr.bf16.mxu0 %v1706_v8 }
 0x66e   :  { %1472 = vmatpush3.bf16.msra.mxu0 %v1526_v18 }
 0x66f   :  { %1485 = vmatprep.subr.bf16.mxu0 %v1706_v8 }
 0x729   :  { %v734_v40 = vpop.f32.mrf.mxu0 }
 0x72a   :  { %v740_v41 = vadd.f32 %v734_v40, %v1880_v42 }
 0x72b   :  { %v1459_v43 = vpop.f32.mrf.mxu0 }
 0x72c   :  { %1613 = vtanh.f32 %v740_v41  ;;  %v1337_v48 = vmul.f32 -1.442695, %v740_v41 }
 0x72d   :  { %v737_v44 = vpop.f32.mrf.mxu0 }
 0x72e   :  { %1615 = vpow2.f32 %v1337_v48 }
 0x72f   :  { %v1460_v45 = vpop.f32.mrf.mxu0 }
 0x739   :  { %v1614_v46 = vpop.eup %1613 }
 0x73a   :  { %750 = vrot.lane.b32.xlu0 %v1614_v46, %s1708_s1  ;;  %v1527_v46 = vld [vmem:[%s2051_s5 + $0x8] sm:$0xff]  }
 0x73b   :  { %v1616_v49 = vpop.eup %1615 }
 0x73c   :  { %v744_v51 = vadd.f32 1.0, %v1616_v49  ;;  %v1528_v49 = vld [vmem:[%s2051_s5] sm:$0xff]  }
 0x73e   :  { %1617 = vrcp.f32 %v744_v51 }
 0x74b   :  { %v1618_v52 = vpop.eup %1617 }
 0x74c   :  { %v748_v57 = vmul.f32 %v1618_v52, %v662_v31 }
 0x7ac   :  { %v751_v54 = vpop.permute.xlu0 %750 }
 0x7ad   :  { %v753_v56 = vmul.f32 %v1618_v52, %v751_v54  ;;  %v964_v54 = vld [vmem:[#allocation4 + $0x28] sm:$0xff] }
 0x7af   :  { %755 = vrot.lane.b32.xlu1 %v753_v56, %s1708_s1 }
 0x821   :  { %v756_v58 = vpop.permute.xlu1 %755 }
 0x822   :  { %v758_v42 = vadd.f32 %v756_v58, %v748_v57 }
 0x824   :  { %1619 = vtanh.f32 %v758_v42 }
 0x831   :  { %v1620_v60 = vpop.eup %1619 }
 0x832   :  { %761 = vrot.lane.b32.xlu0 %v1620_v60, %s1708_s1 }
 0x8a4   :  { %v762_v62 = vpop.permute.xlu0 %761 }
 0x8a5   :  { %v764_v63 = vmul.f32 %v1618_v52, %v762_v62 }
 0x8a7   :  { %766 = vrot.lane.b32.xlu1 %v764_v63, %s1709_s13 }
 0x919   :  { %v767_v1 = vpop.permute.xlu1 %766 }
 0x91a   :  { %1338 = vst.msk [vmem:[%s2052_s6 + $0x10] sm:$0xff] %vm33_vm1, %v767_v1  ;;  %v773_v2 = vmul.f32 %v772_v0, %v767_v1 }
 0x91c   :  { %v776_v3 = vpack.c.bf16 %v773_v2, %v773_v2 }
 0x91e   :  { %1466 = vmatmul.mubr.msk.bf16.vlgmr.msra.gmra.mxu1 %vm33_vm1, %v776_v3 }
 0x91f   :  { %1481 = vmatprep.mubr.msk.bf16.mxu1 %vm1707_vm2, %v1706_v8  ;;  %1478 = vmatpush3.bf16.msra.mxu1 %v1527_v46 }
 0x920   :  { %1479 = vmatprep.subr.bf16.mxu1 %v1706_v8 }
 0x923   :  { %1480 = vmatpush3.bf16.msra.mxu1 %v1528_v49 }
 0x924   :  { %1493 = vmatprep.subr.bf16.mxu1 %v1706_v8 }
 0x9de   :  { %v830_v4 = vpop.f32.mrf.mxu1 }
 0x9df   :  { %v836_v5 = vadd.f32 %v830_v4, %v1882_v47 }
 0x9e0   :  { %v1467_v6 = vpop.f32.mrf.mxu1 }
 0x9e1   :  { %1621 = vtanh.f32 %v836_v5  ;;  %v1342_v11 = vmul.f32 -1.442695, %v836_v5 }
 0x9e2   :  { %v833_v7 = vpop.f32.mrf.mxu1 }
 0x9e3   :  { %1623 = vpow2.f32 %v1342_v11  ;;  %v1530_v11 = vld [vmem:[%s2051_s5] sm:$0xff]  }
 0x9e4   :  { %v1468_v9 = vpop.f32.mrf.mxu1 }
 0x9e5   :  { %v1529_v9 = vld [vmem:[%s2051_s5 + $0x8] sm:$0xff]  }
 0x9ee   :  { %v1622_v10 = vpop.eup %1621 }
 0x9ef   :  { %846 = vrot.lane.b32.xlu0 %v1622_v10, %s1708_s1 }
 0x9f0   :  { %v1624_v13 = vpop.eup %1623 }
 0x9f1   :  { %v840_v15 = vadd.f32 1.0, %v1624_v13 }
 0x9f3   :  { %1625 = vrcp.f32 %v840_v15 }
 0xa00   :  { %v1626_v17 = vpop.eup %1625 }
 0xa01   :  { %v844_v22 = vmul.f32 %v1626_v17, %v758_v42  ;;  %v241_v42 = vadd.f32 %v1877_v37, %v1867_v25 }
 0xa03   :  { %v473_v59 = vadd.f32 %v1909_v12, %v241_v42 }
 0xa61   :  { %v847_v20 = vpop.permute.xlu0 %846 }
 0xa62   :  { %v849_v21 = vmul.f32 %v1626_v17, %v847_v20 }
 0xa64   :  { %851 = vrot.lane.b32.xlu1 %v849_v21, %s1708_s1 }
 0xad6   :  { %v852_v23 = vpop.permute.xlu1 %851 }
 0xad7   :  { %v854_v47 = vadd.f32 %v852_v23, %v844_v22 }
 0xad9   :  { %1627 = vtanh.f32 %v854_v47 }
 0xae6   :  { %v1628_v26 = vpop.eup %1627 }
 0xae7   :  { %857 = vrot.lane.b32.xlu0 %v1628_v26, %s1708_s1 }
 0xb59   :  { %v858_v27 = vpop.permute.xlu0 %857 }
 0xb5a   :  { %v860_v28 = vmul.f32 %v1626_v17, %v858_v27  ;;  %v1060_v17 = vld [vmem:[#allocation4 + $0x30] sm:$0xff] }
 0xb5c   :  { %862 = vrot.lane.b32.xlu1 %v860_v28, %s1709_s13 }
 0xbce   :  { %v863_v19 = vpop.permute.xlu1 %862 }
 0xbcf   :  { %1343 = vst.msk [vmem:[%s2052_s6 + $0x18] sm:$0xff] %vm33_vm1, %v863_v19  ;;  %v869_v30 = vmul.f32 %v868_v29, %v863_v19 }
 0xbd1   :  { %v872_v31 = vpack.c.bf16 %v869_v30, %v869_v30 }
 0xbd3   :  { %1474 = vmatmul.mubr.msk.bf16.vlgmr.msra.gmra.mxu0 %vm33_vm1, %v872_v31 }
 0xbd4   :  { %1489 = vmatprep.mubr.msk.bf16.mxu0 %vm1707_vm2, %v1706_v8  ;;  %1486 = vmatpush3.bf16.msra.mxu0 %v1529_v9 }
 0xbd5   :  { %1487 = vmatprep.subr.bf16.mxu0 %v1706_v8 }
 0xbd8   :  { %1488 = vmatpush3.bf16.msra.mxu0 %v1530_v11 }
 0xc93   :  { %v926_v32 = vpop.f32.mrf.mxu0 }
 0xc94   :  { %v932_v33 = vadd.f32 %v926_v32, %v1886_v53 }
 0xc95   :  { %v1475_v14 = vpop.f32.mrf.mxu0 }
 0xc96   :  { %1629 = vtanh.f32 %v932_v33  ;;  %v1347_v36 = vmul.f32 -1.442695, %v932_v33 }
 0xc97   :  { %v929_v34 = vpop.f32.mrf.mxu0 }
 0xc98   :  { %1631 = vpow2.f32 %v1347_v36  ;;  %v1531_v34 = vld [vmem:[%s2051_s5 + $0x8] sm:$0xff]  }
 0xc99   :  { %v1476_v16 = vpop.f32.mrf.mxu0 }
 0xca3   :  { %v1630_v35 = vpop.eup %1629 }
 0xca4   :  { %942 = vrot.lane.b32.xlu0 %v1630_v35, %s1708_s1  ;;  %v1532_v35 = vld [vmem:[%s2051_s5] sm:$0xff]   ;;  %s1710_s5 = smov [#allocation8]  }
 0xca5   :  { %v1632_v38 = vpop.eup %1631  ;;  %s1276_s3 = sshll.u32 %s1710_s5, 4  ;;  %s1277_s3 = int_to_ptr.vmem [resolvable:$true] %s1276_s3 }
 0xca6   :  { %v936_v39 = vadd.f32 1.0, %v1632_v38  ;;  %s1661_s4 = scalar_lea.vmem %s1277_s3, 128  ;;  %p1666_p1 = scmp.lt.s32.totalorder %s1277_s3, %s1277_s3 }
 0xca7   :  { %p1662_p0 = scmp.ne.s32.totalorder %s1277_s3, %s1661_s4  ;;  %p1667_p2 = scmp.lt.s32.totalorder %s1661_s4, %s1661_s4 }
 0xca8   :  { %1633 = vrcp.f32 %v936_v39  ;;  %v1156_v39 = vld [vmem:[#allocation4 + $0x38] sm:$0xff] }
 0xca9   :  { %p1668_p3 = por %p1667_p2, %p1666_p1 }
 0xcab   :  { %p1669_p4 = pnand %p1668_p3, %p1662_p0 }
 0xcb5   :  { %v1634_v40 = vpop.eup %1633 }
 0xcb6   :  { %v940_v44 = vmul.f32 %v1634_v40, %v854_v47 }
 0xd16   :  { %v943_v41 = vpop.permute.xlu0 %942 }
 0xd17   :  { %v945_v43 = vmul.f32 %v1634_v40, %v943_v41 }
 0xd19   :  { %947 = vrot.lane.b32.xlu1 %v945_v43, %s1708_s1 }
 0xd8b   :  { %v948_v45 = vpop.permute.xlu1 %947 }
 0xd8c   :  { %v950_v53 = vadd.f32 %v948_v45, %v940_v44 }
 0xd8e   :  { %1635 = vtanh.f32 %v950_v53 }
 0xd9b   :  { %v1636_v48 = vpop.eup %1635 }
 0xd9c   :  { %953 = vrot.lane.b32.xlu0 %v1636_v48, %s1708_s1 }
 0xe0e   :  { %v954_v51 = vpop.permute.xlu0 %953 }
 0xe0f   :  { %v956_v52 = vmul.f32 %v1634_v40, %v954_v51 }
 0xe11   :  { %958 = vrot.lane.b32.xlu1 %v956_v52, %s1709_s13 }
 0xe83   :  { %v959_v56 = vpop.permute.xlu1 %958 }
 0xe84   :  { %1348 = vst.msk [vmem:[%s2052_s6 + $0x20] sm:$0xff] %vm33_vm1, %v959_v56  ;;  %v965_v57 = vmul.f32 %v964_v54, %v959_v56 }
 0xe86   :  { %v968_v58 = vpack.c.bf16 %v965_v57, %v965_v57 }
 0xe88   :  { %1482 = vmatmul.mubr.msk.bf16.vlgmr.msra.gmra.mxu1 %vm33_vm1, %v968_v58 }
 0xe89   :  { %1497 = vmatprep.mubr.msk.bf16.mxu1 %vm1707_vm2, %v1706_v8  ;;  %1494 = vmatpush3.bf16.msra.mxu1 %v1531_v34 }
 0xe8a   :  { %1495 = vmatprep.subr.bf16.mxu1 %v1706_v8 }
 0xe8d   :  { %1496 = vmatpush3.bf16.msra.mxu1 %v1532_v35 }
 0xf48   :  { %v1022_v60 = vpop.f32.mrf.mxu1 }
 0xf49   :  { %v1028_v61 = vadd.f32 %v1022_v60, %v473_v59 }
 0xf4a   :  { %v1483_v62 = vpop.f32.mrf.mxu1 }
 0xf4b   :  { %1637 = vtanh.f32 %v1028_v61  ;;  %v1352_v2 = vmul.f32 -1.442695, %v1028_v61 }
 0xf4c   :  { %v1025_v63 = vpop.f32.mrf.mxu1 }
 0xf4d   :  { %1639 = vpow2.f32 %v1352_v2 }
 0xf4e   :  { %v1484_v0 = vpop.f32.mrf.mxu1 }
 0xf58   :  { %v1638_v1 = vpop.eup %1637 }
 0xf59   :  { %1038 = vrot.lane.b32.xlu0 %v1638_v1, %s1708_s1 }
 0xf5a   :  { %v1640_v3 = vpop.eup %1639 }
 0xf5b   :  { %v1032_v4 = vadd.f32 1.0, %v1640_v3 }
 0xf5d   :  { %1641 = vrcp.f32 %v1032_v4 }
 0xf6a   :  { %v1642_v5 = vpop.eup %1641 }
 0xf6b   :  { %v1036_v25 = vmul.f32 %v1642_v5, %v950_v53 }
 0xfcb   :  { %v1039_v6 = vpop.permute.xlu0 %1038 }
 0xfcc   :  { %v1041_v7 = vmul.f32 %v1642_v5, %v1039_v6 }
 0xfce   :  { %1043 = vrot.lane.b32.xlu1 %v1041_v7, %s1708_s1 }
0x1040   :  { %v1044_v37 = vpop.permute.xlu1 %1043 }
0x1041   :  { %v1046_v12 = vadd.f32 %v1044_v37, %v1036_v25 }
0x1043   :  { %1643 = vtanh.f32 %v1046_v12 }
0x1050   :  { %v1644_v10 = vpop.eup %1643 }
0x1051   :  { %1049 = vrot.lane.b32.xlu0 %v1644_v10, %s1708_s1 }
0x10c3   :  { %v1050_v13 = vpop.permute.xlu0 %1049 }
0x10c4   :  { %v1052_v15 = vmul.f32 %v1642_v5, %v1050_v13 }
0x10c6   :  { %1054 = vrot.lane.b32.xlu1 %v1052_v15, %s1709_s13 }
0x1138   :  { %v1055_v20 = vpop.permute.xlu1 %1054 }
0x1139   :  { %1353 = vst.msk [vmem:[%s2052_s6 + $0x28] sm:$0xff] %vm33_vm1, %v1055_v20  ;;  %v1061_v21 = vmul.f32 %v1060_v17, %v1055_v20 }
0x113b   :  { %v1064_v22 = vpack.c.bf16 %v1061_v21, %v1061_v21 }
0x113d   :  { %1490 = vmatmul.mubr.msk.bf16.vlgmr.msra.gmra.mxu0 %vm33_vm1, %v1064_v22 }
0x11fd   :  { %v1118_v23 = vpop.f32.mrf.mxu0 }
0x11fe   :  { %v1124_v47 = vadd.f32 %v1118_v23, %v1884_v50 }
0x11ff   :  { %v1491_v24 = vpop.f32.mrf.mxu0 }
0x1200   :  { %1645 = vtanh.f32 %v1124_v47  ;;  %v1357_v28 = vmul.f32 -1.442695, %v1124_v47 }
0x1201   :  { %v1121_v26 = vpop.f32.mrf.mxu0 }
0x1202   :  { %1647 = vpow2.f32 %v1357_v28 }
0x1203   :  { %v1492_v18 = vpop.f32.mrf.mxu0 }
0x120d   :  { %v1646_v27 = vpop.eup %1645 }
0x120e   :  { %1134 = vrot.lane.b32.xlu0 %v1646_v27, %s1708_s1 }
0x120f   :  { %v1648_v29 = vpop.eup %1647 }
0x1210   :  { %v1128_v19 = vadd.f32 1.0, %v1648_v29 }
0x1212   :  { %1649 = vrcp.f32 %v1128_v19 }
0x121f   :  { %v1650_v30 = vpop.eup %1649 }
0x1220   :  { %v1132_v33 = vmul.f32 %v1650_v30, %v1046_v12 }
0x1280   :  { %v1135_v31 = vpop.permute.xlu0 %1134 }
0x1281   :  { %v1137_v32 = vmul.f32 %v1650_v30, %v1135_v31 }
0x1283   :  { %1139 = vrot.lane.b32.xlu1 %v1137_v32, %s1708_s1 }
0x12f5   :  { %v1140_v14 = vpop.permute.xlu1 %1139 }
0x12f6   :  { %v1142_v50 = vadd.f32 %v1140_v14, %v1132_v33 }
0x12f8   :  { %1651 = vtanh.f32 %v1142_v50 }
0x1305   :  { %v1652_v16 = vpop.eup %1651 }
0x1306   :  { %1145 = vrot.lane.b32.xlu0 %v1652_v16, %s1708_s1 }
0x1378   :  { %v1146_v36 = vpop.permute.xlu0 %1145 }
0x1379   :  { %v1148_v38 = vmul.f32 %v1650_v30, %v1146_v36 }
0x137b   :  { %1150 = vrot.lane.b32.xlu1 %v1148_v38, %s1709_s13 }
0x13ed   :  { %v1151_v40 = vpop.permute.xlu1 %1150 }
0x13ee   :  { %1358 = vst.msk [vmem:[%s2052_s6 + $0x30] sm:$0xff] %vm33_vm1, %v1151_v40  ;;  %v1157_v8 = vmul.f32 %v1156_v39, %v1151_v40 }
0x13f0   :  { %v1160_v41 = vpack.c.bf16 %v1157_v8, %v1157_v8 }
0x13f2   :  { %1498 = vmatmul.mubr.msk.bf16.vlgmr.msra.gmra.mxu1 %vm33_vm1, %v1160_v41 }
0x14b2   :  { %v1214_v43 = vpop.f32.mrf.mxu1 }
0x14b3   :  { %v1220_v44 = vadd.f32 %v1214_v43, %v1889_v55 }
0x14b4   :  { %v1499_v45 = vpop.f32.mrf.mxu1 }
0x14b5   :  { %1653 = vtanh.f32 %v1220_v44  ;;  %v1362_v49 = vmul.f32 -1.442695, %v1220_v44 }
0x14b6   :  { %v1217_v53 = vpop.f32.mrf.mxu1 }
0x14b7   :  { %1655 = vpow2.f32 %v1362_v49 }
0x14b8   :  { %v1500_v46 = vpop.f32.mrf.mxu1 }
0x14c2   :  { %v1654_v48 = vpop.eup %1653 }
0x14c3   :  { %1230 = vrot.lane.b32.xlu0 %v1654_v48, %s1708_s1 }
0x14c4   :  { %v1656_v51 = vpop.eup %1655 }
0x14c5   :  { %v1224_v52 = vadd.f32 1.0, %v1656_v51 }
0x14c7   :  { %1657 = vrcp.f32 %v1224_v52 }
0x14d4   :  { %v1658_v54 = vpop.eup %1657 }
0x14d5   :  { %v1228_v58 = vmul.f32 %v1658_v54, %v1142_v50 }
0x1535   :  { %v1231_v56 = vpop.permute.xlu0 %1230 }
0x1536   :  { %v1233_v57 = vmul.f32 %v1658_v54, %v1231_v56 }
0x1538   :  { %1235 = vrot.lane.b32.xlu1 %v1233_v57, %s1708_s1 }
0x15aa   :  { %v1236_v42 = vpop.permute.xlu1 %1235 }
0x15ab   :  { %v1238_v55 = vadd.f32 %v1236_v42, %v1228_v58 }
0x15ad   :  { %1659 = vtanh.f32 %v1238_v55  ;;  %1252 = vst.msk [vmem:[#allocation3] sm:$0xff] %vm33_vm1, %v1238_v55  ;;  %1257 = vst.msk [vmem:[#allocation8] sm:$0xff] %vm33_vm1, %v1238_v55 }
0x15ba   :  { %v1660_v59 = vpop.eup %1659 }
0x15bb   :  { %1241 = vrot.lane.b32.xlu0 %v1660_v59, %s1708_s1 }
0x15bc   :  { %1672 = shalt.err (!%p1669_p4)
}
0x15bd   :  { %1279 = dma.vmem_to_hbm [thread:$0]  %s1277_s3, 128, %s2054_s8, [#allocation9]  }
0x15be   :  { %s1711_s27 = smov [#allocation6]  }
0x15bf   :  { %s1266_s1 = sshll.u32 %s1711_s27, 4  ;;  %s1267_s1 = int_to_ptr.vmem [resolvable:$true] %s1266_s1 }
0x15c0   :  { %s1681_s30 = scalar_lea.vmem %s1267_s1, 128  ;;  %p1686_p6 = scmp.lt.s32.totalorder %s1267_s1, %s1267_s1 }
0x15c1   :  { %p1682_p5 = scmp.ne.s32.totalorder %s1267_s1, %s1681_s30  ;;  %p1687_p7 = scmp.lt.s32.totalorder %s1681_s30, %s1681_s30 }
0x15c3   :  { %p1688_p8 = por %p1687_p7, %p1686_p6 }
0x15c5   :  { %p1689_p9 = pnand %p1688_p8, %p1682_p5 }
0x162d   :  { %v1242_v60 = vpop.permute.xlu0 %1241 }
0x162e   :  { %v1244_v61 = vmul.f32 %v1658_v54, %v1242_v60 }
0x1630   :  { %1246 = vrot.lane.b32.xlu1 %v1244_v61, %s1709_s13 }
0x16a2   :  { %v1247_v62 = vpop.permute.xlu1 %1246 }
0x16a3   :  { %1363 = vst.msk [vmem:[%s2052_s6 + $0x38] sm:$0xff] %vm33_vm1, %v1247_v62  ;;  %1251 = vst.msk [vmem:[#allocation2] sm:$0xff] %vm33_vm1, %v1247_v62 }
0x16a4   :  { %1256 = vst.msk [vmem:[#allocation6] sm:$0xff] %vm33_vm1, %v1247_v62 }
0x16a5   :  { %1692 = shalt.err (!%p1689_p9)
}
0x16a6   :  { %1269 = dma.vmem_to_hbm [thread:$0]  %s1267_s1, 128, %s2053_s7, [#allocation7]  }
0x16a7   :  { %1701 = dma.done.wait [#allocation7], 128  }
0x16a8   :  { %1702 = vsyncadd [#allocation7], 4294967168 }
0x16a9   :  { %1703 = dma.done.wait [#allocation9], 128  }
0x16aa   :  { %1704 = vsyncadd [#allocation9], 4294967168 }
0x16ab   :  { %1288 = vsyncpa [#allocation7], 1 }
0x16ac   :  { %1289 = vsyncpa [#allocation9], 1 }

// kernel: tpu_custom_call.1
= control target key start
LH: loop header
LB: loop body
LE: loop exit
PB: predicated region body
PF: predicated region fallthrough
CT: control target
= control target key end

     0   :  { %14 = vsyncpa [#allocation7], 0  ;;  %v1705_v2 = vmov 0   ;;  %vm101_vm0 = vcmask 130048   ;;  %s2046_s0 = inlined_call_operand.vmem [shape: bf16[64,16], index: 0, kind: input, shape index: {}]   ;;  %s2047_s1 = inlined_call_operand.vmem [shape: bf16[64,8], index: 1, kind: input, shape index: {}]   ;;  %s2048_s2 = inlined_call_operand.vmem [shape: bf16[16,384], index: 2, kind: input, shape index: {}]   ;;  %s2049_s3 = inlined_call_operand.vmem [shape: f32[1,384], index: 3, kind: input, shape index: {}]   ;;  %s2050_s4 = inlined_call_operand.vmem [shape: bf16[8,128], index: 4, kind: input, shape index: {}]   ;;  %s2051_s5 = inlined_call_operand.vmem [shape: bf16[32,128], index: 5, kind: input, shape index: {}]   ;;  %s2052_s6 = inlined_call_operand.vmem [shape: f32[64,32], index: 6, kind: output, shape index: {0}]   ;;  %s2053_s7 = inlined_call_operand.hbm [shape: f32[8,32], index: 7, kind: output, shape index: {1}]   ;;  %s2054_s8 = inlined_call_operand.hbm [shape: f32[8,32], index: 8, kind: output, shape index: {2}]  }
   0x1   :  { %v1509_v0 = vld [vmem:[%s2048_s2 + $0x4] ss:$12 sps:$4 sm:$0xff]   ;;  %v1511_v1 = vld [vmem:[%s2048_s2] ss:$12 sps:$4 sm:$0xff]   ;;  %146 = vmatprep.mubr.bf16.mxu0 %v1705_v2 }
   0x2   :  { %128 = vmatprep.subr.bf16.mxu0 %v1509_v0  ;;  %v1512_v3 = vld [vmem:[%s2046_s0] sm:$0xff]   ;;  %v1513_v4 = vld [vmem:[%s2046_s0 + $0x8] sm:$0xff]  }
   0x3   :  { %129 = vmatpush1.bf16.msra.mxu0 %v1511_v1  ;;  %1419 = vmatprep.mubr.msk.bf16.mxu1 %vm101_vm0, %v1512_v3 }
   0x6   :  { %1297 = vmatmul.mubr.msk.bf16.vlgmr.msra.gmra.mxu0 %vm101_vm0, %v1512_v3 }
   0x7   :  { %156 = vmatprep.mubr.bf16.mxu0 %v1705_v2 }
   0xe   :  { %1298 = vmatmul.mubr.msk.bf16.gmra.mxu0 %vm101_vm0, %v1513_v4 }
   0xf   :  { %166 = vmatprep.mubr.bf16.mxu0 %v1705_v2 }
  0x10   :  { %15 = vsyncpa [#allocation9], 0  ;;  %v1514_v5 = vld [vmem:[%s2046_s0 + $0x10] sm:$0xff]   ;;  %v1515_v6 = vld [vmem:[%s2046_s0 + $0x18] sm:$0xff]   ;;  %vm33_vm1 = vcmask 261120   ;;  %v1706_v8 = vmov 0.0   ;;  %v50_v13 = vlaneseq }
  0x11   :  { %v1517_v7 = vld [vmem:[%s2048_s2 + $0x8] ss:$12 sps:$4 sm:$0xff]   ;;  %1437 = vmatprep.subr.bf16.mxu0 %v1706_v8  ;;  %34 = vst.msk [vmem:[#allocation2] sm:$0xff] %vm33_vm1, %v1706_v8  ;;  %35 = vst.msk [vmem:[#allocation3] sm:$0xff] %vm33_vm1, %v1706_v8  ;;  %v1518_v10 = vld [vmem:[%s2051_s5] sm:$0xff]   ;;  %vm1707_vm2 = vmmov 0  }
  0x12   :  { %1417 = vmatprep.subr.bf16.mxu1 %v1517_v7  ;;  %v1516_v9 = vld [vmem:[%s2051_s5 + $0x8] sm:$0xff]   ;;  %v385_v11 = vld [vmem:[%s2050_s4] sm:$0xf]  ;;  %vm399_vm3 = vcmask 1043456   ;;  %v1805_v14 = vshrl.u32 %v50_v13, 7  ;;  %vm386_vm4 = vcmask 64512  }
  0x13   :  { %1418 = vmatpush3.bf16.msra.mxu1 %v1517_v7  ;;  %1438 = vmatpush3.bf16.msra.mxu0 %v1516_v9  ;;  %v401_v12 = vsel %vm399_vm3, %v385_v11, 0  ;;  %v1811_v16 = vld [vmem:[%s2049_s3] sm:$0x7]  ;;  %s1709_s13 = smov 32  }
  0x14   :  { %1439 = vmatprep.subr.bf16.mxu0 %v1706_v8  ;;  %1501 = vmatprep.subr.msk.bf16.mxu1 %vm399_vm3, %v385_v11  ;;  %v52_v15 = vsub.s32 0, %v1805_v14  ;;  %v56_v17 = vsub.s32 1, %v1805_v14 }
  0x16   :  { %1299 = vmatmul.mubr.msk.bf16.gmra.mxu0 %vm101_vm0, %v1514_v5  ;;  %1420 = vmatmul.mubr.msk.bf16.vlgmr.msra.gmra.mxu1 %vm101_vm0, %v1513_v4  ;;  %v1815_v18 = vrot.slane %v1811_v16, %v52_v15  ;;  %v1818_v19 = vrot.slane %v1811_v16, %v56_v17 }
  0x17   :  { %176 = vmatprep.mubr.bf16.mxu0 %v1705_v2  ;;  %1423 = vmatprep.mubr.msk.bf16.mxu1 %vm101_vm0, %v1514_v5 }
  0x18   :  { %1440 = vmatpush3.bf16.msra.mxu0 %v1518_v10  ;;  %1428 = vmatpush3.bf16.msra.mxu1 %v401_v12 }
  0x19   :  { %1453 = vmatprep.subr.bf16.mxu0 %v1706_v8  ;;  %1445 = vmatprep.subr.bf16.mxu1 %v1706_v8 }
  0x1e   :  { %1300 = vmatmul.mubr.msk.bf16.gmra.mxu0 %vm101_vm0, %v1515_v6  ;;  %1424 = vmatmul.mubr.msk.bf16.gmra.mxu1 %vm101_vm0, %v1515_v6 }
  0x1f   :  { %1441 = vmatprep.mubr.msk.bf16.mxu0 %vm1707_vm2, %v1706_v8 }
  0xc6   :  { %v148_v20 = vpop.f32.mrf.mxu0 }
  0xc7   :  { %v149_v21 = vadd.f32 %v148_v20, %v1815_v18 }
  0xc8   :  { %v150_v22 = vpop.f32.mrf.mxu0 }
  0xc9   :  { %v1305_v23 = vmul.f32 -1.442695, %v149_v21  ;;  %v151_v24 = vadd.f32 %v150_v22, %v1818_v19 }
  0xca   :  { %v152_v25 = vpop.f32.mrf.mxu0 }
  0xcb   :  { %1533 = vpow2.f32 %v1305_v23  ;;  %v1313_v26 = vmul.f32 -1.442695, %v151_v24  ;;  %v153_v27 = vadd.f32 %v152_v25, %v1815_v18 }
  0xcc   :  { %v154_v28 = vpop.f32.mrf.mxu0 }
  0xcd   :  { %1535 = vpow2.f32 %v1313_v26  ;;  %v1306_v29 = vmul.f32 -1.442695, %v153_v27  ;;  %v155_v30 = vadd.f32 %v154_v28, %v1818_v19  ;;  %v1365_v26 = vld [vmem:[%s2047_s1] sm:$0xff]  }
  0xce   :  { %v158_v31 = vpop.f32.mrf.mxu0 }
  0xcf   :  { %1537 = vpow2.f32 %v1306_v29  ;;  %v1314_v32 = vmul.f32 -1.442695, %v155_v30  ;;  %v159_v33 = vadd.f32 %v158_v31, %v1815_v18  ;;  %v1367_v30 = vunpack.c.h.bf16 %v1365_v26 }
  0xd0   :  { %v160_v34 = vpop.f32.mrf.mxu0 }
  0xd1   :  { %1539 = vpow2.f32 %v1314_v32  ;;  %v1307_v35 = vmul.f32 -1.442695, %v159_v33  ;;  %v161_v36 = vadd.f32 %v160_v34, %v1818_v19 }
  0xd2   :  { %v162_v37 = vpop.f32.mrf.mxu0 }
  0xd3   :  { %1541 = vpow2.f32 %v1307_v35  ;;  %v1315_v38 = vmul.f32 -1.442695, %v161_v36  ;;  %v163_v39 = vadd.f32 %v162_v37, %v1815_v18  ;;  %v484_v36 = vld [vmem:[#allocation2] sm:$0xff] }
  0xd4   :  { %v164_v40 = vpop.f32.mrf.mxu0 }
  0xd5   :  { %1543 = vpow2.f32 %v1315_v38  ;;  %v1308_v41 = vmul.f32 -1.442695, %v163_v39  ;;  %v165_v42 = vadd.f32 %v164_v40, %v1818_v19 }
  0xd6   :  { %v168_v43 = vpop.f32.mrf.mxu0 }
  0xd7   :  { %1545 = vpow2.f32 %v1308_v41  ;;  %v1316_v44 = vmul.f32 -1.442695, %v165_v42  ;;  %v169_v45 = vadd.f32 %v168_v43, %v1815_v18  ;;  %v1380_v43 = vld [vmem:[%s2047_s1 + $0x8] sm:$0xff]  }
  0xd8   :  { %v1534_v46 = vpop.eup %1533  ;;  %v170_v47 = vpop.f32.mrf.mxu0 }
  0xd9   :  { %v276_v48 = vadd.f32 1.0, %v1534_v46  ;;  %1547 = vpow2.f32 %v1316_v44  ;;  %v1309_v49 = vmul.f32 -1.442695, %v169_v45  ;;  %v171_v50 = vadd.f32 %v170_v47, %v1818_v19 }
  0xda   :  { %v1536_v51 = vpop.eup %1535  ;;  %v172_v52 = vpop.f32.mrf.mxu0 }
  0xdb   :  { %1549 = vrcp.f32 %v276_v48  ;;  %v333_v53 = vadd.f32 1.0, %v1536_v51  ;;  %v1317_v54 = vmul.f32 -1.442695, %v171_v50  ;;  %v173_v55 = vadd.f32 %v172_v52, %v1815_v18 }
  0xdc   :  { %v1538_v56 = vpop.eup %1537  ;;  %1551 = vpow2.f32 %v1309_v49  ;;  %v174_v57 = vpop.f32.mrf.mxu0  ;;  %v1370_v51 = vunpack.c.l.bf16 %v1380_v43  ;;  %v1371_v52 = vunpack.c.h.bf16 %v1380_v43 }
  0xdd   :  { %1553 = vrcp.f32 %v333_v53  ;;  %v277_v58 = vadd.f32 1.0, %v1538_v56  ;;  %v1310_v59 = vmul.f32 -1.442695, %v173_v55  ;;  %v175_v60 = vadd.f32 %v174_v57, %v1818_v19 }
  0xde   :  { %v1540_v61 = vpop.eup %1539  ;;  %1555 = vpow2.f32 %v1317_v54  ;;  %v178_v62 = vpop.f32.mrf.mxu0 }
  0xdf   :  { %1557 = vrcp.f32 %v277_v58  ;;  %v334_v63 = vadd.f32 1.0, %v1540_v61  ;;  %v1318_v0 = vmul.f32 -1.442695, %v175_v60  ;;  %v179_v1 = vadd.f32 %v178_v62, %v1815_v18  ;;  %v1381_v61 = vld [vmem:[%s2047_s1 + $0x10] sm:$0xff]  }
  0xe0   :  { %v1542_v2 = vpop.eup %1541  ;;  %1559 = vpow2.f32 %v1310_v59  ;;  %v180_v3 = vpop.f32.mrf.mxu0 }
  0xe1   :  { %1561 = vrcp.f32 %v334_v63  ;;  %v278_v4 = vadd.f32 1.0, %v1542_v2  ;;  %v1311_v5 = vmul.f32 -1.442695, %v179_v1  ;;  %v181_v6 = vadd.f32 %v180_v3, %v1818_v19 }
  0xe2   :  { %v1544_v7 = vpop.eup %1543  ;;  %1563 = vpow2.f32 %v1318_v0  ;;  %v182_v9 = vpop.f32.mrf.mxu0  ;;  %v1374_v1 = vunpack.c.l.bf16 %v1381_v61  ;;  %v1375_v3 = vunpack.c.h.bf16 %v1381_v61 }
  0xe3   :  { %1565 = vrcp.f32 %v278_v4  ;;  %v335_v10 = vadd.f32 1.0, %v1544_v7  ;;  %v1319_v11 = vmul.f32 -1.442695, %v181_v6  ;;  %v183_v12 = vadd.f32 %v182_v9, %v1815_v18  ;;  %v1382_v7 = vld [vmem:[%s2047_s1 + $0x18] sm:$0xff]   ;;  %s1708_s1 = smov 96  }
  0xe4   :  { %v1546_v13 = vpop.eup %1545  ;;  %1567 = vpow2.f32 %v1311_v5  ;;  %v184_v15 = vpop.f32.mrf.mxu0 }
  0xe5   :  { %1569 = vrcp.f32 %v335_v10  ;;  %v279_v17 = vadd.f32 1.0, %v1546_v13  ;;  %v1312_v20 = vmul.f32 -1.442695, %v183_v12  ;;  %v185_v21 = vadd.f32 %v184_v15, %v1818_v19 }
  0xe6   :  { %v1548_v22 = vpop.eup %1547  ;;  %1571 = vpow2.f32 %v1319_v11  ;;  %v1366_v19 = vunpack.c.l.bf16 %v1365_v26  ;;  %v1378_v12 = vunpack.c.l.bf16 %v1382_v7  ;;  %v1379_v15 = vunpack.c.h.bf16 %v1382_v7  ;;  %v1421_v26 = vpop.f32.mrf.mxu1 }
  0xe7   :  { %1573 = vrcp.f32 %v279_v17  ;;  %v336_v23 = vadd.f32 1.0, %v1548_v22  ;;  %v1320_v24 = vmul.f32 -1.442695, %v185_v21 }
  0xe8   :  { %v1550_v25 = vpop.eup %1549  ;;  %1575 = vpow2.f32 %v1312_v20 }
  0xe9   :  { %v1552_v18 = vpop.eup %1551  ;;  %301 = vst.msk [vmem:[#allocation4] sm:$0xff] %vm33_vm1, %v1550_v25  ;;  %1577 = vrcp.f32 %v336_v23 }
  0xea   :  { %v1554_v27 = vpop.eup %1553  ;;  %v280_v28 = vadd.f32 1.0, %v1552_v18  ;;  %1579 = vpow2.f32 %v1320_v24  ;;  %v60_v24 = vsub.s32 2, %v1805_v14 }
  0xeb   :  { %v1556_v29 = vpop.eup %1555  ;;  %v373_v38 = vmul.f32 %v1554_v27, %v1366_v19  ;;  %v221_v27 = vpop.f32.mrf.mxu1 }
  0xec   :  { %v1558_v31 = vpop.eup %1557  ;;  %1581 = vrcp.f32 %v280_v28  ;;  %v337_v32 = vadd.f32 1.0, %v1556_v29  ;;  %v1867_v25 = vrot.slane %v1811_v16, %v60_v24 }
  0xed   :  { %v1560_v33 = vpop.eup %1559  ;;  %302 = vst.msk [vmem:[#allocation4 + $0x8] sm:$0xff] %vm33_vm1, %v1558_v31  ;;  %v1422_v28 = vpop.f32.mrf.mxu1 }
  0xee   :  { %v1562_v34 = vpop.eup %1561  ;;  %1583 = vrcp.f32 %v337_v32  ;;  %v281_v35 = vadd.f32 1.0, %v1560_v33  ;;  %v230_v18 = vadd.f32 %v1421_v26, %v1867_v25  ;;  %v233_v29 = vadd.f32 %v1422_v28, %v1867_v25 }
  0xef   :  { %v1564_v37 = vpop.eup %1563  ;;  %v374_v39 = vmul.f32 %v1562_v34, %v1367_v30  ;;  %v224_v19 = vpop.f32.mrf.mxu1 }
  0xf0   :  { %v1566_v40 = vpop.eup %1565  ;;  %1585 = vrcp.f32 %v281_v35  ;;  %v338_v41 = vadd.f32 1.0, %v1564_v37  ;;  %v486_v42 = vld [vmem:[#allocation4] sm:$0xff]  ;;  %v1872_v30 = vadd.f32 %v224_v19, %v1867_v25 }
  0xf1   :  { %v1568_v44 = vpop.eup %1567  ;;  %303 = vst.msk [vmem:[#allocation4 + $0x10] sm:$0xff] %vm33_vm1, %v1566_v40  ;;  %v381_v45 = vpack.c.bf16 %v374_v39, %v373_v38  ;;  %v487_v46 = vmul.f32 %v486_v42, %v484_v36  ;;  %v1425_v31 = vpop.f32.mrf.mxu1 }
  0xf2   :  { %v1570_v47 = vpop.eup %1569  ;;  %1587 = vrcp.f32 %v338_v41  ;;  %v282_v48 = vadd.f32 1.0, %v1568_v44  ;;  %v246_v32 = vadd.f32 %v1425_v31, %v1867_v25  ;;  %v222_v41 = vadd.f32 %v221_v27, %v1867_v25 }
  0xf3   :  { %v1572_v49 = vpop.eup %1571  ;;  %1429 = vmatprep.mubr.msk.bf16.mxu1 %vm386_vm4, %v381_v45  ;;  %v489_v50 = vpack.c.bf16 %v487_v46, %v487_v46  ;;  %v375_v59 = vmul.f32 %v1570_v47, %v1370_v51  ;;  %v237_v33 = vpop.f32.mrf.mxu1 }
  0xf4   :  { %v1574_v53 = vpop.eup %1573  ;;  %1589 = vrcp.f32 %v282_v48  ;;  %v339_v54 = vadd.f32 1.0, %v1572_v49  ;;  %v238_v14 = vadd.f32 %v237_v33, %v1867_v25  ;;  %v580_v7 = vld [vmem:[#allocation4 + $0x8] sm:$0xff] }
  0xf5   :  { %v1576_v55 = vpop.eup %1575  ;;  %304 = vst.msk [vmem:[#allocation4 + $0x18] sm:$0xff] %vm33_vm1, %v1574_v53  ;;  %1442 = vmatmul.mubr.msk.bf16.vlgmr.msra.gmra.mxu0 %vm33_vm1, %v489_v50  ;;  %v1426_v34 = vpop.f32.mrf.mxu1 }
  0xf6   :  { %v1578_v56 = vpop.eup %1577  ;;  %1591 = vrcp.f32 %v339_v54  ;;  %v283_v57 = vadd.f32 1.0, %v1576_v55  ;;  %1457 = vmatprep.mubr.msk.bf16.mxu0 %vm1707_vm2, %v1706_v8  ;;  %v249_v16 = vadd.f32 %v1426_v34, %v1867_v25 }
  0xf7   :  { %v1580_v58 = vpop.eup %1579  ;;  %v376_v60 = vmul.f32 %v1578_v56, %v1371_v52  ;;  %v1877_v37 = vpop.f32.mrf.mxu1 }
  0xf8   :  { %1593 = vrcp.f32 %v283_v57  ;;  %v340_v62 = vadd.f32 1.0, %v1580_v58 }
  0xf9   :  { %v1582_v63 = vpop.eup %1581  ;;  %v382_v0 = vpack.c.bf16 %v376_v60, %v375_v59 }
  0xfa   :  { %305 = vst.msk [vmem:[#allocation4 + $0x20] sm:$0xff] %vm33_vm1, %v1582_v63  ;;  %1595 = vrcp.f32 %v340_v62  ;;  %v485_v62 = vld [vmem:[#allocation3] sm:$0xff] }
  0xfb   :  { %v1584_v2 = vpop.eup %1583  ;;  %1430 = vmatmul.mubr.msk.bf16.vlgmr.msra.gmra.mxu1 %vm386_vm4, %v382_v0 }
  0xfc   :  { %v377_v5 = vmul.f32 %v1584_v2, %v1374_v1  ;;  %v1519_v2 = vld [vmem:[%s2051_s5 + $0x8] sm:$0xff]  }
  0xfd   :  { %v1586_v4 = vpop.eup %1585  ;;  %1446 = vmatpush3.bf16.msra.mxu1 %v1519_v2 }
  0xfe   :  { %306 = vst.msk [vmem:[#allocation4 + $0x28] sm:$0xff] %vm33_vm1, %v1586_v4  ;;  %1447 = vmatprep.subr.bf16.mxu1 %v1706_v8 }
  0xff   :  { %v1588_v6 = vpop.eup %1587 }
 0x100   :  { %v378_v9 = vmul.f32 %v1588_v6, %v1375_v3  ;;  %v1520_v3 = vld [vmem:[%s2051_s5] sm:$0xff]  }
 0x101   :  { %v1590_v10 = vpop.eup %1589  ;;  %1448 = vmatpush3.bf16.msra.mxu1 %v1520_v3 }
 0x102   :  { %307 = vst.msk [vmem:[#allocation4 + $0x30] sm:$0xff] %vm33_vm1, %v1590_v10  ;;  %v383_v11 = vpack.c.bf16 %v378_v9, %v377_v5  ;;  %1461 = vmatprep.subr.bf16.mxu1 %v1706_v8 }
 0x103   :  { %v1592_v13 = vpop.eup %1591 }
 0x104   :  { %1433 = vmatprep.mubr.msk.bf16.mxu1 %vm386_vm4, %v383_v11  ;;  %v379_v20 = vmul.f32 %v1592_v13, %v1378_v12 }
 0x105   :  { %v1594_v17 = vpop.eup %1593 }
 0x106   :  { %308 = vst.msk [vmem:[#allocation4 + $0x38] sm:$0xff] %vm33_vm1, %v1594_v17 }
 0x107   :  { %v1596_v21 = vpop.eup %1595 }
 0x108   :  { %v380_v22 = vmul.f32 %v1596_v21, %v1379_v15 }
 0x10a   :  { %v384_v23 = vpack.c.bf16 %v380_v22, %v379_v20 }
 0x10c   :  { %1434 = vmatmul.mubr.msk.bf16.gmra.mxu1 %vm386_vm4, %v384_v23 }
 0x10d   :  { %1449 = vmatprep.mubr.msk.bf16.mxu1 %vm1707_vm2, %v1706_v8 }
 0x1b5   :  { %v543_v35 = vpop.f32.mrf.mxu0 }
 0x1b7   :  { %v1443_v36 = vpop.f32.mrf.mxu0 }
 0x1b9   :  { %v546_v38 = vpop.f32.mrf.mxu0 }
 0x1bb   :  { %v1431_v39 = vpop.f32.mrf.mxu1  ;;  %v1444_v40 = vpop.f32.mrf.mxu0 }
 0x1bc   :  { %v1880_v42 = vadd.f32 %v1431_v39, %v230_v18 }
 0x1bd   :  { %v437_v43 = vpop.f32.mrf.mxu1 }
 0x1be   :  { %v468_v44 = vadd.f32 %v437_v43, %v222_v41 }
 0x1bf   :  { %v1432_v45 = vpop.f32.mrf.mxu1 }
 0x1c0   :  { %v549_v46 = vadd.f32 %v543_v35, %v468_v44  ;;  %v1882_v47 = vadd.f32 %v1432_v45, %v233_v29  ;;  %v676_v35 = vld [vmem:[#allocation4 + $0x10] sm:$0xff] }
 0x1c1   :  { %v440_v48 = vpop.f32.mrf.mxu1 }
 0x1c2   :  { %1597 = vtanh.f32 %v549_v46  ;;  %v1328_v56 = vmul.f32 -1.442695, %v549_v46  ;;  %v469_v13 = vadd.f32 %v440_v48, %v1872_v30 }
 0x1c4   :  { %1599 = vpow2.f32 %v1328_v56 }
 0x1cc   :  { %v1435_v49 = vpop.f32.mrf.mxu1 }
 0x1cd   :  { %v1884_v50 = vadd.f32 %v1435_v49, %v246_v32  ;;  %v1521_v32 = vld [vmem:[%s2051_s5 + $0x8] sm:$0xff]  }
 0x1ce   :  { %v453_v51 = vpop.f32.mrf.mxu1  ;;  %1454 = vmatpush3.bf16.msra.mxu0 %v1521_v32 }
 0x1cf   :  { %v1598_v52 = vpop.eup %1597  ;;  %v1886_v53 = vadd.f32 %v453_v51, %v238_v14  ;;  %1455 = vmatprep.subr.bf16.mxu0 %v1706_v8  ;;  %v1522_v14 = vld [vmem:[%s2051_s5] sm:$0xff]  }
 0x1d0   :  { %v1436_v54 = vpop.f32.mrf.mxu1  ;;  %559 = vrot.lane.b32.xlu0 %v1598_v52, %s1708_s1 }
 0x1d1   :  { %v1889_v55 = vadd.f32 %v1436_v54, %v249_v16  ;;  %v1600_v57 = vpop.eup %1599 }
 0x1d2   :  { %v553_v58 = vadd.f32 1.0, %v1600_v57  ;;  %v1909_v12 = vpop.f32.mrf.mxu1  ;;  %1456 = vmatpush3.bf16.msra.mxu0 %v1522_v14 }
 0x1d3   :  { %1469 = vmatprep.subr.bf16.mxu0 %v1706_v8 }
 0x1d4   :  { %1601 = vrcp.f32 %v553_v58 }
 0x1e1   :  { %v1602_v59 = vpop.eup %1601 }
 0x1e2   :  { %v557_v63 = vmul.f32 %v1602_v59, %v485_v62 }
 0x242   :  { %v560_v60 = vpop.permute.xlu0 %559 }
 0x243   :  { %v562_v61 = vmul.f32 %v1602_v59, %v560_v60 }
 0x245   :  { %564 = vrot.lane.b32.xlu0 %v562_v61, %s1708_s1  ;;  %v1524_v61 = vld [vmem:[%s2051_s5] sm:$0xff]  }
 0x2b7   :  { %v565_v0 = vpop.permute.xlu0 %564 }
 0x2b8   :  { %v567_v1 = vadd.f32 %v565_v0, %v557_v63  ;;  %v772_v0 = vld [vmem:[#allocation4 + $0x18] sm:$0xff] }
 0x2ba   :  { %1603 = vtanh.f32 %v567_v1 }
 0x2c7   :  { %v1604_v4 = vpop.eup %1603 }
 0x2c8   :  { %570 = vrot.lane.b32.xlu1 %v1604_v4, %s1708_s1 }
 0x33a   :  { %v571_v5 = vpop.permute.xlu1 %570 }
 0x33b   :  { %v573_v6 = vmul.f32 %v1602_v59, %v571_v5  ;;  %v1523_v59 = vld [vmem:[%s2051_s5 + $0x8] sm:$0xff]  }
 0x33d   :  { %575 = vrot.lane.b32.xlu1 %v573_v6, %s1709_s13 }
 0x3af   :  { %v576_v9 = vpop.permute.xlu1 %575 }
 0x3b0   :  { %578 = vst.msk [vmem:[%s2052_s6] sm:$0xff] %vm33_vm1, %v576_v9  ;;  %v581_v10 = vmul.f32 %v580_v7, %v576_v9 }
 0x3b2   :  { %v584_v11 = vpack.c.bf16 %v581_v10, %v581_v10 }
 0x3b4   :  { %1450 = vmatmul.mubr.msk.bf16.vlgmr.msra.gmra.mxu1 %vm33_vm1, %v584_v11 }
 0x3b5   :  { %1465 = vmatprep.mubr.msk.bf16.mxu1 %vm1707_vm2, %v1706_v8  ;;  %1462 = vmatpush3.bf16.msra.mxu1 %v1523_v59 }
 0x3b6   :  { %1463 = vmatprep.subr.bf16.mxu1 %v1706_v8 }
 0x3b9   :  { %1464 = vmatpush3.bf16.msra.mxu1 %v1524_v61 }
 0x3ba   :  { %1477 = vmatprep.subr.bf16.mxu1 %v1706_v8 }
 0x474   :  { %v638_v15 = vpop.f32.mrf.mxu1 }
 0x475   :  { %v644_v17 = vadd.f32 %v638_v15, %v469_v13 }
 0x476   :  { %v1451_v20 = vpop.f32.mrf.mxu1 }
 0x477   :  { %1605 = vtanh.f32 %v644_v17  ;;  %v1332_v24 = vmul.f32 -1.442695, %v644_v17 }
 0x478   :  { %v641_v21 = vpop.f32.mrf.mxu1 }
 0x479   :  { %1607 = vpow2.f32 %v1332_v24  ;;  %v1525_v24 = vld [vmem:[%s2051_s5 + $0x8] sm:$0xff]  }
 0x47a   :  { %v1452_v22 = vpop.f32.mrf.mxu1 }
 0x484   :  { %v1606_v23 = vpop.eup %1605 }
 0x485   :  { %654 = vrot.lane.b32.xlu0 %v1606_v23, %s1708_s1 }
 0x486   :  { %v1608_v26 = vpop.eup %1607 }
 0x487   :  { %v648_v18 = vadd.f32 1.0, %v1608_v26 }
 0x489   :  { %1609 = vrcp.f32 %v648_v18  ;;  %v1526_v18 = vld [vmem:[%s2051_s5] sm:$0xff]  }
 0x496   :  { %v1610_v27 = vpop.eup %1609 }
 0x497   :  { %v652_v19 = vmul.f32 %v1610_v27, %v567_v1 }
 0x4f7   :  { %v655_v28 = vpop.permute.xlu0 %654 }
 0x4f8   :  { %v657_v29 = vmul.f32 %v1610_v27, %v655_v28 }
 0x4fa   :  { %659 = vrot.lane.b32.xlu1 %v657_v29, %s1708_s1  ;;  %v868_v29 = vld [vmem:[#allocation4 + $0x20] sm:$0xff] }
 0x56c   :  { %v660_v30 = vpop.permute.xlu1 %659 }
 0x56d   :  { %v662_v31 = vadd.f32 %v660_v30, %v652_v19 }
 0x56f   :  { %1611 = vtanh.f32 %v662_v31 }
 0x57c   :  { %v1612_v33 = vpop.eup %1611 }
 0x57d   :  { %665 = vrot.lane.b32.xlu0 %v1612_v33, %s1708_s1 }
 0x5ef   :  { %v666_v34 = vpop.permute.xlu0 %665 }
 0x5f0   :  { %v668_v16 = vmul.f32 %v1610_v27, %v666_v34 }
 0x5f2   :  { %670 = vrot.lane.b32.xlu1 %v668_v16, %s1709_s13 }
 0x664   :  { %v671_v36 = vpop.permute.xlu1 %670 }
 0x665   :  { %1333 = vst.msk [vmem:[%s2052_s6 + $0x8] sm:$0xff] %vm33_vm1, %v671_v36  ;;  %v677_v38 = vmul.f32 %v676_v35, %v671_v36 }
 0x667   :  { %v680_v39 = vpack.c.bf16 %v677_v38, %v677_v38 }
 0x669   :  { %1458 = vmatmul.mubr.msk.bf16.vlgmr.msra.gmra.mxu0 %vm33_vm1, %v680_v39 }
 0x66a   :  { %1473 = vmatprep.mubr.msk.bf16.mxu0 %vm1707_vm2, %v1706_v8  ;;  %1470 = vmatpush3.bf16.msra.mxu0 %v1525_v24 }
 0x66b   :  { %1471 = vmatprep.subr.bf16.mxu0 %v1706_v8 }
 0x66e   :  { %1472 = vmatpush3.bf16.msra.mxu0 %v1526_v18 }
 0x66f   :  { %1485 = vmatprep.subr.bf16.mxu0 %v1706_v8 }
 0x729   :  { %v734_v40 = vpop.f32.mrf.mxu0 }
 0x72a   :  { %v740_v41 = vadd.f32 %v734_v40, %v1880_v42 }
 0x72b   :  { %v1459_v43 = vpop.f32.mrf.mxu0 }
 0x72c   :  { %1613 = vtanh.f32 %v740_v41  ;;  %v1337_v48 = vmul.f32 -1.442695, %v740_v41 }
 0x72d   :  { %v737_v44 = vpop.f32.mrf.mxu0 }
 0x72e   :  { %1615 = vpow2.f32 %v1337_v48 }
 0x72f   :  { %v1460_v45 = vpop.f32.mrf.mxu0 }
 0x739   :  { %v1614_v46 = vpop.eup %1613 }
 0x73a   :  { %750 = vrot.lane.b32.xlu0 %v1614_v46, %s1708_s1  ;;  %v1527_v46 = vld [vmem:[%s2051_s5 + $0x8] sm:$0xff]  }
 0x73b   :  { %v1616_v49 = vpop.eup %1615 }
 0x73c   :  { %v744_v51 = vadd.f32 1.0, %v1616_v49  ;;  %v1528_v49 = vld [vmem:[%s2051_s5] sm:$0xff]  }
 0x73e   :  { %1617 = vrcp.f32 %v744_v51 }
 0x74b   :  { %v1618_v52 = vpop.eup %1617 }
 0x74c   :  { %v748_v57 = vmul.f32 %v1618_v52, %v662_v31 }
 0x7ac   :  { %v751_v54 = vpop.permute.xlu0 %750 }
 0x7ad   :  { %v753_v56 = vmul.f32 %v1618_v52, %v751_v54  ;;  %v964_v54 = vld [vmem:[#allocation4 + $0x28] sm:$0xff] }
 0x7af   :  { %755 = vrot.lane.b32.xlu1 %v753_v56, %s1708_s1 }
 0x821   :  { %v756_v58 = vpop.permute.xlu1 %755 }
 0x822   :  { %v758_v42 = vadd.f32 %v756_v58, %v748_v57 }
 0x824   :  { %1619 = vtanh.f32 %v758_v42 }
 0x831   :  { %v1620_v60 = vpop.eup %1619 }
 0x832   :  { %761 = vrot.lane.b32.xlu0 %v1620_v60, %s1708_s1 }
 0x8a4   :  { %v762_v62 = vpop.permute.xlu0 %761 }
 0x8a5   :  { %v764_v63 = vmul.f32 %v1618_v52, %v762_v62 }
 0x8a7   :  { %766 = vrot.lane.b32.xlu1 %v764_v63, %s1709_s13 }
 0x919   :  { %v767_v1 = vpop.permute.xlu1 %766 }
 0x91a   :  { %1338 = vst.msk [vmem:[%s2052_s6 + $0x10] sm:$0xff] %vm33_vm1, %v767_v1  ;;  %v773_v2 = vmul.f32 %v772_v0, %v767_v1 }
 0x91c   :  { %v776_v3 = vpack.c.bf16 %v773_v2, %v773_v2 }
 0x91e   :  { %1466 = vmatmul.mubr.msk.bf16.vlgmr.msra.gmra.mxu1 %vm33_vm1, %v776_v3 }
 0x91f   :  { %1481 = vmatprep.mubr.msk.bf16.mxu1 %vm1707_vm2, %v1706_v8  ;;  %1478 = vmatpush3.bf16.msra.mxu1 %v1527_v46 }
 0x920   :  { %1479 = vmatprep.subr.bf16.mxu1 %v1706_v8 }
 0x923   :  { %1480 = vmatpush3.bf16.msra.mxu1 %v1528_v49 }
 0x924   :  { %1493 = vmatprep.subr.bf16.mxu1 %v1706_v8 }
 0x9de   :  { %v830_v4 = vpop.f32.mrf.mxu1 }
 0x9df   :  { %v836_v5 = vadd.f32 %v830_v4, %v1882_v47 }
 0x9e0   :  { %v1467_v6 = vpop.f32.mrf.mxu1 }
 0x9e1   :  { %1621 = vtanh.f32 %v836_v5  ;;  %v1342_v11 = vmul.f32 -1.442695, %v836_v5 }
 0x9e2   :  { %v833_v7 = vpop.f32.mrf.mxu1 }
 0x9e3   :  { %1623 = vpow2.f32 %v1342_v11  ;;  %v1530_v11 = vld [vmem:[%s2051_s5] sm:$0xff]  }
 0x9e4   :  { %v1468_v9 = vpop.f32.mrf.mxu1 }
 0x9e5   :  { %v1529_v9 = vld [vmem:[%s2051_s5 + $0x8] sm:$0xff]  }
 0x9ee   :  { %v1622_v10 = vpop.eup %1621 }
 0x9ef   :  { %846 = vrot.lane.b32.xlu0 %v1622_v10, %s1708_s1 }
 0x9f0   :  { %v1624_v13 = vpop.eup %1623 }
 0x9f1   :  { %v840_v15 = vadd.f32 1.0, %v1624_v13 }
 0x9f3   :  { %1625 = vrcp.f32 %v840_v15 }
 0xa00   :  { %v1626_v17 = vpop.eup %1625 }
 0xa01   :  { %v844_v22 = vmul.f32 %v1626_v17, %v758_v42  ;;  %v241_v42 = vadd.f32 %v1877_v37, %v1867_v25 }
 0xa03   :  { %v473_v59 = vadd.f32 %v1909_v12, %v241_v42 }
 0xa61   :  { %v847_v20 = vpop.permute.xlu0 %846 }
 0xa62   :  { %v849_v21 = vmul.f32 %v1626_v17, %v847_v20 }
 0xa64   :  { %851 = vrot.lane.b32.xlu1 %v849_v21, %s1708_s1 }
 0xad6   :  { %v852_v23 = vpop.permute.xlu1 %851 }
 0xad7   :  { %v854_v47 = vadd.f32 %v852_v23, %v844_v22 }
 0xad9   :  { %1627 = vtanh.f32 %v854_v47 }
 0xae6   :  { %v1628_v26 = vpop.eup %1627 }
 0xae7   :  { %857 = vrot.lane.b32.xlu0 %v1628_v26, %s1708_s1 }
 0xb59   :  { %v858_v27 = vpop.permute.xlu0 %857 }
 0xb5a   :  { %v860_v28 = vmul.f32 %v1626_v17, %v858_v27  ;;  %v1060_v17 = vld [vmem:[#allocation4 + $0x30] sm:$0xff] }
 0xb5c   :  { %862 = vrot.lane.b32.xlu1 %v860_v28, %s1709_s13 }
 0xbce   :  { %v863_v19 = vpop.permute.xlu1 %862 }
 0xbcf   :  { %1343 = vst.msk [vmem:[%s2052_s6 + $0x18] sm:$0xff] %vm33_vm1, %v863_v19  ;;  %v869_v30 = vmul.f32 %v868_v29, %v863_v19 }
 0xbd1   :  { %v872_v31 = vpack.c.bf16 %v869_v30, %v869_v30 }
 0xbd3   :  { %1474 = vmatmul.mubr.msk.bf16.vlgmr.msra.gmra.mxu0 %vm33_vm1, %v872_v31 }
 0xbd4   :  { %1489 = vmatprep.mubr.msk.bf16.mxu0 %vm1707_vm2, %v1706_v8  ;;  %1486 = vmatpush3.bf16.msra.mxu0 %v1529_v9 }
 0xbd5   :  { %1487 = vmatprep.subr.bf16.mxu0 %v1706_v8 }
 0xbd8   :  { %1488 = vmatpush3.bf16.msra.mxu0 %v1530_v11 }
 0xc93   :  { %v926_v32 = vpop.f32.mrf.mxu0 }
 0xc94   :  { %v932_v33 = vadd.f32 %v926_v32, %v1886_v53 }
 0xc95   :  { %v1475_v14 = vpop.f32.mrf.mxu0 }
 0xc96   :  { %1629 = vtanh.f32 %v932_v33  ;;  %v1347_v36 = vmul.f32 -1.442695, %v932_v33 }
 0xc97   :  { %v929_v34 = vpop.f32.mrf.mxu0 }
 0xc98   :  { %1631 = vpow2.f32 %v1347_v36  ;;  %v1531_v34 = vld [vmem:[%s2051_s5 + $0x8] sm:$0xff]  }
 0xc99   :  { %v1476_v16 = vpop.f32.mrf.mxu0 }
 0xca3   :  { %v1630_v35 = vpop.eup %1629 }
 0xca4   :  { %942 = vrot.lane.b32.xlu0 %v1630_v35, %s1708_s1  ;;  %v1532_v35 = vld [vmem:[%s2051_s5] sm:$0xff]   ;;  %s1710_s5 = smov [#allocation8]  }
 0xca5   :  { %v1632_v38 = vpop.eup %1631  ;;  %s1276_s3 = sshll.u32 %s1710_s5, 4  ;;  %s1277_s3 = int_to_ptr.vmem [resolvable:$true] %s1276_s3 }
 0xca6   :  { %v936_v39 = vadd.f32 1.0, %v1632_v38  ;;  %s1661_s4 = scalar_lea.vmem %s1277_s3, 128  ;;  %p1666_p1 = scmp.lt.s32.totalorder %s1277_s3, %s1277_s3 }
 0xca7   :  { %p1662_p0 = scmp.ne.s32.totalorder %s1277_s3, %s1661_s4  ;;  %p1667_p2 = scmp.lt.s32.totalorder %s1661_s4, %s1661_s4 }
 0xca8   :  { %1633 = vrcp.f32 %v936_v39  ;;  %v1156_v39 = vld [vmem:[#allocation4 + $0x38] sm:$0xff] }
 0xca9   :  { %p1668_p3 = por %p1667_p2, %p1666_p1 }
 0xcab   :  { %p1669_p4 = pnand %p1668_p3, %p1662_p0 }
 0xcb5   :  { %v1634_v40 = vpop.eup %1633 }
 0xcb6   :  { %v940_v44 = vmul.f32 %v1634_v40, %v854_v47 }
 0xd16   :  { %v943_v41 = vpop.permute.xlu0 %942 }
 0xd17   :  { %v945_v43 = vmul.f32 %v1634_v40, %v943_v41 }
 0xd19   :  { %947 = vrot.lane.b32.xlu1 %v945_v43, %s1708_s1 }
 0xd8b   :  { %v948_v45 = vpop.permute.xlu1 %947 }
 0xd8c   :  { %v950_v53 = vadd.f32 %v948_v45, %v940_v44 }
 0xd8e   :  { %1635 = vtanh.f32 %v950_v53 }
 0xd9b   :  { %v1636_v48 = vpop.eup %1635 }
 0xd9c   :  { %953 = vrot.lane.b32.xlu0 %v1636_v48, %s1708_s1 }
 0xe0e   :  { %v954_v51 = vpop.permute.xlu0 %953 }
 0xe0f   :  { %v956_v52 = vmul.f32 %v1634_v40, %v954_v51 }
 0xe11   :  { %958 = vrot.lane.b32.xlu1 %v956_v52, %s1709_s13 }
 0xe83   :  { %v959_v56 = vpop.permute.xlu1 %958 }
 0xe84   :  { %1348 = vst.msk [vmem:[%s2052_s6 + $0x20] sm:$0xff] %vm33_vm1, %v959_v56  ;;  %v965_v57 = vmul.f32 %v964_v54, %v959_v56 }
 0xe86   :  { %v968_v58 = vpack.c.bf16 %v965_v57, %v965_v57 }
 0xe88   :  { %1482 = vmatmul.mubr.msk.bf16.vlgmr.msra.gmra.mxu1 %vm33_vm1, %v968_v58 }
 0xe89   :  { %1497 = vmatprep.mubr.msk.bf16.mxu1 %vm1707_vm2, %v1706_v8  ;;  %1494 = vmatpush3.bf16.msra.mxu1 %v1531_v34 }
 0xe8a   :  { %1495 = vmatprep.subr.bf16.mxu1 %v1706_v8 }
 0xe8d   :  { %1496 = vmatpush3.bf16.msra.mxu1 %v1532_v35 }
 0xf48   :  { %v1022_v60 = vpop.f32.mrf.mxu1 }
 0xf49   :  { %v1028_v61 = vadd.f32 %v1022_v60, %v473_v59 }
 0xf4a   :  { %v1483_v62 = vpop.f32.mrf.mxu1 }
 0xf4b   :  { %1637 = vtanh.f32 %v1028_v61  ;;  %v1352_v2 = vmul.f32 -1.442695, %v1028_v61 }
 0xf4c   :  { %v1025_v63 = vpop.f32.mrf.mxu1 }
 0xf4d   :  { %1639 = vpow2.f32 %v1352_v2 }
 0xf4e   :  { %v1484_v0 = vpop.f32.mrf.mxu1 }
 0xf58   :  { %v1638_v1 = vpop.eup %1637 }
 0xf59   :  { %1038 = vrot.lane.b32.xlu0 %v1638_v1, %s1708_s1 }
 0xf5a   :  { %v1640_v3 = vpop.eup %1639 }
 0xf5b   :  { %v1032_v4 = vadd.f32 1.0, %v1640_v3 }
 0xf5d   :  { %1641 = vrcp.f32 %v1032_v4 }
 0xf6a   :  { %v1642_v5 = vpop.eup %1641 }
 0xf6b   :  { %v1036_v25 = vmul.f32 %v1642_v5, %v950_v53 }
 0xfcb   :  { %v1039_v6 = vpop.permute.xlu0 %1038 }
 0xfcc   :  { %v1041_v7 = vmul.f32 %v1642_v5, %v1039_v6 }
 0xfce   :  { %1043 = vrot.lane.b32.xlu1 %v1041_v7, %s1708_s1 }
0x1040   :  { %v1044_v37 = vpop.permute.xlu1 %1043 }
0x1041   :  { %v1046_v12 = vadd.f32 %v1044_v37, %v1036_v25 }
0x1043   :  { %1643 = vtanh.f32 %v1046_v12 }
0x1050   :  { %v1644_v10 = vpop.eup %1643 }
0x1051   :  { %1049 = vrot.lane.b32.xlu0 %v1644_v10, %s1708_s1 }
0x10c3   :  { %v1050_v13 = vpop.permute.xlu0 %1049 }
0x10c4   :  { %v1052_v15 = vmul.f32 %v1642_v5, %v1050_v13 }
0x10c6   :  { %1054 = vrot.lane.b32.xlu1 %v1052_v15, %s1709_s13 }
0x1138   :  { %v1055_v20 = vpop.permute.xlu1 %1054 }
0x1139   :  { %1353 = vst.msk [vmem:[%s2052_s6 + $0x28] sm:$0xff] %vm33_vm1, %v1055_v20  ;;  %v1061_v21 = vmul.f32 %v1060_v17, %v1055_v20 }
0x113b   :  { %v1064_v22 = vpack.c.bf16 %v1061_v21, %v1061_v21 }
0x113d   :  { %1490 = vmatmul.mubr.msk.bf16.vlgmr.msra.gmra.mxu0 %vm33_vm1, %v1064_v22 }
0x11fd   :  { %v1118_v23 = vpop.f32.mrf.mxu0 }
0x11fe   :  { %v1124_v47 = vadd.f32 %v1118_v23, %v1884_v50 }
0x11ff   :  { %v1491_v24 = vpop.f32.mrf.mxu0 }
0x1200   :  { %1645 = vtanh.f32 %v1124_v47  ;;  %v1357_v28 = vmul.f32 -1.442695, %v1124_v47 }
0x1201   :  { %v1121_v26 = vpop.f32.mrf.mxu0 }
0x1202   :  { %1647 = vpow2.f32 %v1357_v28 }
0x1203   :  { %v1492_v18 = vpop.f32.mrf.mxu0 }
0x120d   :  { %v1646_v27 = vpop.eup %1645 }
0x120e   :  { %1134 = vrot.lane.b32.xlu0 %v1646_v27, %s1708_s1 }
0x120f   :  { %v1648_v29 = vpop.eup %1647 }
0x1210   :  { %v1128_v19 = vadd.f32 1.0, %v1648_v29 }
0x1212   :  { %1649 = vrcp.f32 %v1128_v19 }
0x121f   :  { %v1650_v30 = vpop.eup %1649 }
0x1220   :  { %v1132_v33 = vmul.f32 %v1650_v30, %v1046_v12 }
0x1280   :  { %v1135_v31 = vpop.permute.xlu0 %1134 }
0x1281   :  { %v1137_v32 = vmul.f32 %v1650_v30, %v1135_v31 }
0x1283   :  { %1139 = vrot.lane.b32.xlu1 %v1137_v32, %s1708_s1 }
0x12f5   :  { %v1140_v14 = vpop.permute.xlu1 %1139 }
0x12f6   :  { %v1142_v50 = vadd.f32 %v1140_v14, %v1132_v33 }
0x12f8   :  { %1651 = vtanh.f32 %v1142_v50 }
0x1305   :  { %v1652_v16 = vpop.eup %1651 }
0x1306   :  { %1145 = vrot.lane.b32.xlu0 %v1652_v16, %s1708_s1 }
0x1378   :  { %v1146_v36 = vpop.permute.xlu0 %1145 }
0x1379   :  { %v1148_v38 = vmul.f32 %v1650_v30, %v1146_v36 }
0x137b   :  { %1150 = vrot.lane.b32.xlu1 %v1148_v38, %s1709_s13 }
0x13ed   :  { %v1151_v40 = vpop.permute.xlu1 %1150 }
0x13ee   :  { %1358 = vst.msk [vmem:[%s2052_s6 + $0x30] sm:$0xff] %vm33_vm1, %v1151_v40  ;;  %v1157_v8 = vmul.f32 %v1156_v39, %v1151_v40 }
0x13f0   :  { %v1160_v41 = vpack.c.bf16 %v1157_v8, %v1157_v8 }
0x13f2   :  { %1498 = vmatmul.mubr.msk.bf16.vlgmr.msra.gmra.mxu1 %vm33_vm1, %v1160_v41 }
0x14b2   :  { %v1214_v43 = vpop.f32.mrf.mxu1 }
0x14b3   :  { %v1220_v44 = vadd.f32 %v1214_v43, %v1889_v55 }
0x14b4   :  { %v1499_v45 = vpop.f32.mrf.mxu1 }
0x14b5   :  { %1653 = vtanh.f32 %v1220_v44  ;;  %v1362_v49 = vmul.f32 -1.442695, %v1220_v44 }
0x14b6   :  { %v1217_v53 = vpop.f32.mrf.mxu1 }
0x14b7   :  { %1655 = vpow2.f32 %v1362_v49 }
0x14b8   :  { %v1500_v46 = vpop.f32.mrf.mxu1 }
0x14c2   :  { %v1654_v48 = vpop.eup %1653 }
0x14c3   :  { %1230 = vrot.lane.b32.xlu0 %v1654_v48, %s1708_s1 }
0x14c4   :  { %v1656_v51 = vpop.eup %1655 }
0x14c5   :  { %v1224_v52 = vadd.f32 1.0, %v1656_v51 }
0x14c7   :  { %1657 = vrcp.f32 %v1224_v52 }
0x14d4   :  { %v1658_v54 = vpop.eup %1657 }
0x14d5   :  { %v1228_v58 = vmul.f32 %v1658_v54, %v1142_v50 }
0x1535   :  { %v1231_v56 = vpop.permute.xlu0 %1230 }
0x1536   :  { %v1233_v57 = vmul.f32 %v1658_v54, %v1231_v56 }
0x1538   :  { %1235 = vrot.lane.b32.xlu1 %v1233_v57, %s1708_s1 }
0x15aa   :  { %v1236_v42 = vpop.permute.xlu1 %1235 }
0x15ab   :  { %v1238_v55 = vadd.f32 %v1236_v42, %v1228_v58 }
0x15ad   :  { %1659 = vtanh.f32 %v1238_v55  ;;  %1252 = vst.msk [vmem:[#allocation3] sm:$0xff] %vm33_vm1, %v1238_v55  ;;  %1257 = vst.msk [vmem:[#allocation8] sm:$0xff] %vm33_vm1, %v1238_v55 }
0x15ba   :  { %v1660_v59 = vpop.eup %1659 }
0x15bb   :  { %1241 = vrot.lane.b32.xlu0 %v1660_v59, %s1708_s1 }
0x15bc   :  { %1672 = shalt.err (!%p1669_p4)
}
0x15bd   :  { %1279 = dma.vmem_to_hbm [thread:$0]  %s1277_s3, 128, %s2054_s8, [#allocation9]  }
0x15be   :  { %s1711_s27 = smov [#allocation6]  }
0x15bf   :  { %s1266_s1 = sshll.u32 %s1711_s27, 4  ;;  %s1267_s1 = int_to_ptr.vmem [resolvable:$true] %s1266_s1 }
0x15c0   :  { %s1681_s30 = scalar_lea.vmem %s1267_s1, 128  ;;  %p1686_p6 = scmp.lt.s32.totalorder %s1267_s1, %s1267_s1 }
0x15c1   :  { %p1682_p5 = scmp.ne.s32.totalorder %s1267_s1, %s1681_s30  ;;  %p1687_p7 = scmp.lt.s32.totalorder %s1681_s30, %s1681_s30 }
0x15c3   :  { %p1688_p8 = por %p1687_p7, %p1686_p6 }
0x15c5   :  { %p1689_p9 = pnand %p1688_p8, %p1682_p5 }
0x162d   :  { %v1242_v60 = vpop.permute.xlu0 %1241 }
0x162e   :  { %v1244_v61 = vmul.f32 %v1658_v54, %v1242_v60 }
0x1630   :  { %1246 = vrot.lane.b32.xlu1 %v1244_v61, %s1709_s13 }
0x16a2   :  { %v1247_v62 = vpop.permute.xlu1 %1246 }
0x16a3   :  { %1363 = vst.msk [vmem:[%s2052_s6 + $0x38] sm:$0xff] %vm33_vm1, %v1247_v62  ;;  %1251 = vst.msk [vmem:[#allocation2] sm:$0xff] %vm33_vm1, %v1247_v62 }
0x16a4   :  { %1256 = vst.msk [vmem:[#allocation6] sm:$0xff] %vm33_vm1, %v1247_v62 }
0x16a5   :  { %1692 = shalt.err (!%p1689_p9)
}
0x16a6   :  { %1269 = dma.vmem_to_hbm [thread:$0]  %s1267_s1, 128, %s2053_s7, [#allocation7]  }
0x16a7   :  { %1701 = dma.done.wait [#allocation7], 128  }
0x16a8   :  { %1702 = vsyncadd [#allocation7], 4294967168 }
0x16a9   :  { %1703 = dma.done.wait [#allocation9], 128  }
0x16aa   :  { %1704 = vsyncadd [#allocation9], 4294967168 }
0x16ab   :  { %1288 = vsyncpa [#allocation7], 1 }
0x16ac   :  { %1289 = vsyncpa [#allocation9], 1 }

</bundles_post_ra>
